<compile_context>
chip_gen: v5e
topology: v5e:2x2
jax: 0.10.0
libtpu: 0.0.40
codegen_flags: <defaults>
</compile_context>

<pallas_src>
import functools

import jax
import jax.numpy as jnp
from jax import lax
from jax.experimental import pallas as pl
from jax.experimental.pallas import tpu as pltpu


TM_MAX = 256   # row-tile cap for the generic linear
TK_MAX = 512   # contraction-tile cap for the generic linear
EPS = 1e-5


def _round_up(x, m):
    return (x + m - 1) // m * m


def _const_spec(shape):
    zeros = (0,) * len(shape)
    return pl.BlockSpec(shape, lambda *_: zeros)


# ----------------------------------------------------------------------------
# Generic tiled linear: y = act(x @ w + b).  bf16 MXU operands, f32 accumulate,
# bf16 output (activations thread bf16 between kernels).
# ----------------------------------------------------------------------------
def _linear_kernel(x_ref, w_ref, b_ref, o_ref, acc_ref, *, act, nk):
    @pl.when(pl.program_id(1) == 0)
    def _():
        acc_ref[...] = jnp.zeros_like(acc_ref)

    acc_ref[...] += jnp.dot(x_ref[...].astype(jnp.bfloat16), w_ref[...],
                            preferred_element_type=jnp.float32)

    @pl.when(pl.program_id(1) == nk - 1)
    def _():
        y = acc_ref[...] + b_ref[...]
        if act == "relu":
            y = jnp.maximum(y, 0.0)
        o_ref[...] = y.astype(o_ref.dtype)


def pallas_linear(x, w, b, act="none", out_dtype=jnp.bfloat16):
    """x: (M, K), w: (K, N) bf16, b: (N,) f32 -> (M, N) out_dtype."""
    M, K = x.shape
    Kw, Nc = w.shape
    assert K == Kw
    TM = M if M <= TM_MAX else TM_MAX
    if K <= TK_MAX:
        TK, xp, wp, Kp = K, x, w, K
    else:                                  # K-padding is required for correct accumulation
        TK = TK_MAX
        Kp = _round_up(K, TK)
        xp = jnp.pad(x, ((0, 0), (0, Kp - K)))
        wp = jnp.pad(w, ((0, Kp - K), (0, 0)))
    nm, nk = pl.cdiv(M, TM), Kp // TK

    return pl.pallas_call(
        functools.partial(_linear_kernel, act=act, nk=nk),
        out_shape=jax.ShapeDtypeStruct((M, Nc), out_dtype),
        grid=(nm, nk),
        in_specs=[
            pl.BlockSpec((TM, TK), lambda i, k: (i, k)),
            pl.BlockSpec((TK, Nc), lambda i, k: (k, 0)),
            pl.BlockSpec((1, Nc), lambda i, k: (0, 0)),
        ],
        out_specs=pl.BlockSpec((TM, Nc), lambda i, k: (i, 0)),
        scratch_shapes=[pltpu.VMEM((TM, Nc), jnp.float32)],
        compiler_params=pltpu.CompilerParams(
            dimension_semantics=("parallel", "arbitrary")),
    )(xp, wp, b.reshape(1, Nc))


# ----------------------------------------------------------------------------
# Fused 3x3 conv + bias + ReLU on a flattened halo-padded input.
# Each tap is a CONTIGUOUS static row-slice (no per-tap reshape/relayout);
# the 2 wrap-around columns per output row are cropped outside the kernel.
# Weight layout: (9, C_in, C_out) indexed by dh*3+dw.
# ----------------------------------------------------------------------------
def _conv3x3_relu_kernel(x_ref, w_ref, b_ref, o_ref, *, L, W2):
    cout = w_ref.shape[-1]
    acc = jnp.zeros((L, cout), jnp.float32)
    for dh in range(3):
        for dw in range(3):
            off = dh * W2 + dw
            patch = x_ref[0, off:off + L, :]          # contiguous rows, bf16
            acc = acc + jnp.dot(patch, w_ref[dh * 3 + dw],
                                preferred_element_type=jnp.float32)
    o_ref[0] = jnp.maximum(acc + b_ref[...], 0.0).astype(o_ref.dtype)


def conv3x3_relu(x_nhwc, w, b):
    """x: (N, H, W, C) bf16, w: (9, C, Cout) bf16, b: (Cout,) -> (N, H, W, Cout) bf16."""
    Nb, H, W, C = x_nhwc.shape
    cout = w.shape[-1]
    W2 = W + 2
    L = H * W2
    xpad = jnp.pad(x_nhwc, ((0, 0), (1, 1), (1, 1), (0, 0)))
    Rraw = (H + 2) * W2
    Rpad = _round_up(Rraw + 2, 8)          # +2 rows so the last tap slice stays in-bounds
    xflat = jnp.pad(xpad.reshape(Nb, Rraw, C), ((0, 0), (0, Rpad - Rraw), (0, 0)))

    out = pl.pallas_call(
        functools.partial(_conv3x3_relu_kernel, L=L, W2=W2),
        out_shape=jax.ShapeDtypeStruct((Nb, L, cout), jnp.bfloat16),
        grid=(Nb,),
        in_specs=[
            pl.BlockSpec((1, Rpad, C), lambda n: (n, 0, 0)),
            _const_spec((9, C, cout)),
            _const_spec((1, cout)),
        ],
        out_specs=pl.BlockSpec((1, L, cout), lambda n: (n, 0, 0)),
        compiler_params=pltpu.CompilerParams(dimension_semantics=("parallel",)),
    )(xflat, w, b.reshape(1, cout))
    # drop the 2 wrap-around columns per row
    return out.reshape(Nb, H, W2, cout)[:, :, :W, :]


# ----------------------------------------------------------------------------
# Fused self-attention block (per batch element):
#   qkv proj -> per-head causal+padded attention -> lane-dense head merge ->
#   output proj -> residual -> LayerNorm.   (scale is pre-folded into Wq)
# ----------------------------------------------------------------------------
def _self_attn_block_kernel(x_ref, pad_ref, wqkv_ref, bqkv_ref, wo_ref, bo_ref,
                            g_ref, bt_ref, o_ref, *, n_heads, eps):
    T, D = x_ref.shape[1], x_ref.shape[2]
    dh = D // n_heads
    x = x_ref[0]                                                      # (T, D) bf16
    qkv = jnp.dot(x, wqkv_ref[...],
                  preferred_element_type=jnp.float32) + bqkv_ref[...]  # (T, 3D) f32

    # causal + key-padding merged into one select
    row = lax.broadcasted_iota(jnp.int32, (T, T), 0)
    col = lax.broadcasted_iota(jnp.int32, (T, T), 1)
    mask = jnp.where(col > row, jnp.float32(-1e9), pad_ref[0])         # (T, T)

    heads = []
    for h in range(n_heads):
        q_h = qkv[:, h * dh:(h + 1) * dh].astype(jnp.bfloat16)
        k_h = qkv[:, D + h * dh:D + (h + 1) * dh].astype(jnp.bfloat16)
        v_h = qkv[:, 2 * D + h * dh:2 * D + (h + 1) * dh].astype(jnp.bfloat16)
        s = lax.dot_general(q_h, k_h, (((1,), (1,)), ((), ())),
                            preferred_element_type=jnp.float32) + mask
        m = jnp.max(s, axis=-1, keepdims=True)
        p = jnp.exp(s - m)
        p = p * pl.reciprocal(jnp.sum(p, axis=-1, keepdims=True), approx=True)
        heads.append(jnp.dot(p.astype(jnp.bfloat16), v_h,
                             preferred_element_type=jnp.float32))
    attn = jnp.concatenate(heads, axis=-1)                             # (T, D) lane-dense

    y = jnp.dot(attn.astype(jnp.bfloat16), wo_ref[...],
                preferred_element_type=jnp.float32) + bo_ref[...]
    h2 = x.astype(jnp.float32) + y
    mu = jnp.mean(h2, axis=-1, keepdims=True)
    var = jnp.mean(jnp.square(h2 - mu), axis=-1, keepdims=True)
    hn = (h2 - mu) * lax.rsqrt(var + eps)
    o_ref[0] = (hn * g_ref[...] + bt_ref[...]).astype(o_ref.dtype)


def pallas_self_attn_block(x, pad_bias, wqkv, bqkv, wo, bo, gamma, beta, n_heads):
    N, T, D = x.shape
    return pl.pallas_call(
        functools.partial(_self_attn_block_kernel, n_heads=n_heads, eps=EPS),
        out_shape=jax.ShapeDtypeStruct((N, T, D), jnp.bfloat16),
        grid=(N,),
        in_specs=[
            pl.BlockSpec((1, T, D), lambda b: (b, 0, 0)),
            pl.BlockSpec((1, 1, T), lambda b: (b, 0, 0)),
            _const_spec((D, 3 * D)), _const_spec((1, 3 * D)),
            _const_spec((D, D)), _const_spec((1, D)),
            _const_spec((1, D)), _const_spec((1, D)),
        ],
        out_specs=pl.BlockSpec((1, T, D), lambda b: (b, 0, 0)),
        compiler_params=pltpu.CompilerParams(dimension_semantics=("parallel",)),
    )(x, pad_bias, wqkv, bqkv.reshape(1, -1), wo, bo.reshape(1, -1),
      gamma.reshape(1, -1), beta.reshape(1, -1))


# ----------------------------------------------------------------------------
# Fused cross-attention block (per batch element):
#   Q proj (scaled) + KV proj of the CNN memory + attention + head merge +
#   output proj + residual + LayerNorm.
# ----------------------------------------------------------------------------
def _cross_attn_block_kernel(x_ref, mem_ref, wq_ref, bq_ref, wkv_ref, bkv_ref,
                             wo_ref, bo_ref, g_ref, bt_ref, o_ref, *, n_heads, eps):
    T, D = x_ref.shape[1], x_ref.shape[2]
    dh = D // n_heads
    x = x_ref[0]                                                      # (T, D) bf16
    mem = mem_ref[0]                                                  # (S, D) bf16
    q = jnp.dot(x, wq_ref[...],
                preferred_element_type=jnp.float32) + bq_ref[...]     # (T, D) f32
    kv = jnp.dot(mem, wkv_ref[...],
                 preferred_element_type=jnp.float32) + bkv_ref[...]   # (S, 2D) f32

    heads = []
    for h in range(n_heads):
        q_h = q[:, h * dh:(h + 1) * dh].astype(jnp.bfloat16)
        k_h = kv[:, h * dh:(h + 1) * dh].astype(jnp.bfloat16)
        v_h = kv[:, D + h * dh:D + (h + 1) * dh].astype(jnp.bfloat16)
        s = lax.dot_general(q_h, k_h, (((1,), (1,)), ((), ())),
                            preferred_element_type=jnp.float32)
        m = jnp.max(s, axis=-1, keepdims=True)
        p = jnp.exp(s - m)
        p = p * pl.reciprocal(jnp.sum(p, axis=-1, keepdims=True), approx=True)
        heads.append(jnp.dot(p.astype(jnp.bfloat16), v_h,
                             preferred_element_type=jnp.float32))
    attn = jnp.concatenate(heads, axis=-1)                             # (T, D) lane-dense

    y = jnp.dot(attn.astype(jnp.bfloat16), wo_ref[...],
                preferred_element_type=jnp.float32) + bo_ref[...]
    h2 = x.astype(jnp.float32) + y
    mu = jnp.mean(h2, axis=-1, keepdims=True)
    var = jnp.mean(jnp.square(h2 - mu), axis=-1, keepdims=True)
    hn = (h2 - mu) * lax.rsqrt(var + eps)
    o_ref[0] = (hn * g_ref[...] + bt_ref[...]).astype(o_ref.dtype)


def pallas_cross_attn_block(x, mem, wq, bq, wkv, bkv, wo, bo, gamma, beta, n_heads):
    N, T, D = x.shape
    S = mem.shape[1]
    return pl.pallas_call(
        functools.partial(_cross_attn_block_kernel, n_heads=n_heads, eps=EPS),
        out_shape=jax.ShapeDtypeStruct((N, T, D), jnp.bfloat16),
        grid=(N,),
        in_specs=[
            pl.BlockSpec((1, T, D), lambda b: (b, 0, 0)),
            pl.BlockSpec((1, S, D), lambda b: (b, 0, 0)),
            _const_spec((D, D)), _const_spec((1, D)),
            _const_spec((D, 2 * D)), _const_spec((1, 2 * D)),
            _const_spec((D, D)), _const_spec((1, D)),
            _const_spec((1, D)), _const_spec((1, D)),
        ],
        out_specs=pl.BlockSpec((1, T, D), lambda b: (b, 0, 0)),
        compiler_params=pltpu.CompilerParams(dimension_semantics=("parallel",)),
    )(x, mem, wq, bq.reshape(1, -1), wkv, bkv.reshape(1, -1), wo, bo.reshape(1, -1),
      gamma.reshape(1, -1), beta.reshape(1, -1))


# ----------------------------------------------------------------------------
# Fused FFN block: out = LayerNorm(x + W2 relu(W1 x + b1) + b2)
# ----------------------------------------------------------------------------
def _ffn_ln_kernel(x_ref, w1_ref, b1_ref, w2_ref, b2_ref, g_ref, bt_ref, o_ref, *, eps):
    x = x_ref[0]                                                      # (T, D) bf16
    h = jnp.dot(x, w1_ref[...], preferred_element_type=jnp.float32) + b1_ref[...]
    h = jnp.maximum(h, 0.0)
    y = jnp.dot(h.astype(jnp.bfloat16), w2_ref[...],
                preferred_element_type=jnp.float32) + b2_ref[...]
    h2 = x.astype(jnp.float32) + y
    mu = jnp.mean(h2, axis=-1, keepdims=True)
    var = jnp.mean(jnp.square(h2 - mu), axis=-1, keepdims=True)
    hn = (h2 - mu) * lax.rsqrt(var + eps)
    o_ref[0] = (hn * g_ref[...] + bt_ref[...]).astype(o_ref.dtype)


def pallas_ffn_ln(x, w1, b1, w2, b2, gamma, beta):
    N, T, D = x.shape
    F = w1.shape[1]
    return pl.pallas_call(
        functools.partial(_ffn_ln_kernel, eps=EPS),
        out_shape=jax.ShapeDtypeStruct((N, T, D), jnp.bfloat16),
        grid=(N,),
        in_specs=[
            pl.BlockSpec((1, T, D), lambda b: (b, 0, 0)),
            _const_spec((D, F)), _const_spec((1, F)),
            _const_spec((F, D)), _const_spec((1, D)),
            _const_spec((1, D)), _const_spec((1, D)),
        ],
        out_specs=pl.BlockSpec((1, T, D), lambda b: (b, 0, 0)),
        compiler_params=pltpu.CompilerParams(dimension_semantics=("parallel",)),
    )(x, w1, b1.reshape(1, -1), w2, b2.reshape(1, -1),
      gamma.reshape(1, -1), beta.reshape(1, -1))


# ----------------------------------------------------------------------------
# Fused decoder tail: de = LM(x); out = fc(de + rethink(de))
# ----------------------------------------------------------------------------
def _head_rethink_fc_kernel(x_ref, wlm_ref, blm_ref, w1_ref, b1_ref,
                            w2_ref, b2_ref, wf_ref, bf_ref, o_ref):
    x = x_ref[0]                                                      # (T, D) bf16
    de = jnp.dot(x, wlm_ref[...],
                 preferred_element_type=jnp.float32) + blm_ref[...]   # (T, V) f32
    r = jnp.dot(de.astype(jnp.bfloat16), w1_ref[...],
                preferred_element_type=jnp.float32) + b1_ref[...]
    r = jnp.maximum(r, 0.0)
    r = jnp.dot(r.astype(jnp.bfloat16), w2_ref[...],
                preferred_element_type=jnp.float32) + b2_ref[...]
    h = de + r
    y = jnp.dot(h.astype(jnp.bfloat16), wf_ref[...],
                preferred_element_type=jnp.float32) + bf_ref[...]
    o_ref[0] = y.astype(o_ref.dtype)


def pallas_head_rethink_fc(x, wlm, blm, w1, b1, w2, b2, wf, bf):
    N, T, D = x.shape
    V = wlm.shape[1]
    return pl.pallas_call(
        _head_rethink_fc_kernel,
        out_shape=jax.ShapeDtypeStruct((N, T, V), jnp.float32),
        grid=(N,),
        in_specs=[
            pl.BlockSpec((1, T, D), lambda b: (b, 0, 0)),
            _const_spec((D, V)), _const_spec((1, V)),
            _const_spec((V, D)), _const_spec((1, D)),
            _const_spec((D, V)), _const_spec((1, V)),
            _const_spec((V, V)), _const_spec((1, V)),
        ],
        out_specs=pl.BlockSpec((1, T, V), lambda b: (b, 0, 0)),
        compiler_params=pltpu.CompilerParams(dimension_semantics=("parallel",)),
    )(x, wlm, blm.reshape(1, -1), w1, b1.reshape(1, -1),
      w2, b2.reshape(1, -1), wf, bf.reshape(1, -1))


# ----------------------------------------------------------------------------
# Glue (plain JAX)
# ----------------------------------------------------------------------------
def maxpool2x2(x):
    return lax.reduce_window(x, jnp.array(-jnp.inf, x.dtype), lax.max,
                             (1, 2, 2, 1), (1, 2, 2, 1), "VALID")


def positional_encoding(T, D):
    assert D % 2 == 0
    pos = jnp.arange(T, dtype=jnp.float32)[:, None]
    i = jnp.arange(0, D, 2, dtype=jnp.float32)[None, :]
    ang = pos / jnp.power(10000.0, i / D)
    pe = jnp.zeros((T, D), jnp.float32)
    pe = pe.at[:, 0::2].set(jnp.sin(ang))
    pe = pe.at[:, 1::2].set(jnp.cos(ang))
    return pe


# ----------------------------------------------------------------------------
# Parameters (deterministic synthetic init; weights stored bf16 for the MXU)
# ----------------------------------------------------------------------------
def init_params(key, cfg):
    D, V, F = cfg["d_model"], cfg["vocab"], cfg["d_ff"]
    C1, Hh = cfg["conv1_ch"], cfg["n_heads"]
    scale = float(D // Hh) ** -0.5

    def nrm(k, shape, dtype=jnp.bfloat16):
        return (0.02 * jax.random.normal(k, shape, dtype=jnp.float32)).astype(dtype)

    keys = iter(jax.random.split(key, 64))
    p = {}
    # backbone (reduced VGG)
    # conv1 weight layout: (9*C_in, C_out), row index = (dh*3+dw)*C_in + c_in
    p["conv1_w"] = nrm(next(keys), (9 * 3, C1))
    p["conv1_b"] = jnp.zeros((C1,), jnp.float32)
    # conv2 weight layout: (9, C_in, C_out) indexed by dh*3+dw
    p["conv2_w"] = nrm(next(keys), (9, C1, D))
    p["conv2_b"] = jnp.zeros((D,), jnp.float32)
    # TransformerLM (1 post-norm decoder layer)
    p["emb"] = nrm(next(keys), (V, D), jnp.float32)
    # 1/sqrt(dh) folded into the Q projection (weights AND bias — bias is zero here)
    wqkv = nrm(next(keys), (D, 3 * D)).astype(jnp.float32)
    wqkv = wqkv.at[:, :D].multiply(scale)
    p["self_qkv_w"] = wqkv.astype(jnp.bfloat16)
    p["self_qkv_b"] = jnp.zeros((3 * D,), jnp.float32)
    p["self_o_w"] = nrm(next(keys), (D, D)); p["self_o_b"] = jnp.zeros((D,), jnp.float32)
    p["cross_q_w"] = (nrm(next(keys), (D, D)).astype(jnp.float32) * scale).astype(jnp.bfloat16)
    p["cross_q_b"] = jnp.zeros((D,), jnp.float32)
    p["cross_kv_w"] = nrm(next(keys), (D, 2 * D))
    p["cross_kv_b"] = jnp.zeros((2 * D,), jnp.float32)
    p["cross_o_w"] = nrm(next(keys), (D, D)); p["cross_o_b"] = jnp.zeros((D,), jnp.float32)
    p["ff1_w"] = nrm(next(keys), (D, F)); p["ff1_b"] = jnp.zeros((F,), jnp.float32)
    p["ff2_w"] = nrm(next(keys), (F, D)); p["ff2_b"] = jnp.zeros((D,), jnp.float32)
    for i in (1, 2, 3):
        p[f"ln{i}_g"] = jnp.ones((D,), jnp.float32)
        p[f"ln{i}_b"] = jnp.zeros((D,), jnp.float32)
    p["lm_w"] = nrm(next(keys), (D, V)); p["lm_b"] = jnp.zeros((V,), jnp.float32)
    # Rethinking adapter (stand-in bottleneck MLP)
    p["rt1_w"] = nrm(next(keys), (V, D)); p["rt1_b"] = jnp.zeros((D,), jnp.float32)
    p["rt2_w"] = nrm(next(keys), (D, V)); p["rt2_b"] = jnp.zeros((V,), jnp.float32)
    # fc_out = nn.Linear(vocab, vocab)
    p["fc_w"] = nrm(next(keys), (V, V)); p["fc_b"] = jnp.zeros((V,), jnp.float32)
    return p


# ----------------------------------------------------------------------------
# AdapterVGGTransformer.forward
# ----------------------------------------------------------------------------
def adapter_vgg_transformer_forward(params, img, tgt, tgt_key_padding_mask, cfg):
    D, V, Hh = cfg["d_model"], cfg["vocab"], cfg["n_heads"]

    # ---- backbone -----------------------------------------------------------
    x = jnp.transpose(img, (0, 2, 3, 1))                      # NCHW -> NHWC (f32)
    Nb, H, W, Cin = x.shape
    # conv1 (C_in=3): one-time XLA im2col -> lane-dense Pallas GEMM + ReLU
    xp = jnp.pad(x, ((0, 0), (1, 1), (1, 1), (0, 0)))
    col = jnp.concatenate([xp[:, dh:dh + H, dw:dw + W, :]
                           for dh in range(3) for dw in range(3)], axis=-1)
    x = pallas_linear(col.reshape(Nb * H * W, 9 * Cin),
                      params["conv1_w"], params["conv1_b"], act="relu")
    x = maxpool2x2(x.reshape(Nb, H, W, -1))
    # conv2: fused flat-tap conv kernel (bf16 activations), then pool
    x = conv3x3_relu(x, params["conv2_w"], params["conv2_b"])
    x = maxpool2x2(x)
    Nb, Hf, Wf, C = x.shape
    # vietocr memory layout: width-major flatten -> (N, S, C)
    mem = jnp.transpose(x, (0, 2, 1, 3)).reshape(Nb, Wf * Hf, C)

    # ---- TransformerLM (1 post-norm decoder layer), batch-first layout ------
    N, T = tgt.shape
    emb = params["emb"][tgt]                                   # (N, T, D) gather (glue)
    xdec = (emb * jnp.sqrt(jnp.float32(D))
            + positional_encoding(T, D)[None, :, :]).astype(jnp.bfloat16)

    pad_bias = jnp.where(tgt_key_padding_mask, -1e9, 0.0).astype(jnp.float32)
    pad_bias = pad_bias.reshape(N, 1, T)

    xdec = pallas_self_attn_block(xdec, pad_bias,
                                  params["self_qkv_w"], params["self_qkv_b"],
                                  params["self_o_w"], params["self_o_b"],
                                  params["ln1_g"], params["ln1_b"], Hh)
    xdec = pallas_cross_attn_block(xdec, mem,
                                   params["cross_q_w"], params["cross_q_b"],
                                   params["cross_kv_w"], params["cross_kv_b"],
                                   params["cross_o_w"], params["cross_o_b"],
                                   params["ln2_g"], params["ln2_b"], Hh)
    xdec = pallas_ffn_ln(xdec, params["ff1_w"], params["ff1_b"],
                         params["ff2_w"], params["ff2_b"],
                         params["ln3_g"], params["ln3_b"])

    # ---- LM head + Rethinking residual + fc_out (one fused kernel) ----------
    out = pallas_head_rethink_fc(xdec, params["lm_w"], params["lm_b"],
                                 params["rt1_w"], params["rt1_b"],
                                 params["rt2_w"], params["rt2_b"],
                                 params["fc_w"], params["fc_b"])
    return out                                                  # (N, T, V) f32


# ----------------------------------------------------------------------------
if __name__ == "__main__":
    cfg = dict(vocab=128, d_model=128, n_heads=4, d_ff=256, max_seq_len=8, conv1_ch=128)
    key = jax.random.PRNGKey(0)
    k_params, k_img, k_tgt = jax.random.split(key, 3)

    params = init_params(k_params, cfg)

    N, T = 2, cfg["max_seq_len"]
    img = jax.random.normal(k_img, (N, 3, 16, 16), dtype=jnp.float32)        # NCHW
    tgt = jax.random.randint(k_tgt, (N, T), 0, cfg["vocab"], dtype=jnp.int32)
    lengths = jnp.array([T, T - 3], dtype=jnp.int32)
    tgt_key_padding_mask = jnp.arange(T)[None, :] >= lengths[:, None]         # True = pad

    fwd = jax.jit(functools.partial(adapter_vgg_transformer_forward, cfg=cfg))
    out = fwd(params, img, tgt, tgt_key_padding_mask)
    out = jax.block_until_ready(out)

    assert out.shape == (N, T, cfg["vocab"]), out.shape
    assert bool(jnp.all(jnp.isfinite(out)))
    print("KERNEL_OK")
</pallas_src>

<mosaic_0001>
module attributes {stable_mosaic.version = 11 : i64} {
  func.func @_linear_kernel(%arg0: i32, %arg1: i32, %arg2: memref<256x27xf32, #tpu.memory_space<vmem>>, %arg3: memref<27x128xbf16, #tpu.memory_space<vmem>>, %arg4: memref<1x128xf32, #tpu.memory_space<vmem>>, %arg5: memref<256x128xbf16, #tpu.memory_space<vmem>>, %arg6: memref<256x128xf32, #tpu.memory_space<vmem>>) attributes {dimension_semantics = [#tpu.dimension_semantics<parallel>, #tpu.dimension_semantics<arbitrary>], iteration_bounds = array<i64: 2, 1>, scalar_prefetch = 0 : i64, scratch_operands = 1 : i64, tpu.core_type = #tpu.core_type<tc>, window_params = [{transform_indices = @transform_0, window_bounds = array<i64: 256, 27>}, {transform_indices = @transform_1, window_bounds = array<i64: 27, 128>}, {pipeline_mode = #tpu.pipeline_mode<synchronous>, transform_indices = @transform_2, window_bounds = array<i64: 1, 128>}, {transform_indices = @transform_3, window_bounds = array<i64: 256, 128>}]} {
    %c0_i32 = arith.constant 0 : i32
    %0 = arith.cmpi eq, %arg1, %c0_i32 : i32
    %1 = arith.extui %0 : i1 to i32
    %c0_i32_0 = arith.constant 0 : i32
    %2 = arith.cmpi ne, %1, %c0_i32_0 : i32
    scf.if %2 {
      %cst_10 = arith.constant 0.000000e+00 : f32
      %13 = vector.broadcast %cst_10 : f32 to vector<256x128xf32>
      %c0_11 = arith.constant 0 : index
      %c0_12 = arith.constant 0 : index
      %14 = vector.load %arg6[%c0_11, %c0_12] : memref<256x128xf32, #tpu.memory_space<vmem>>, vector<256x128xf32>
      tpu.vector_store %arg6[%c0_11, %c0_12], %13 {strides = array<i32>} : memref<256x128xf32, #tpu.memory_space<vmem>>, vector<256x128xf32>,
    } else {
    }
    %c0 = arith.constant 0 : index
    %c0_1 = arith.constant 0 : index
    %3 = vector.load %arg6[%c0, %c0_1] : memref<256x128xf32, #tpu.memory_space<vmem>>, vector<256x128xf32>
    %c0_2 = arith.constant 0 : index
    %c0_3 = arith.constant 0 : index
    %4 = vector.load %arg2[%c0_2, %c0_3] : memref<256x27xf32, #tpu.memory_space<vmem>>, vector<256x27xf32>
    %5 = arith.truncf %4 : vector<256x27xf32> to vector<256x27xbf16>
    %c0_4 = arith.constant 0 : index
    %c0_5 = arith.constant 0 : index
    %6 = vector.load %arg3[%c0_4, %c0_5] : memref<27x128xbf16, #tpu.memory_space<vmem>>, vector<27x128xbf16>
    %cst = arith.constant dense<0.000000e+00> : vector<256x128xf32>
    %7 = tpu.matmul %5, %6, %cst {dimension_numbers = #tpu.dot_dimension_numbers<[1], [0], [0], [1], [0, 0, 1, 1], [], []>} : vector<256x27xbf16>, vector<27x128xbf16>, vector<256x128xf32> -> vector<256x128xf32>
    %8 = arith.addf %3, %7 : vector<256x128xf32>
    %c0_6 = arith.constant 0 : index
    %c0_7 = arith.constant 0 : index
    %9 = vector.load %arg6[%c0_6, %c0_7] : memref<256x128xf32, #tpu.memory_space<vmem>>, vector<256x128xf32>
    tpu.vector_store %arg6[%c0_6, %c0_7], %8 {strides = array<i32>} : memref<256x128xf32, #tpu.memory_space<vmem>>, vector<256x128xf32>,
    %c0_i32_8 = arith.constant 0 : i32
    %10 = arith.cmpi eq, %arg1, %c0_i32_8 : i32
    %11 = arith.extui %10 : i1 to i32
    %c0_i32_9 = arith.constant 0 : i32
    %12 = arith.cmpi ne, %11, %c0_i32_9 : i32
    scf.if %12 {
      %c0_10 = arith.constant 0 : index
      %c0_11 = arith.constant 0 : index
      %13 = vector.load %arg6[%c0_10, %c0_11] : memref<256x128xf32, #tpu.memory_space<vmem>>, vector<256x128xf32>
      %c0_12 = arith.constant 0 : index
      %c0_13 = arith.constant 0 : index
      %14 = vector.load %arg4[%c0_12, %c0_13] : memref<1x128xf32, #tpu.memory_space<vmem>>, vector<1x128xf32>
      %15 = vector.broadcast %14 : vector<1x128xf32> to vector<256x128xf32>
      %16 = arith.addf %13, %15 : vector<256x128xf32>
      %cst_14 = arith.constant 0.000000e+00 : f32
      %17 = vector.broadcast %cst_14 : f32 to vector<256x128xf32>
      %18 = arith.maximumf %16, %17 : vector<256x128xf32>
      %19 = arith.truncf %18 : vector<256x128xf32> to vector<256x128xbf16>
      %c0_15 = arith.constant 0 : index
      %c0_16 = arith.constant 0 : index
      %20 = vector.load %arg5[%c0_15, %c0_16] : memref<256x128xbf16, #tpu.memory_space<vmem>>, vector<256x128xbf16>
      tpu.vector_store %arg5[%c0_15, %c0_16], %19 {strides = array<i32>} : memref<256x128xbf16, #tpu.memory_space<vmem>>, vector<256x128xbf16>,
    } else {
    }
    return
  }
  func.func @transform_0(%arg0: i32, %arg1: i32) -> (i32, i32) {
    %c0_i32 = arith.constant 0 : i32
    return %arg0, %arg1 : i32, i32
  }
  func.func @transform_1(%arg0: i32, %arg1: i32) -> (i32, i32) {
    %c0_i32 = arith.constant 0 : i32
    %c0_i32_0 = arith.constant 0 : i32
    return %arg1, %c0_i32 : i32, i32
  }
  func.func @transform_2(%arg0: i32, %arg1: i32) -> (i32, i32) {
    %c0_i32 = arith.constant 0 : i32
    %c0_i32_0 = arith.constant 0 : i32
    %c0_i32_1 = arith.constant 0 : i32
    return %c0_i32, %c0_i32_0 : i32, i32
  }
  func.func @transform_3(%arg0: i32, %arg1: i32) -> (i32, i32) {
    %c0_i32 = arith.constant 0 : i32
    %c0_i32_0 = arith.constant 0 : i32
    return %arg0, %c0_i32 : i32, i32
  }
}

module attributes {stable_mosaic.version = 11 : i64} {
  func.func @_conv3x3_relu_kernel(%arg0: i32, %arg1: memref<1x104x128xbf16, #tpu.memory_space<vmem>>, %arg2: memref<9x128x128xbf16, #tpu.memory_space<vmem>>, %arg3: memref<1x128xf32, #tpu.memory_space<vmem>>, %arg4: memref<1x80x128xbf16, #tpu.memory_space<vmem>>) attributes {dimension_semantics = [#tpu.dimension_semantics<parallel>], iteration_bounds = array<i64: 2>, scalar_prefetch = 0 : i64, scratch_operands = 0 : i64, tpu.core_type = #tpu.core_type<tc>, window_params = [{transform_indices = @transform_0, window_bounds = array<i64: 1, 104, 128>}, {pipeline_mode = #tpu.pipeline_mode<synchronous>, transform_indices = @transform_1, window_bounds = array<i64: 9, 128, 128>}, {pipeline_mode = #tpu.pipeline_mode<synchronous>, transform_indices = @transform_2, window_bounds = array<i64: 1, 128>}, {transform_indices = @transform_3, window_bounds = array<i64: 1, 80, 128>}]} {
    %cst = arith.constant 0.000000e+00 : f32
    %0 = vector.broadcast %cst : f32 to vector<80x128xf32>
    %c0 = arith.constant 0 : index
    %c0_0 = arith.constant 0 : index
    %c0_1 = arith.constant 0 : index
    %1 = vector.load %arg1[%c0, %c0_0, %c0_1] : memref<1x104x128xbf16, #tpu.memory_space<vmem>>, vector<1x80x128xbf16>
    %2 = vector.shape_cast %1 : vector<1x80x128xbf16> to vector<80x128xbf16>
    %c0_2 = arith.constant 0 : index
    %c0_3 = arith.constant 0 : index
    %c0_4 = arith.constant 0 : index
    %3 = vector.load %arg2[%c0_2, %c0_3, %c0_4] : memref<9x128x128xbf16, #tpu.memory_space<vmem>>, vector<1x128x128xbf16>
    %4 = vector.shape_cast %3 : vector<1x128x128xbf16> to vector<128x128xbf16>
    %cst_5 = arith.constant dense<0.000000e+00> : vector<80x128xf32>
    %5 = tpu.matmul %2, %4, %cst_5 {dimension_numbers = #tpu.dot_dimension_numbers<[1], [0], [0], [1], [0, 0, 1, 1], [], []>} : vector<80x128xbf16>, vector<128x128xbf16>, vector<80x128xf32> -> vector<80x128xf32>
    %6 = arith.addf %0, %5 : vector<80x128xf32>
    %c0_6 = arith.constant 0 : index
    %c1 = arith.constant 1 : index
    %c0_7 = arith.constant 0 : index
    %7 = vector.load %arg1[%c0_6, %c1, %c0_7] : memref<1x104x128xbf16, #tpu.memory_space<vmem>>, vector<1x80x128xbf16>
    %8 = vector.shape_cast %7 : vector<1x80x128xbf16> to vector<80x128xbf16>
    %c1_8 = arith.constant 1 : index
    %c0_9 = arith.constant 0 : index
    %c0_10 = arith.constant 0 : index
    %9 = vector.load %arg2[%c1_8, %c0_9, %c0_10] : memref<9x128x128xbf16, #tpu.memory_space<vmem>>, vector<1x128x128xbf16>
    %10 = vector.shape_cast %9 : vector<1x128x128xbf16> to vector<128x128xbf16>
    %cst_11 = arith.constant dense<0.000000e+00> : vector<80x128xf32>
    %11 = tpu.matmul %8, %10, %cst_11 {dimension_numbers = #tpu.dot_dimension_numbers<[1], [0], [0], [1], [0, 0, 1, 1], [], []>} : vector<80x128xbf16>, vector<128x128xbf16>, vector<80x128xf32> -> vector<80x128xf32>
    %12 = arith.addf %6, %11 : vector<80x128xf32>
    %c0_12 = arith.constant 0 : index
    %c2 = arith.constant 2 : index
    %c0_13 = arith.constant 0 : index
    %13 = vector.load %arg1[%c0_12, %c2, %c0_13] : memref<1x104x128xbf16, #tpu.memory_space<vmem>>, vector<1x80x128xbf16>
    %14 = vector.shape_cast %13 : vector<1x80x128xbf16> to vector<80x128xbf16>
    %c2_14 = arith.constant 2 : index
    %c0_15 = arith.constant 0 : index
    %c0_16 = arith.constant 0 : index
    %15 = vector.load %arg2[%c2_14, %c0_15, %c0_16] : memref<9x128x128xbf16, #tpu.memory_space<vmem>>, vector<1x128x128xbf16>
    %16 = vector.shape_cast %15 : vector<1x128x128xbf16> to vector<128x128xbf16>
    %cst_17 = arith.constant dense<0.000000e+00> : vector<80x128xf32>
    %17 = tpu.matmul %14, %16, %cst_17 {dimension_numbers = #tpu.dot_dimension_numbers<[1], [0], [0], [1], [0, 0, 1, 1], [], []>} : vector<80x128xbf16>, vector<128x128xbf16>, vector<80x128xf32> -> vector<80x128xf32>
    %18 = arith.addf %12, %17 : vector<80x128xf32>
    %c0_18 = arith.constant 0 : index
    %c10 = arith.constant 10 : index
    %c0_19 = arith.constant 0 : index
    %19 = vector.load %arg1[%c0_18, %c10, %c0_19] : memref<1x104x128xbf16, #tpu.memory_space<vmem>>, vector<1x80x128xbf16>
    %20 = vector.shape_cast %19 : vector<1x80x128xbf16> to vector<80x128xbf16>
    %c3 = arith.constant 3 : index
    %c0_20 = arith.constant 0 : index
    %c0_21 = arith.constant 0 : index
    %21 = vector.load %arg2[%c3, %c0_20, %c0_21] : memref<9x128x128xbf16, #tpu.memory_space<vmem>>, vector<1x128x128xbf16>
    %22 = vector.shape_cast %21 : vector<1x128x128xbf16> to vector<128x128xbf16>
    %cst_22 = arith.constant dense<0.000000e+00> : vector<80x128xf32>
    %23 = tpu.matmul %20, %22, %cst_22 {dimension_numbers = #tpu.dot_dimension_numbers<[1], [0], [0], [1], [0, 0, 1, 1], [], []>} : vector<80x128xbf16>, vector<128x128xbf16>, vector<80x128xf32> -> vector<80x128xf32>
    %24 = arith.addf %18, %23 : vector<80x128xf32>
    %c0_23 = arith.constant 0 : index
    %c11 = arith.constant 11 : index
    %c0_24 = arith.constant 0 : index
    %25 = vector.load %arg1[%c0_23, %c11, %c0_24] : memref<1x104x128xbf16, #tpu.memory_space<vmem>>, vector<1x80x128xbf16>
    %26 = vector.shape_cast %25 : vector<1x80x128xbf16> to vector<80x128xbf16>
    %c4 = arith.constant 4 : index
    %c0_25 = arith.constant 0 : index
    %c0_26 = arith.constant 0 : index
    %27 = vector.load %arg2[%c4, %c0_25, %c0_26] : memref<9x128x128xbf16, #tpu.memory_space<vmem>>, vector<1x128x128xbf16>
    %28 = vector.shape_cast %27 : vector<1x128x128xbf16> to vector<128x128xbf16>
    %cst_27 = arith.constant dense<0.000000e+00> : vector<80x128xf32>
    %29 = tpu.matmul %26, %28, %cst_27 {dimension_numbers = #tpu.dot_dimension_numbers<[1], [0], [0], [1], [0, 0, 1, 1], [], []>} : vector<80x128xbf16>, vector<128x128xbf16>, vector<80x128xf32> -> vector<80x128xf32>
    %30 = arith.addf %24, %29 : vector<80x128xf32>
    %c0_28 = arith.constant 0 : index
    %c12 = arith.constant 12 : index
    %c0_29 = arith.constant 0 : index
    %31 = vector.load %arg1[%c0_28, %c12, %c0_29] : memref<1x104x128xbf16, #tpu.memory_space<vmem>>, vector<1x80x128xbf16>
    %32 = vector.shape_cast %31 : vector<1x80x128xbf16> to vector<80x128xbf16>
    %c5 = arith.constant 5 : index
    %c0_30 = arith.constant 0 : index
    %c0_31 = arith.constant 0 : index
    %33 = vector.load %arg2[%c5, %c0_30, %c0_31] : memref<9x128x128xbf16, #tpu.memory_space<vmem>>, vector<1x128x128xbf16>
    %34 = vector.shape_cast %33 : vector<1x128x128xbf16> to vector<128x128xbf16>
    %cst_32 = arith.constant dense<0.000000e+00> : vector<80x128xf32>
    %35 = tpu.matmul %32, %34, %cst_32 {dimension_numbers = #tpu.dot_dimension_numbers<[1], [0], [0], [1], [0, 0, 1, 1], [], []>} : vector<80x128xbf16>, vector<128x128xbf16>, vector<80x128xf32> -> vector<80x128xf32>
    %36 = arith.addf %30, %35 : vector<80x128xf32>
    %c0_33 = arith.constant 0 : index
    %c20 = arith.constant 20 : index
    %c0_34 = arith.constant 0 : index
    %37 = vector.load %arg1[%c0_33, %c20, %c0_34] : memref<1x104x128xbf16, #tpu.memory_space<vmem>>, vector<1x80x128xbf16>
    %38 = vector.shape_cast %37 : vector<1x80x128xbf16> to vector<80x128xbf16>
    %c6 = arith.constant 6 : index
    %c0_35 = arith.constant 0 : index
    %c0_36 = arith.constant 0 : index
    %39 = vector.load %arg2[%c6, %c0_35, %c0_36] : memref<9x128x128xbf16, #tpu.memory_space<vmem>>, vector<1x128x128xbf16>
    %40 = vector.shape_cast %39 : vector<1x128x128xbf16> to vector<128x128xbf16>
    %cst_37 = arith.constant dense<0.000000e+00> : vector<80x128xf32>
    %41 = tpu.matmul %38, %40, %cst_37 {dimension_numbers = #tpu.dot_dimension_numbers<[1], [0], [0], [1], [0, 0, 1, 1], [], []>} : vector<80x128xbf16>, vector<128x128xbf16>, vector<80x128xf32> -> vector<80x128xf32>
    %42 = arith.addf %36, %41 : vector<80x128xf32>
    %c0_38 = arith.constant 0 : index
    %c21 = arith.constant 21 : index
    %c0_39 = arith.constant 0 : index
    %43 = vector.load %arg1[%c0_38, %c21, %c0_39] : memref<1x104x128xbf16, #tpu.memory_space<vmem>>, vector<1x80x128xbf16>
    %44 = vector.shape_cast %43 : vector<1x80x128xbf16> to vector<80x128xbf16>
    %c7 = arith.constant 7 : index
    %c0_40 = arith.constant 0 : index
    %c0_41 = arith.constant 0 : index
    %45 = vector.load %arg2[%c7, %c0_40, %c0_41] : memref<9x128x128xbf16, #tpu.memory_space<vmem>>, vector<1x128x128xbf16>
    %46 = vector.shape_cast %45 : vector<1x128x128xbf16> to vector<128x128xbf16>
    %cst_42 = arith.constant dense<0.000000e+00> : vector<80x128xf32>
    %47 = tpu.matmul %44, %46, %cst_42 {dimension_numbers = #tpu.dot_dimension_numbers<[1], [0], [0], [1], [0, 0, 1, 1], [], []>} : vector<80x128xbf16>, vector<128x128xbf16>, vector<80x128xf32> -> vector<80x128xf32>
    %48 = arith.addf %42, %47 : vector<80x128xf32>
    %c0_43 = arith.constant 0 : index
    %c22 = arith.constant 22 : index
    %c0_44 = arith.constant 0 : index
    %49 = vector.load %arg1[%c0_43, %c22, %c0_44] : memref<1x104x128xbf16, #tpu.memory_space<vmem>>, vector<1x80x128xbf16>
    %50 = vector.shape_cast %49 : vector<1x80x128xbf16> to vector<80x128xbf16>
    %c8 = arith.constant 8 : index
    %c0_45 = arith.constant 0 : index
    %c0_46 = arith.constant 0 : index
    %51 = vector.load %arg2[%c8, %c0_45, %c0_46] : memref<9x128x128xbf16, #tpu.memory_space<vmem>>, vector<1x128x128xbf16>
    %52 = vector.shape_cast %51 : vector<1x128x128xbf16> to vector<128x128xbf16>
    %cst_47 = arith.constant dense<0.000000e+00> : vector<80x128xf32>
    %53 = tpu.matmul %50, %52, %cst_47 {dimension_numbers = #tpu.dot_dimension_numbers<[1], [0], [0], [1], [0, 0, 1, 1], [], []>} : vector<80x128xbf16>, vector<128x128xbf16>, vector<80x128xf32> -> vector<80x128xf32>
    %54 = arith.addf %48, %53 : vector<80x128xf32>
    %c0_48 = arith.constant 0 : index
    %c0_49 = arith.constant 0 : index
    %55 = vector.load %arg3[%c0_48, %c0_49] : memref<1x128xf32, #tpu.memory_space<vmem>>, vector<1x128xf32>
    %56 = vector.broadcast %55 : vector<1x128xf32> to vector<80x128xf32>
    %57 = arith.addf %54, %56 : vector<80x128xf32>
    %cst_50 = arith.constant 0.000000e+00 : f32
    %58 = vector.broadcast %cst_50 : f32 to vector<80x128xf32>
    %59 = arith.maximumf %57, %58 : vector<80x128xf32>
    %60 = arith.truncf %59 : vector<80x128xf32> to vector<80x128xbf16>
    %c0_51 = arith.constant 0 : index
    %c0_52 = arith.constant 0 : index
    %c0_53 = arith.constant 0 : index
    %61 = vector.load %arg4[%c0_51, %c0_52, %c0_53] : memref<1x80x128xbf16, #tpu.memory_space<vmem>>, vector<1x80x128xbf16>
    %62 = vector.shape_cast %61 : vector<1x80x128xbf16> to vector<80x128xbf16>
    %63 = vector.shape_cast %60 : vector<80x128xbf16> to vector<1x80x128xbf16>
    tpu.vector_store %arg4[%c0_51, %c0_52, %c0_53], %63 {strides = array<i32>} : memref<1x80x128xbf16, #tpu.memory_space<vmem>>, vector<1x80x128xbf16>,
    return
  }
  func.func @transform_0(%arg0: i32) -> (i32, i32, i32) {
    %c0_i32 = arith.constant 0 : i32
    %c0_i32_0 = arith.constant 0 : i32
    %c0_i32_1 = arith.constant 0 : i32
    return %arg0, %c0_i32, %c0_i32_0 : i32, i32, i32
  }
  func.func @transform_1(%arg0: i32) -> (i32, i32, i32) {
    %c0_i32 = arith.constant 0 : i32
    %c0_i32_0 = arith.constant 0 : i32
    %c0_i32_1 = arith.constant 0 : i32
    %c0_i32_2 = arith.constant 0 : i32
    return %c0_i32, %c0_i32_0, %c0_i32_1 : i32, i32, i32
  }
  func.func @transform_2(%arg0: i32) -> (i32, i32) {
    %c0_i32 = arith.constant 0 : i32
    %c0_i32_0 = arith.constant 0 : i32
    %c0_i32_1 = arith.constant 0 : i32
    return %c0_i32, %c0_i32_0 : i32, i32
  }
  func.func @transform_3(%arg0: i32) -> (i32, i32, i32) {
    %c0_i32 = arith.constant 0 : i32
    %c0_i32_0 = arith.constant 0 : i32
    %c0_i32_1 = arith.constant 0 : i32
    return %arg0, %c0_i32, %c0_i32_0 : i32, i32, i32
  }
}

module attributes {stable_mosaic.version = 11 : i64} {
  func.func @_self_attn_block_kernel(%arg0: i32, %arg1: memref<1x8x128xbf16, #tpu.memory_space<vmem>>, %arg2: memref<1x1x8xf32, #tpu.memory_space<vmem>>, %arg3: memref<128x384xbf16, #tpu.memory_space<vmem>>, %arg4: memref<1x384xf32, #tpu.memory_space<vmem>>, %arg5: memref<128x128xbf16, #tpu.memory_space<vmem>>, %arg6: memref<1x128xf32, #tpu.memory_space<vmem>>, %arg7: memref<1x128xf32, #tpu.memory_space<vmem>>, %arg8: memref<1x128xf32, #tpu.memory_space<vmem>>, %arg9: memref<1x8x128xbf16, #tpu.memory_space<vmem>>) attributes {dimension_semantics = [#tpu.dimension_semantics<parallel>], iteration_bounds = array<i64: 2>, scalar_prefetch = 0 : i64, scratch_operands = 0 : i64, tpu.core_type = #tpu.core_type<tc>, window_params = [{transform_indices = @transform_0, window_bounds = array<i64: 1, 8, 128>}, {transform_indices = @transform_1, window_bounds = array<i64: 1, 1, 8>}, {pipeline_mode = #tpu.pipeline_mode<synchronous>, transform_indices = @transform_2, window_bounds = array<i64: 128, 384>}, {pipeline_mode = #tpu.pipeline_mode<synchronous>, transform_indices = @transform_3, window_bounds = array<i64: 1, 384>}, {pipeline_mode = #tpu.pipeline_mode<synchronous>, transform_indices = @transform_4, window_bounds = array<i64: 128, 128>}, {pipeline_mode = #tpu.pipeline_mode<synchronous>, transform_indices = @transform_5, window_bounds = array<i64: 1, 128>}, {pipeline_mode = #tpu.pipeline_mode<synchronous>, transform_indices = @transform_6, window_bounds = array<i64: 1, 128>}, {pipeline_mode = #tpu.pipeline_mode<synchronous>, transform_indices = @transform_7, window_bounds = array<i64: 1, 128>}, {transform_indices = @transform_8, window_bounds = array<i64: 1, 8, 128>}]} {
    %c0 = arith.constant 0 : index
    %c0_0 = arith.constant 0 : index
    %c0_1 = arith.constant 0 : index
    %0 = vector.load %arg1[%c0, %c0_0, %c0_1] : memref<1x8x128xbf16, #tpu.memory_space<vmem>>, vector<1x8x128xbf16>
    %1 = vector.shape_cast %0 : vector<1x8x128xbf16> to vector<8x128xbf16>
    %c0_2 = arith.constant 0 : index
    %c0_3 = arith.constant 0 : index
    %2 = vector.load %arg3[%c0_2, %c0_3] : memref<128x384xbf16, #tpu.memory_space<vmem>>, vector<128x384xbf16>
    %cst = arith.constant dense<0.000000e+00> : vector<8x384xf32>
    %3 = tpu.matmul %1, %2, %cst {dimension_numbers = #tpu.dot_dimension_numbers<[1], [0], [0], [1], [0, 0, 1, 1], [], []>} : vector<8x128xbf16>, vector<128x384xbf16>, vector<8x384xf32> -> vector<8x384xf32>
    %c0_4 = arith.constant 0 : index
    %c0_5 = arith.constant 0 : index
    %4 = vector.load %arg4[%c0_4, %c0_5] : memref<1x384xf32, #tpu.memory_space<vmem>>, vector<1x384xf32>
    %5 = vector.broadcast %4 : vector<1x384xf32> to vector<8x384xf32>
    %6 = arith.addf %3, %5 : vector<8x384xf32>
    %7 = tpu.iota {dimensions = array<i32: 0>} : vector<8x8xi32>
    %8 = tpu.iota {dimensions = array<i32: 1>} : vector<8x8xi32>
    %9 = arith.cmpi sgt, %8, %7 : vector<8x8xi32>
    %c0_6 = arith.constant 0 : index
    %c0_7 = arith.constant 0 : index
    %c0_8 = arith.constant 0 : index
    %10 = vector.load %arg2[%c0_6, %c0_7, %c0_8] : memref<1x1x8xf32, #tpu.memory_space<vmem>>, vector<1x1x8xf32>
    %11 = vector.shape_cast %10 : vector<1x1x8xf32> to vector<1x8xf32>
    %cst_9 = arith.constant -1.000000e+09 : f32
    %12 = vector.broadcast %cst_9 : f32 to vector<8x8xf32>
    %13 = vector.shape_cast %11 : vector<1x8xf32> to vector<1x8xf32>
    %14 = vector.broadcast %13 : vector<1x8xf32> to vector<8x8xf32>
    %15 = arith.select %9, %12, %14 : vector<8x8xi1>, vector<8x8xf32>
    %16 = vector.extract_strided_slice %6 {offsets = [0, 0], sizes = [8, 32], strides = [1, 1]} : vector<8x384xf32> to vector<8x32xf32>
    %17 = arith.truncf %16 : vector<8x32xf32> to vector<8x32xbf16>
    %18 = vector.extract_strided_slice %6 {offsets = [0, 128], sizes = [8, 32], strides = [1, 1]} : vector<8x384xf32> to vector<8x32xf32>
    %19 = arith.truncf %18 : vector<8x32xf32> to vector<8x32xbf16>
    %20 = vector.extract_strided_slice %6 {offsets = [0, 256], sizes = [8, 32], strides = [1, 1]} : vector<8x384xf32> to vector<8x32xf32>
    %21 = arith.truncf %20 : vector<8x32xf32> to vector<8x32xbf16>
    %cst_10 = arith.constant dense<0.000000e+00> : vector<8x8xf32>
    %22 = tpu.matmul %17, %19, %cst_10 {dimension_numbers = #tpu.dot_dimension_numbers<[1], [1], [0], [0], [0, 0, 1, 0], [], []>} : vector<8x32xbf16>, vector<8x32xbf16>, vector<8x8xf32> -> vector<8x8xf32>
    %23 = arith.addf %22, %15 : vector<8x8xf32>
    %cst_11 = arith.constant dense<0xFF800000> : vector<8xf32>
    %24 = vector.multi_reduction <maximumf>, %23, %cst_11 [1] : vector<8x8xf32> to vector<8xf32>
    %25 = vector.shape_cast %24 : vector<8xf32> to vector<8x1xf32>
    %26 = vector.broadcast %25 : vector<8x1xf32> to vector<8x8xf32>
    %27 = arith.subf %23, %26 : vector<8x8xf32>
    %28 = math.exp %27 : vector<8x8xf32>
    %cst_12 = arith.constant dense<0.000000e+00> : vector<8xf32>
    %29 = vector.multi_reduction <add>, %28, %cst_12 [1] : vector<8x8xf32> to vector<8xf32>
    %30 = vector.shape_cast %29 : vector<8xf32> to vector<8x1xf32>
    %31 = tpu.reciprocal %30 {approx = true} : vector<8x1xf32> -> vector<8x1xf32>
    %32 = vector.broadcast %31 : vector<8x1xf32> to vector<8x8xf32>
    %33 = arith.mulf %28, %32 : vector<8x8xf32>
    %34 = arith.truncf %33 : vector<8x8xf32> to vector<8x8xbf16>
    %cst_13 = arith.constant dense<0.000000e+00> : vector<8x32xf32>
    %35 = tpu.matmul %34, %21, %cst_13 {dimension_numbers = #tpu.dot_dimension_numbers<[1], [0], [0], [1], [0, 0, 1, 1], [], []>} : vector<8x8xbf16>, vector<8x32xbf16>, vector<8x32xf32> -> vector<8x32xf32>
    %36 = vector.extract_strided_slice %6 {offsets = [0, 32], sizes = [8, 32], strides = [1, 1]} : vector<8x384xf32> to vector<8x32xf32>
    %37 = arith.truncf %36 : vector<8x32xf32> to vector<8x32xbf16>
    %38 = vector.extract_strided_slice %6 {offsets = [0, 160], sizes = [8, 32], strides = [1, 1]} : vector<8x384xf32> to vector<8x32xf32>
    %39 = arith.truncf %38 : vector<8x32xf32> to vector<8x32xbf16>
    %40 = vector.extract_strided_slice %6 {offsets = [0, 288], sizes = [8, 32], strides = [1, 1]} : vector<8x384xf32> to vector<8x32xf32>
    %41 = arith.truncf %40 : vector<8x32xf32> to vector<8x32xbf16>
    %cst_14 = arith.constant dense<0.000000e+00> : vector<8x8xf32>
    %42 = tpu.matmul %37, %39, %cst_14 {dimension_numbers = #tpu.dot_dimension_numbers<[1], [1], [0], [0], [0, 0, 1, 0], [], []>} : vector<8x32xbf16>, vector<8x32xbf16>, vector<8x8xf32> -> vector<8x8xf32>
    %43 = arith.addf %42, %15 : vector<8x8xf32>
    %cst_15 = arith.constant dense<0xFF800000> : vector<8xf32>
    %44 = vector.multi_reduction <maximumf>, %43, %cst_15 [1] : vector<8x8xf32> to vector<8xf32>
    %45 = vector.shape_cast %44 : vector<8xf32> to vector<8x1xf32>
    %46 = vector.broadcast %45 : vector<8x1xf32> to vector<8x8xf32>
    %47 = arith.subf %43, %46 : vector<8x8xf32>
    %48 = math.exp %47 : vector<8x8xf32>
    %cst_16 = arith.constant dense<0.000000e+00> : vector<8xf32>
    %49 = vector.multi_reduction <add>, %48, %cst_16 [1] : vector<8x8xf32> to vector<8xf32>
    %50 = vector.shape_cast %49 : vector<8xf32> to vector<8x1xf32>
    %51 = tpu.reciprocal %50 {approx = true} : vector<8x1xf32> -> vector<8x1xf32>
    %52 = vector.broadcast %51 : vector<8x1xf32> to vector<8x8xf32>
    %53 = arith.mulf %48, %52 : vector<8x8xf32>
    %54 = arith.truncf %53 : vector<8x8xf32> to vector<8x8xbf16>
    %cst_17 = arith.constant dense<0.000000e+00> : vector<8x32xf32>
    %55 = tpu.matmul %54, %41, %cst_17 {dimension_numbers = #tpu.dot_dimension_numbers<[1], [0], [0], [1], [0, 0, 1, 1], [], []>} : vector<8x8xbf16>, vector<8x32xbf16>, vector<8x32xf32> -> vector<8x32xf32>
    %56 = vector.extract_strided_slice %6 {offsets = [0, 64], sizes = [8, 32], strides = [1, 1]} : vector<8x384xf32> to vector<8x32xf32>
    %57 = arith.truncf %56 : vector<8x32xf32> to vector<8x32xbf16>
    %58 = vector.extract_strided_slice %6 {offsets = [0, 192], sizes = [8, 32], strides = [1, 1]} : vector<8x384xf32> to vector<8x32xf32>
    %59 = arith.truncf %58 : vector<8x32xf32> to vector<8x32xbf16>
    %60 = vector.extract_strided_slice %6 {offsets = [0, 320], sizes = [8, 32], strides = [1, 1]} : vector<8x384xf32> to vector<8x32xf32>
    %61 = arith.truncf %60 : vector<8x32xf32> to vector<8x32xbf16>
    %cst_18 = arith.constant dense<0.000000e+00> : vector<8x8xf32>
    %62 = tpu.matmul %57, %59, %cst_18 {dimension_numbers = #tpu.dot_dimension_numbers<[1], [1], [0], [0], [0, 0, 1, 0], [], []>} : vector<8x32xbf16>, vector<8x32xbf16>, vector<8x8xf32> -> vector<8x8xf32>
    %63 = arith.addf %62, %15 : vector<8x8xf32>
    %cst_19 = arith.constant dense<0xFF800000> : vector<8xf32>
    %64 = vector.multi_reduction <maximumf>, %63, %cst_19 [1] : vector<8x8xf32> to vector<8xf32>
    %65 = vector.shape_cast %64 : vector<8xf32> to vector<8x1xf32>
    %66 = vector.broadcast %65 : vector<8x1xf32> to vector<8x8xf32>
    %67 = arith.subf %63, %66 : vector<8x8xf32>
    %68 = math.exp %67 : vector<8x8xf32>
    %cst_20 = arith.constant dense<0.000000e+00> : vector<8xf32>
    %69 = vector.multi_reduction <add>, %68, %cst_20 [1] : vector<8x8xf32> to vector<8xf32>
    %70 = vector.shape_cast %69 : vector<8xf32> to vector<8x1xf32>
    %71 = tpu.reciprocal %70 {approx = true} : vector<8x1xf32> -> vector<8x1xf32>
    %72 = vector.broadcast %71 : vector<8x1xf32> to vector<8x8xf32>
    %73 = arith.mulf %68, %72 : vector<8x8xf32>
    %74 = arith.truncf %73 : vector<8x8xf32> to vector<8x8xbf16>
    %cst_21 = arith.constant dense<0.000000e+00> : vector<8x32xf32>
    %75 = tpu.matmul %74, %61, %cst_21 {dimension_numbers = #tpu.dot_dimension_numbers<[1], [0], [0], [1], [0, 0, 1, 1], [], []>} : vector<8x8xbf16>, vector<8x32xbf16>, vector<8x32xf32> -> vector<8x32xf32>
    %76 = vector.extract_strided_slice %6 {offsets = [0, 96], sizes = [8, 32], strides = [1, 1]} : vector<8x384xf32> to vector<8x32xf32>
    %77 = arith.truncf %76 : vector<8x32xf32> to vector<8x32xbf16>
    %78 = vector.extract_strided_slice %6 {offsets = [0, 224], sizes = [8, 32], strides = [1, 1]} : vector<8x384xf32> to vector<8x32xf32>
    %79 = arith.truncf %78 : vector<8x32xf32> to vector<8x32xbf16>
    %80 = vector.extract_strided_slice %6 {offsets = [0, 352], sizes = [8, 32], strides = [1, 1]} : vector<8x384xf32> to vector<8x32xf32>
    %81 = arith.truncf %80 : vector<8x32xf32> to vector<8x32xbf16>
    %cst_22 = arith.constant dense<0.000000e+00> : vector<8x8xf32>
    %82 = tpu.matmul %77, %79, %cst_22 {dimension_numbers = #tpu.dot_dimension_numbers<[1], [1], [0], [0], [0, 0, 1, 0], [], []>} : vector<8x32xbf16>, vector<8x32xbf16>, vector<8x8xf32> -> vector<8x8xf32>
    %83 = arith.addf %82, %15 : vector<8x8xf32>
    %cst_23 = arith.constant dense<0xFF800000> : vector<8xf32>
    %84 = vector.multi_reduction <maximumf>, %83, %cst_23 [1] : vector<8x8xf32> to vector<8xf32>
    %85 = vector.shape_cast %84 : vector<8xf32> to vector<8x1xf32>
    %86 = vector.broadcast %85 : vector<8x1xf32> to vector<8x8xf32>
    %87 = arith.subf %83, %86 : vector<8x8xf32>
    %88 = math.exp %87 : vector<8x8xf32>
    %cst_24 = arith.constant dense<0.000000e+00> : vector<8xf32>
    %89 = vector.multi_reduction <add>, %88, %cst_24 [1] : vector<8x8xf32> to vector<8xf32>
    %90 = vector.shape_cast %89 : vector<8xf32> to vector<8x1xf32>
    %91 = tpu.reciprocal %90 {approx = true} : vector<8x1xf32> -> vector<8x1xf32>
    %92 = vector.broadcast %91 : vector<8x1xf32> to vector<8x8xf32>
    %93 = arith.mulf %88, %92 : vector<8x8xf32>
    %94 = arith.truncf %93 : vector<8x8xf32> to vector<8x8xbf16>
    %cst_25 = arith.constant dense<0.000000e+00> : vector<8x32xf32>
    %95 = tpu.matmul %94, %81, %cst_25 {dimension_numbers = #tpu.dot_dimension_numbers<[1], [0], [0], [1], [0, 0, 1, 1], [], []>} : vector<8x8xbf16>, vector<8x32xbf16>, vector<8x32xf32> -> vector<8x32xf32>
    %96 = tpu.concatenate %35, %55, %75, %95 in 1 : vector<8x32xf32>, vector<8x32xf32>, vector<8x32xf32>, vector<8x32xf32> -> vector<8x128xf32>
    %97 = arith.truncf %96 : vector<8x128xf32> to vector<8x128xbf16>
    %c0_26 = arith.constant 0 : index
    %c0_27 = arith.constant 0 : index
    %98 = vector.load %arg5[%c0_26, %c0_27] : memref<128x128xbf16, #tpu.memory_space<vmem>>, vector<128x128xbf16>
    %cst_28 = arith.constant dense<0.000000e+00> : vector<8x128xf32>
    %99 = tpu.matmul %97, %98, %cst_28 {dimension_numbers = #tpu.dot_dimension_numbers<[1], [0], [0], [1], [0, 0, 1, 1], [], []>} : vector<8x128xbf16>, vector<128x128xbf16>, vector<8x128xf32> -> vector<8x128xf32>
    %c0_29 = arith.constant 0 : index
    %c0_30 = arith.constant 0 : index
    %100 = vector.load %arg6[%c0_29, %c0_30] : memref<1x128xf32, #tpu.memory_space<vmem>>, vector<1x128xf32>
    %101 = vector.broadcast %100 : vector<1x128xf32> to vector<8x128xf32>
    %102 = arith.addf %99, %101 : vector<8x128xf32>
    %103 = arith.extf %1 : vector<8x128xbf16> to vector<8x128xf32>
    %104 = arith.addf %103, %102 : vector<8x128xf32>
    %cst_31 = arith.constant dense<0.000000e+00> : vector<8xf32>
    %105 = vector.multi_reduction <add>, %104, %cst_31 [1] : vector<8x128xf32> to vector<8xf32>
    %106 = vector.shape_cast %105 : vector<8xf32> to vector<8x1xf32>
    %cst_32 = arith.constant 1.280000e+02 : f32
    %107 = vector.broadcast %cst_32 : f32 to vector<8x1xf32>
    %108 = arith.divf %106, %107 : vector<8x1xf32>
    %109 = vector.broadcast %108 : vector<8x1xf32> to vector<8x128xf32>
    %110 = arith.subf %104, %109 : vector<8x128xf32>
    %111 = arith.mulf %110, %110 : vector<8x128xf32>
    %cst_33 = arith.constant dense<0.000000e+00> : vector<8xf32>
    %112 = vector.multi_reduction <add>, %111, %cst_33 [1] : vector<8x128xf32> to vector<8xf32>
    %113 = vector.shape_cast %112 : vector<8xf32> to vector<8x1xf32>
    %cst_34 = arith.constant 1.280000e+02 : f32
    %114 = vector.broadcast %cst_34 : f32 to vector<8x1xf32>
    %115 = arith.divf %113, %114 : vector<8x1xf32>
    %116 = vector.broadcast %108 : vector<8x1xf32> to vector<8x128xf32>
    %117 = arith.subf %104, %116 : vector<8x128xf32>
    %cst_35 = arith.constant 9.99999974E-6 : f32
    %118 = vector.broadcast %cst_35 : f32 to vector<8x1xf32>
    %119 = arith.addf %115, %118 : vector<8x1xf32>
    %120 = math.rsqrt %119 : vector<8x1xf32>
    %121 = vector.broadcast %120 : vector<8x1xf32> to vector<8x128xf32>
    %122 = arith.mulf %117, %121 : vector<8x128xf32>
    %c0_36 = arith.constant 0 : index
    %c0_37 = arith.constant 0 : index
    %123 = vector.load %arg7[%c0_36, %c0_37] : memref<1x128xf32, #tpu.memory_space<vmem>>, vector<1x128xf32>
    %124 = vector.broadcast %123 : vector<1x128xf32> to vector<8x128xf32>
    %125 = arith.mulf %122, %124 : vector<8x128xf32>
    %c0_38 = arith.constant 0 : index
    %c0_39 = arith.constant 0 : index
    %126 = vector.load %arg8[%c0_38, %c0_39] : memref<1x128xf32, #tpu.memory_space<vmem>>, vector<1x128xf32>
    %127 = vector.broadcast %126 : vector<1x128xf32> to vector<8x128xf32>
    %128 = arith.addf %125, %127 : vector<8x128xf32>
    %129 = arith.truncf %128 : vector<8x128xf32> to vector<8x128xbf16>
    %c0_40 = arith.constant 0 : index
    %c0_41 = arith.constant 0 : index
    %c0_42 = arith.constant 0 : index
    %130 = vector.load %arg9[%c0_40, %c0_41, %c0_42] : memref<1x8x128xbf16, #tpu.memory_space<vmem>>, vector<1x8x128xbf16>
    %131 = vector.shape_cast %130 : vector<1x8x128xbf16> to vector<8x128xbf16>
    %132 = vector.shape_cast %129 : vector<8x128xbf16> to vector<1x8x128xbf16>
    tpu.vector_store %arg9[%c0_40, %c0_41, %c0_42], %132 {strides = array<i32>} : memref<1x8x128xbf16, #tpu.memory_space<vmem>>, vector<1x8x128xbf16>,
    return
  }
  func.func @transform_0(%arg0: i32) -> (i32, i32, i32) {
    %c0_i32 = arith.constant 0 : i32
    %c0_i32_0 = arith.constant 0 : i32
    %c0_i32_1 = arith.constant 0 : i32
    return %arg0, %c0_i32, %c0_i32_0 : i32, i32, i32
  }
  func.func @transform_1(%arg0: i32) -> (i32, i32, i32) {
    %c0_i32 = arith.constant 0 : i32
    %c0_i32_0 = arith.constant 0 : i32
    %c0_i32_1 = arith.constant 0 : i32
    return %arg0, %c0_i32, %c0_i32_0 : i32, i32, i32
  }
  func.func @transform_2(%arg0: i32) -> (i32, i32) {
    %c0_i32 = arith.constant 0 : i32
    %c0_i32_0 = arith.constant 0 : i32
    %c0_i32_1 = arith.constant 0 : i32
    return %c0_i32, %c0_i32_0 : i32, i32
  }
  func.func @transform_3(%arg0: i32) -> (i32, i32) {
    %c0_i32 = arith.constant 0 : i32
    %c0_i32_0 = arith.constant 0 : i32
    %c0_i32_1 = arith.constant 0 : i32
    return %c0_i32, %c0_i32_0 : i32, i32
  }
  func.func @transform_4(%arg0: i32) -> (i32, i32) {
    %c0_i32 = arith.constant 0 : i32
    %c0_i32_0 = arith.constant 0 : i32
    %c0_i32_1 = arith.constant 0 : i32
    return %c0_i32, %c0_i32_0 : i32, i32
  }
  func.func @transform_5(%arg0: i32) -> (i32, i32) {
    %c0_i32 = arith.constant 0 : i32
    %c0_i32_0 = arith.constant 0 : i32
    %c0_i32_1 = arith.constant 0 : i32
    return %c0_i32, %c0_i32_0 : i32, i32
  }
  func.func @transform_6(%arg0: i32) -> (i32, i32) {
    %c0_i32 = arith.constant 0 : i32
    %c0_i32_0 = arith.constant 0 : i32
    %c0_i32_1 = arith.constant 0 : i32
    return %c0_i32, %c0_i32_0 : i32, i32
  }
  func.func @transform_7(%arg0: i32) -> (i32, i32) {
    %c0_i32 = arith.constant 0 : i32
    %c0_i32_0 = arith.constant 0 : i32
    %c0_i32_1 = arith.constant 0 : i32
    return %c0_i32, %c0_i32_0 : i32, i32
  }
  func.func @transform_8(%arg0: i32) -> (i32, i32, i32) {
    %c0_i32 = arith.constant 0 : i32
    %c0_i32_0 = arith.constant 0 : i32
    %c0_i32_1 = arith.constant 0 : i32
    return %arg0, %c0_i32, %c0_i32_0 : i32, i32, i32
  }
}

module attributes {stable_mosaic.version = 11 : i64} {
  func.func @_head_rethink_fc_kernel(%arg0: i32, %arg1: memref<1x8x128xbf16, #tpu.memory_space<vmem>>, %arg2: memref<128x128xbf16, #tpu.memory_space<vmem>>, %arg3: memref<1x128xf32, #tpu.memory_space<vmem>>, %arg4: memref<128x128xbf16, #tpu.memory_space<vmem>>, %arg5: memref<1x128xf32, #tpu.memory_space<vmem>>, %arg6: memref<128x128xbf16, #tpu.memory_space<vmem>>, %arg7: memref<1x128xf32, #tpu.memory_space<vmem>>, %arg8: memref<128x128xbf16, #tpu.memory_space<vmem>>, %arg9: memref<1x128xf32, #tpu.memory_space<vmem>>, %arg10: memref<1x8x128xf32, #tpu.memory_space<vmem>>) attributes {dimension_semantics = [#tpu.dimension_semantics<parallel>], iteration_bounds = array<i64: 2>, scalar_prefetch = 0 : i64, scratch_operands = 0 : i64, tpu.core_type = #tpu.core_type<tc>, window_params = [{transform_indices = @transform_0, window_bounds = array<i64: 1, 8, 128>}, {pipeline_mode = #tpu.pipeline_mode<synchronous>, transform_indices = @transform_1, window_bounds = array<i64: 128, 128>}, {pipeline_mode = #tpu.pipeline_mode<synchronous>, transform_indices = @transform_2, window_bounds = array<i64: 1, 128>}, {pipeline_mode = #tpu.pipeline_mode<synchronous>, transform_indices = @transform_3, window_bounds = array<i64: 128, 128>}, {pipeline_mode = #tpu.pipeline_mode<synchronous>, transform_indices = @transform_4, window_bounds = array<i64: 1, 128>}, {pipeline_mode = #tpu.pipeline_mode<synchronous>, transform_indices = @transform_5, window_bounds = array<i64: 128, 128>}, {pipeline_mode = #tpu.pipeline_mode<synchronous>, transform_indices = @transform_6, window_bounds = array<i64: 1, 128>}, {pipeline_mode = #tpu.pipeline_mode<synchronous>, transform_indices = @transform_7, window_bounds = array<i64: 128, 128>}, {pipeline_mode = #tpu.pipeline_mode<synchronous>, transform_indices = @transform_8, window_bounds = array<i64: 1, 128>}, {transform_indices = @transform_9, window_bounds = array<i64: 1, 8, 128>}]} {
    %c0 = arith.constant 0 : index
    %c0_0 = arith.constant 0 : index
    %c0_1 = arith.constant 0 : index
    %0 = vector.load %arg1[%c0, %c0_0, %c0_1] : memref<1x8x128xbf16, #tpu.memory_space<vmem>>, vector<1x8x128xbf16>
    %1 = vector.shape_cast %0 : vector<1x8x128xbf16> to vector<8x128xbf16>
    %c0_2 = arith.constant 0 : index
    %c0_3 = arith.constant 0 : index
    %2 = vector.load %arg2[%c0_2, %c0_3] : memref<128x128xbf16, #tpu.memory_space<vmem>>, vector<128x128xbf16>
    %cst = arith.constant dense<0.000000e+00> : vector<8x128xf32>
    %3 = tpu.matmul %1, %2, %cst {dimension_numbers = #tpu.dot_dimension_numbers<[1], [0], [0], [1], [0, 0, 1, 1], [], []>} : vector<8x128xbf16>, vector<128x128xbf16>, vector<8x128xf32> -> vector<8x128xf32>
    %c0_4 = arith.constant 0 : index
    %c0_5 = arith.constant 0 : index
    %4 = vector.load %arg3[%c0_4, %c0_5] : memref<1x128xf32, #tpu.memory_space<vmem>>, vector<1x128xf32>
    %5 = vector.broadcast %4 : vector<1x128xf32> to vector<8x128xf32>
    %6 = arith.addf %3, %5 : vector<8x128xf32>
    %7 = arith.truncf %6 : vector<8x128xf32> to vector<8x128xbf16>
    %c0_6 = arith.constant 0 : index
    %c0_7 = arith.constant 0 : index
    %8 = vector.load %arg4[%c0_6, %c0_7] : memref<128x128xbf16, #tpu.memory_space<vmem>>, vector<128x128xbf16>
    %cst_8 = arith.constant dense<0.000000e+00> : vector<8x128xf32>
    %9 = tpu.matmul %7, %8, %cst_8 {dimension_numbers = #tpu.dot_dimension_numbers<[1], [0], [0], [1], [0, 0, 1, 1], [], []>} : vector<8x128xbf16>, vector<128x128xbf16>, vector<8x128xf32> -> vector<8x128xf32>
    %c0_9 = arith.constant 0 : index
    %c0_10 = arith.constant 0 : index
    %10 = vector.load %arg5[%c0_9, %c0_10] : memref<1x128xf32, #tpu.memory_space<vmem>>, vector<1x128xf32>
    %11 = vector.broadcast %10 : vector<1x128xf32> to vector<8x128xf32>
    %12 = arith.addf %9, %11 : vector<8x128xf32>
    %cst_11 = arith.constant 0.000000e+00 : f32
    %13 = vector.broadcast %cst_11 : f32 to vector<8x128xf32>
    %14 = arith.maximumf %12, %13 : vector<8x128xf32>
    %15 = arith.truncf %14 : vector<8x128xf32> to vector<8x128xbf16>
    %c0_12 = arith.constant 0 : index
    %c0_13 = arith.constant 0 : index
    %16 = vector.load %arg6[%c0_12, %c0_13] : memref<128x128xbf16, #tpu.memory_space<vmem>>, vector<128x128xbf16>
    %cst_14 = arith.constant dense<0.000000e+00> : vector<8x128xf32>
    %17 = tpu.matmul %15, %16, %cst_14 {dimension_numbers = #tpu.dot_dimension_numbers<[1], [0], [0], [1], [0, 0, 1, 1], [], []>} : vector<8x128xbf16>, vector<128x128xbf16>, vector<8x128xf32> -> vector<8x128xf32>
    %c0_15 = arith.constant 0 : index
    %c0_16 = arith.constant 0 : index
    %18 = vector.load %arg7[%c0_15, %c0_16] : memref<1x128xf32, #tpu.memory_space<vmem>>, vector<1x128xf32>
    %19 = vector.broadcast %18 : vector<1x128xf32> to vector<8x128xf32>
    %20 = arith.addf %17, %19 : vector<8x128xf32>
    %21 = arith.addf %6, %20 : vector<8x128xf32>
    %22 = arith.truncf %21 : vector<8x128xf32> to vector<8x128xbf16>
    %c0_17 = arith.constant 0 : index
    %c0_18 = arith.constant 0 : index
    %23 = vector.load %arg8[%c0_17, %c0_18] : memref<128x128xbf16, #tpu.memory_space<vmem>>, vector<128x128xbf16>
    %cst_19 = arith.constant dense<0.000000e+00> : vector<8x128xf32>
    %24 = tpu.matmul %22, %23, %cst_19 {dimension_numbers = #tpu.dot_dimension_numbers<[1], [0], [0], [1], [0, 0, 1, 1], [], []>} : vector<8x128xbf16>, vector<128x128xbf16>, vector<8x128xf32> -> vector<8x128xf32>
    %c0_20 = arith.constant 0 : index
    %c0_21 = arith.constant 0 : index
    %25 = vector.load %arg9[%c0_20, %c0_21] : memref<1x128xf32, #tpu.memory_space<vmem>>, vector<1x128xf32>
    %26 = vector.broadcast %25 : vector<1x128xf32> to vector<8x128xf32>
    %27 = arith.addf %24, %26 : vector<8x128xf32>
    %c0_22 = arith.constant 0 : index
    %c0_23 = arith.constant 0 : index
    %c0_24 = arith.constant 0 : index
    %28 = vector.load %arg10[%c0_22, %c0_23, %c0_24] : memref<1x8x128xf32, #tpu.memory_space<vmem>>, vector<1x8x128xf32>
    %29 = vector.shape_cast %28 : vector<1x8x128xf32> to vector<8x128xf32>
    %30 = vector.shape_cast %27 : vector<8x128xf32> to vector<1x8x128xf32>
    tpu.vector_store %arg10[%c0_22, %c0_23, %c0_24], %30 {strides = array<i32>} : memref<1x8x128xf32, #tpu.memory_space<vmem>>, vector<1x8x128xf32>,
    return
  }
  func.func @transform_0(%arg0: i32) -> (i32, i32, i32) {
    %c0_i32 = arith.constant 0 : i32
    %c0_i32_0 = arith.constant 0 : i32
    %c0_i32_1 = arith.constant 0 : i32
    return %arg0, %c0_i32, %c0_i32_0 : i32, i32, i32
  }
  func.func @transform_1(%arg0: i32) -> (i32, i32) {
    %c0_i32 = arith.constant 0 : i32
    %c0_i32_0 = arith.constant 0 : i32
    %c0_i32_1 = arith.constant 0 : i32
    return %c0_i32, %c0_i32_0 : i32, i32
  }
  func.func @transform_2(%arg0: i32) -> (i32, i32) {
    %c0_i32 = arith.constant 0 : i32
    %c0_i32_0 = arith.constant 0 : i32
    %c0_i32_1 = arith.constant 0 : i32
    return %c0_i32, %c0_i32_0 : i32, i32
  }
  func.func @transform_3(%arg0: i32) -> (i32, i32) {
    %c0_i32 = arith.constant 0 : i32
    %c0_i32_0 = arith.constant 0 : i32
    %c0_i32_1 = arith.constant 0 : i32
    return %c0_i32, %c0_i32_0 : i32, i32
  }
  func.func @transform_4(%arg0: i32) -> (i32, i32) {
    %c0_i32 = arith.constant 0 : i32
    %c0_i32_0 = arith.constant 0 : i32
    %c0_i32_1 = arith.constant 0 : i32
    return %c0_i32, %c0_i32_0 : i32, i32
  }
  func.func @transform_5(%arg0: i32) -> (i32, i32) {
    %c0_i32 = arith.constant 0 : i32
    %c0_i32_0 = arith.constant 0 : i32
    %c0_i32_1 = arith.constant 0 : i32
    return %c0_i32, %c0_i32_0 : i32, i32
  }
  func.func @transform_6(%arg0: i32) -> (i32, i32) {
    %c0_i32 = arith.constant 0 : i32
    %c0_i32_0 = arith.constant 0 : i32
    %c0_i32_1 = arith.constant 0 : i32
    return %c0_i32, %c0_i32_0 : i32, i32
  }
  func.func @transform_7(%arg0: i32) -> (i32, i32) {
    %c0_i32 = arith.constant 0 : i32
    %c0_i32_0 = arith.constant 0 : i32
    %c0_i32_1 = arith.constant 0 : i32
    return %c0_i32, %c0_i32_0 : i32, i32
  }
  func.func @transform_8(%arg0: i32) -> (i32, i32) {
    %c0_i32 = arith.constant 0 : i32
    %c0_i32_0 = arith.constant 0 : i32
    %c0_i32_1 = arith.constant 0 : i32
    return %c0_i32, %c0_i32_0 : i32, i32
  }
  func.func @transform_9(%arg0: i32) -> (i32, i32, i32) {
    %c0_i32 = arith.constant 0 : i32
    %c0_i32_0 = arith.constant 0 : i32
    %c0_i32_1 = arith.constant 0 : i32
    return %arg0, %c0_i32, %c0_i32_0 : i32, i32, i32
  }
}

module attributes {stable_mosaic.version = 11 : i64} {
  func.func @_ffn_ln_kernel(%arg0: i32, %arg1: memref<1x8x128xbf16, #tpu.memory_space<vmem>>, %arg2: memref<128x256xbf16, #tpu.memory_space<vmem>>, %arg3: memref<1x256xf32, #tpu.memory_space<vmem>>, %arg4: memref<256x128xbf16, #tpu.memory_space<vmem>>, %arg5: memref<1x128xf32, #tpu.memory_space<vmem>>, %arg6: memref<1x128xf32, #tpu.memory_space<vmem>>, %arg7: memref<1x128xf32, #tpu.memory_space<vmem>>, %arg8: memref<1x8x128xbf16, #tpu.memory_space<vmem>>) attributes {dimension_semantics = [#tpu.dimension_semantics<parallel>], iteration_bounds = array<i64: 2>, scalar_prefetch = 0 : i64, scratch_operands = 0 : i64, tpu.core_type = #tpu.core_type<tc>, window_params = [{transform_indices = @transform_0, window_bounds = array<i64: 1, 8, 128>}, {pipeline_mode = #tpu.pipeline_mode<synchronous>, transform_indices = @transform_1, window_bounds = array<i64: 128, 256>}, {pipeline_mode = #tpu.pipeline_mode<synchronous>, transform_indices = @transform_2, window_bounds = array<i64: 1, 256>}, {pipeline_mode = #tpu.pipeline_mode<synchronous>, transform_indices = @transform_3, window_bounds = array<i64: 256, 128>}, {pipeline_mode = #tpu.pipeline_mode<synchronous>, transform_indices = @transform_4, window_bounds = array<i64: 1, 128>}, {pipeline_mode = #tpu.pipeline_mode<synchronous>, transform_indices = @transform_5, window_bounds = array<i64: 1, 128>}, {pipeline_mode = #tpu.pipeline_mode<synchronous>, transform_indices = @transform_6, window_bounds = array<i64: 1, 128>}, {transform_indices = @transform_7, window_bounds = array<i64: 1, 8, 128>}]} {
    %c0 = arith.constant 0 : index
    %c0_0 = arith.constant 0 : index
    %c0_1 = arith.constant 0 : index
    %0 = vector.load %arg1[%c0, %c0_0, %c0_1] : memref<1x8x128xbf16, #tpu.memory_space<vmem>>, vector<1x8x128xbf16>
    %1 = vector.shape_cast %0 : vector<1x8x128xbf16> to vector<8x128xbf16>
    %c0_2 = arith.constant 0 : index
    %c0_3 = arith.constant 0 : index
    %2 = vector.load %arg2[%c0_2, %c0_3] : memref<128x256xbf16, #tpu.memory_space<vmem>>, vector<128x256xbf16>
    %cst = arith.constant dense<0.000000e+00> : vector<8x256xf32>
    %3 = tpu.matmul %1, %2, %cst {dimension_numbers = #tpu.dot_dimension_numbers<[1], [0], [0], [1], [0, 0, 1, 1], [], []>} : vector<8x128xbf16>, vector<128x256xbf16>, vector<8x256xf32> -> vector<8x256xf32>
    %c0_4 = arith.constant 0 : index
    %c0_5 = arith.constant 0 : index
    %4 = vector.load %arg3[%c0_4, %c0_5] : memref<1x256xf32, #tpu.memory_space<vmem>>, vector<1x256xf32>
    %5 = vector.broadcast %4 : vector<1x256xf32> to vector<8x256xf32>
    %6 = arith.addf %3, %5 : vector<8x256xf32>
    %cst_6 = arith.constant 0.000000e+00 : f32
    %7 = vector.broadcast %cst_6 : f32 to vector<8x256xf32>
    %8 = arith.maximumf %6, %7 : vector<8x256xf32>
    %9 = arith.truncf %8 : vector<8x256xf32> to vector<8x256xbf16>
    %c0_7 = arith.constant 0 : index
    %c0_8 = arith.constant 0 : index
    %10 = vector.load %arg4[%c0_7, %c0_8] : memref<256x128xbf16, #tpu.memory_space<vmem>>, vector<256x128xbf16>
    %cst_9 = arith.constant dense<0.000000e+00> : vector<8x128xf32>
    %11 = tpu.matmul %9, %10, %cst_9 {dimension_numbers = #tpu.dot_dimension_numbers<[1], [0], [0], [1], [0, 0, 1, 1], [], []>} : vector<8x256xbf16>, vector<256x128xbf16>, vector<8x128xf32> -> vector<8x128xf32>
    %c0_10 = arith.constant 0 : index
    %c0_11 = arith.constant 0 : index
    %12 = vector.load %arg5[%c0_10, %c0_11] : memref<1x128xf32, #tpu.memory_space<vmem>>, vector<1x128xf32>
    %13 = vector.broadcast %12 : vector<1x128xf32> to vector<8x128xf32>
    %14 = arith.addf %11, %13 : vector<8x128xf32>
    %15 = arith.extf %1 : vector<8x128xbf16> to vector<8x128xf32>
    %16 = arith.addf %15, %14 : vector<8x128xf32>
    %cst_12 = arith.constant dense<0.000000e+00> : vector<8xf32>
    %17 = vector.multi_reduction <add>, %16, %cst_12 [1] : vector<8x128xf32> to vector<8xf32>
    %18 = vector.shape_cast %17 : vector<8xf32> to vector<8x1xf32>
    %cst_13 = arith.constant 1.280000e+02 : f32
    %19 = vector.broadcast %cst_13 : f32 to vector<8x1xf32>
    %20 = arith.divf %18, %19 : vector<8x1xf32>
    %21 = vector.broadcast %20 : vector<8x1xf32> to vector<8x128xf32>
    %22 = arith.subf %16, %21 : vector<8x128xf32>
    %23 = arith.mulf %22, %22 : vector<8x128xf32>
    %cst_14 = arith.constant dense<0.000000e+00> : vector<8xf32>
    %24 = vector.multi_reduction <add>, %23, %cst_14 [1] : vector<8x128xf32> to vector<8xf32>
    %25 = vector.shape_cast %24 : vector<8xf32> to vector<8x1xf32>
    %cst_15 = arith.constant 1.280000e+02 : f32
    %26 = vector.broadcast %cst_15 : f32 to vector<8x1xf32>
    %27 = arith.divf %25, %26 : vector<8x1xf32>
    %28 = vector.broadcast %20 : vector<8x1xf32> to vector<8x128xf32>
    %29 = arith.subf %16, %28 : vector<8x128xf32>
    %cst_16 = arith.constant 9.99999974E-6 : f32
    %30 = vector.broadcast %cst_16 : f32 to vector<8x1xf32>
    %31 = arith.addf %27, %30 : vector<8x1xf32>
    %32 = math.rsqrt %31 : vector<8x1xf32>
    %33 = vector.broadcast %32 : vector<8x1xf32> to vector<8x128xf32>
    %34 = arith.mulf %29, %33 : vector<8x128xf32>
    %c0_17 = arith.constant 0 : index
    %c0_18 = arith.constant 0 : index
    %35 = vector.load %arg6[%c0_17, %c0_18] : memref<1x128xf32, #tpu.memory_space<vmem>>, vector<1x128xf32>
    %36 = vector.broadcast %35 : vector<1x128xf32> to vector<8x128xf32>
    %37 = arith.mulf %34, %36 : vector<8x128xf32>
    %c0_19 = arith.constant 0 : index
    %c0_20 = arith.constant 0 : index
    %38 = vector.load %arg7[%c0_19, %c0_20] : memref<1x128xf32, #tpu.memory_space<vmem>>, vector<1x128xf32>
    %39 = vector.broadcast %38 : vector<1x128xf32> to vector<8x128xf32>
    %40 = arith.addf %37, %39 : vector<8x128xf32>
    %41 = arith.truncf %40 : vector<8x128xf32> to vector<8x128xbf16>
    %c0_21 = arith.constant 0 : index
    %c0_22 = arith.constant 0 : index
    %c0_23 = arith.constant 0 : index
    %42 = vector.load %arg8[%c0_21, %c0_22, %c0_23] : memref<1x8x128xbf16, #tpu.memory_space<vmem>>, vector<1x8x128xbf16>
    %43 = vector.shape_cast %42 : vector<1x8x128xbf16> to vector<8x128xbf16>
    %44 = vector.shape_cast %41 : vector<8x128xbf16> to vector<1x8x128xbf16>
    tpu.vector_store %arg8[%c0_21, %c0_22, %c0_23], %44 {strides = array<i32>} : memref<1x8x128xbf16, #tpu.memory_space<vmem>>, vector<1x8x128xbf16>,
    return
  }
  func.func @transform_0(%arg0: i32) -> (i32, i32, i32) {
    %c0_i32 = arith.constant 0 : i32
    %c0_i32_0 = arith.constant 0 : i32
    %c0_i32_1 = arith.constant 0 : i32
    return %arg0, %c0_i32, %c0_i32_0 : i32, i32, i32
  }
  func.func @transform_1(%arg0: i32) -> (i32, i32) {
    %c0_i32 = arith.constant 0 : i32
    %c0_i32_0 = arith.constant 0 : i32
    %c0_i32_1 = arith.constant 0 : i32
    return %c0_i32, %c0_i32_0 : i32, i32
  }
  func.func @transform_2(%arg0: i32) -> (i32, i32) {
    %c0_i32 = arith.constant 0 : i32
    %c0_i32_0 = arith.constant 0 : i32
    %c0_i32_1 = arith.constant 0 : i32
    return %c0_i32, %c0_i32_0 : i32, i32
  }
  func.func @transform_3(%arg0: i32) -> (i32, i32) {
    %c0_i32 = arith.constant 0 : i32
    %c0_i32_0 = arith.constant 0 : i32
    %c0_i32_1 = arith.constant 0 : i32
    return %c0_i32, %c0_i32_0 : i32, i32
  }
  func.func @transform_4(%arg0: i32) -> (i32, i32) {
    %c0_i32 = arith.constant 0 : i32
    %c0_i32_0 = arith.constant 0 : i32
    %c0_i32_1 = arith.constant 0 : i32
    return %c0_i32, %c0_i32_0 : i32, i32
  }
  func.func @transform_5(%arg0: i32) -> (i32, i32) {
    %c0_i32 = arith.constant 0 : i32
    %c0_i32_0 = arith.constant 0 : i32
    %c0_i32_1 = arith.constant 0 : i32
    return %c0_i32, %c0_i32_0 : i32, i32
  }
  func.func @transform_6(%arg0: i32) -> (i32, i32) {
    %c0_i32 = arith.constant 0 : i32
    %c0_i32_0 = arith.constant 0 : i32
    %c0_i32_1 = arith.constant 0 : i32
    return %c0_i32, %c0_i32_0 : i32, i32
  }
  func.func @transform_7(%arg0: i32) -> (i32, i32, i32) {
    %c0_i32 = arith.constant 0 : i32
    %c0_i32_0 = arith.constant 0 : i32
    %c0_i32_1 = arith.constant 0 : i32
    return %arg0, %c0_i32, %c0_i32_0 : i32, i32, i32
  }
}

module attributes {stable_mosaic.version = 11 : i64} {
  func.func @_cross_attn_block_kernel(%arg0: i32, %arg1: memref<1x8x128xbf16, #tpu.memory_space<vmem>>, %arg2: memref<1x16x128xbf16, #tpu.memory_space<vmem>>, %arg3: memref<128x128xbf16, #tpu.memory_space<vmem>>, %arg4: memref<1x128xf32, #tpu.memory_space<vmem>>, %arg5: memref<128x256xbf16, #tpu.memory_space<vmem>>, %arg6: memref<1x256xf32, #tpu.memory_space<vmem>>, %arg7: memref<128x128xbf16, #tpu.memory_space<vmem>>, %arg8: memref<1x128xf32, #tpu.memory_space<vmem>>, %arg9: memref<1x128xf32, #tpu.memory_space<vmem>>, %arg10: memref<1x128xf32, #tpu.memory_space<vmem>>, %arg11: memref<1x8x128xbf16, #tpu.memory_space<vmem>>) attributes {dimension_semantics = [#tpu.dimension_semantics<parallel>], iteration_bounds = array<i64: 2>, scalar_prefetch = 0 : i64, scratch_operands = 0 : i64, tpu.core_type = #tpu.core_type<tc>, window_params = [{transform_indices = @transform_0, window_bounds = array<i64: 1, 8, 128>}, {transform_indices = @transform_1, window_bounds = array<i64: 1, 16, 128>}, {pipeline_mode = #tpu.pipeline_mode<synchronous>, transform_indices = @transform_2, window_bounds = array<i64: 128, 128>}, {pipeline_mode = #tpu.pipeline_mode<synchronous>, transform_indices = @transform_3, window_bounds = array<i64: 1, 128>}, {pipeline_mode = #tpu.pipeline_mode<synchronous>, transform_indices = @transform_4, window_bounds = array<i64: 128, 256>}, {pipeline_mode = #tpu.pipeline_mode<synchronous>, transform_indices = @transform_5, window_bounds = array<i64: 1, 256>}, {pipeline_mode = #tpu.pipeline_mode<synchronous>, transform_indices = @transform_6, window_bounds = array<i64: 128, 128>}, {pipeline_mode = #tpu.pipeline_mode<synchronous>, transform_indices = @transform_7, window_bounds = array<i64: 1, 128>}, {pipeline_mode = #tpu.pipeline_mode<synchronous>, transform_indices = @transform_8, window_bounds = array<i64: 1, 128>}, {pipeline_mode = #tpu.pipeline_mode<synchronous>, transform_indices = @transform_9, window_bounds = array<i64: 1, 128>}, {transform_indices = @transform_10, window_bounds = array<i64: 1, 8, 128>}]} {
    %c0 = arith.constant 0 : index
    %c0_0 = arith.constant 0 : index
    %c0_1 = arith.constant 0 : index
    %0 = vector.load %arg1[%c0, %c0_0, %c0_1] : memref<1x8x128xbf16, #tpu.memory_space<vmem>>, vector<1x8x128xbf16>
    %1 = vector.shape_cast %0 : vector<1x8x128xbf16> to vector<8x128xbf16>
    %c0_2 = arith.constant 0 : index
    %c0_3 = arith.constant 0 : index
    %c0_4 = arith.constant 0 : index
    %2 = vector.load %arg2[%c0_2, %c0_3, %c0_4] : memref<1x16x128xbf16, #tpu.memory_space<vmem>>, vector<1x16x128xbf16>
    %3 = vector.shape_cast %2 : vector<1x16x128xbf16> to vector<16x128xbf16>
    %c0_5 = arith.constant 0 : index
    %c0_6 = arith.constant 0 : index
    %4 = vector.load %arg3[%c0_5, %c0_6] : memref<128x128xbf16, #tpu.memory_space<vmem>>, vector<128x128xbf16>
    %cst = arith.constant dense<0.000000e+00> : vector<8x128xf32>
    %5 = tpu.matmul %1, %4, %cst {dimension_numbers = #tpu.dot_dimension_numbers<[1], [0], [0], [1], [0, 0, 1, 1], [], []>} : vector<8x128xbf16>, vector<128x128xbf16>, vector<8x128xf32> -> vector<8x128xf32>
    %c0_7 = arith.constant 0 : index
    %c0_8 = arith.constant 0 : index
    %6 = vector.load %arg4[%c0_7, %c0_8] : memref<1x128xf32, #tpu.memory_space<vmem>>, vector<1x128xf32>
    %7 = vector.broadcast %6 : vector<1x128xf32> to vector<8x128xf32>
    %8 = arith.addf %5, %7 : vector<8x128xf32>
    %c0_9 = arith.constant 0 : index
    %c0_10 = arith.constant 0 : index
    %9 = vector.load %arg5[%c0_9, %c0_10] : memref<128x256xbf16, #tpu.memory_space<vmem>>, vector<128x256xbf16>
    %cst_11 = arith.constant dense<0.000000e+00> : vector<16x256xf32>
    %10 = tpu.matmul %3, %9, %cst_11 {dimension_numbers = #tpu.dot_dimension_numbers<[1], [0], [0], [1], [0, 0, 1, 1], [], []>} : vector<16x128xbf16>, vector<128x256xbf16>, vector<16x256xf32> -> vector<16x256xf32>
    %c0_12 = arith.constant 0 : index
    %c0_13 = arith.constant 0 : index
    %11 = vector.load %arg6[%c0_12, %c0_13] : memref<1x256xf32, #tpu.memory_space<vmem>>, vector<1x256xf32>
    %12 = vector.broadcast %11 : vector<1x256xf32> to vector<16x256xf32>
    %13 = arith.addf %10, %12 : vector<16x256xf32>
    %14 = vector.extract_strided_slice %8 {offsets = [0, 0], sizes = [8, 32], strides = [1, 1]} : vector<8x128xf32> to vector<8x32xf32>
    %15 = arith.truncf %14 : vector<8x32xf32> to vector<8x32xbf16>
    %16 = vector.extract_strided_slice %13 {offsets = [0, 0], sizes = [16, 32], strides = [1, 1]} : vector<16x256xf32> to vector<16x32xf32>
    %17 = arith.truncf %16 : vector<16x32xf32> to vector<16x32xbf16>
    %18 = vector.extract_strided_slice %13 {offsets = [0, 128], sizes = [16, 32], strides = [1, 1]} : vector<16x256xf32> to vector<16x32xf32>
    %19 = arith.truncf %18 : vector<16x32xf32> to vector<16x32xbf16>
    %cst_14 = arith.constant dense<0.000000e+00> : vector<8x16xf32>
    %20 = tpu.matmul %15, %17, %cst_14 {dimension_numbers = #tpu.dot_dimension_numbers<[1], [1], [0], [0], [0, 0, 1, 0], [], []>} : vector<8x32xbf16>, vector<16x32xbf16>, vector<8x16xf32> -> vector<8x16xf32>
    %cst_15 = arith.constant dense<0xFF800000> : vector<8xf32>
    %21 = vector.multi_reduction <maximumf>, %20, %cst_15 [1] : vector<8x16xf32> to vector<8xf32>
    %22 = vector.shape_cast %21 : vector<8xf32> to vector<8x1xf32>
    %23 = vector.broadcast %22 : vector<8x1xf32> to vector<8x16xf32>
    %24 = arith.subf %20, %23 : vector<8x16xf32>
    %25 = math.exp %24 : vector<8x16xf32>
    %cst_16 = arith.constant dense<0.000000e+00> : vector<8xf32>
    %26 = vector.multi_reduction <add>, %25, %cst_16 [1] : vector<8x16xf32> to vector<8xf32>
    %27 = vector.shape_cast %26 : vector<8xf32> to vector<8x1xf32>
    %28 = tpu.reciprocal %27 {approx = true} : vector<8x1xf32> -> vector<8x1xf32>
    %29 = vector.broadcast %28 : vector<8x1xf32> to vector<8x16xf32>
    %30 = arith.mulf %25, %29 : vector<8x16xf32>
    %31 = arith.truncf %30 : vector<8x16xf32> to vector<8x16xbf16>
    %cst_17 = arith.constant dense<0.000000e+00> : vector<8x32xf32>
    %32 = tpu.matmul %31, %19, %cst_17 {dimension_numbers = #tpu.dot_dimension_numbers<[1], [0], [0], [1], [0, 0, 1, 1], [], []>} : vector<8x16xbf16>, vector<16x32xbf16>, vector<8x32xf32> -> vector<8x32xf32>
    %33 = vector.extract_strided_slice %8 {offsets = [0, 32], sizes = [8, 32], strides = [1, 1]} : vector<8x128xf32> to vector<8x32xf32>
    %34 = arith.truncf %33 : vector<8x32xf32> to vector<8x32xbf16>
    %35 = vector.extract_strided_slice %13 {offsets = [0, 32], sizes = [16, 32], strides = [1, 1]} : vector<16x256xf32> to vector<16x32xf32>
    %36 = arith.truncf %35 : vector<16x32xf32> to vector<16x32xbf16>
    %37 = vector.extract_strided_slice %13 {offsets = [0, 160], sizes = [16, 32], strides = [1, 1]} : vector<16x256xf32> to vector<16x32xf32>
    %38 = arith.truncf %37 : vector<16x32xf32> to vector<16x32xbf16>
    %cst_18 = arith.constant dense<0.000000e+00> : vector<8x16xf32>
    %39 = tpu.matmul %34, %36, %cst_18 {dimension_numbers = #tpu.dot_dimension_numbers<[1], [1], [0], [0], [0, 0, 1, 0], [], []>} : vector<8x32xbf16>, vector<16x32xbf16>, vector<8x16xf32> -> vector<8x16xf32>
    %cst_19 = arith.constant dense<0xFF800000> : vector<8xf32>
    %40 = vector.multi_reduction <maximumf>, %39, %cst_19 [1] : vector<8x16xf32> to vector<8xf32>
    %41 = vector.shape_cast %40 : vector<8xf32> to vector<8x1xf32>
    %42 = vector.broadcast %41 : vector<8x1xf32> to vector<8x16xf32>
    %43 = arith.subf %39, %42 : vector<8x16xf32>
    %44 = math.exp %43 : vector<8x16xf32>
    %cst_20 = arith.constant dense<0.000000e+00> : vector<8xf32>
    %45 = vector.multi_reduction <add>, %44, %cst_20 [1] : vector<8x16xf32> to vector<8xf32>
    %46 = vector.shape_cast %45 : vector<8xf32> to vector<8x1xf32>
    %47 = tpu.reciprocal %46 {approx = true} : vector<8x1xf32> -> vector<8x1xf32>
    %48 = vector.broadcast %47 : vector<8x1xf32> to vector<8x16xf32>
    %49 = arith.mulf %44, %48 : vector<8x16xf32>
    %50 = arith.truncf %49 : vector<8x16xf32> to vector<8x16xbf16>
    %cst_21 = arith.constant dense<0.000000e+00> : vector<8x32xf32>
    %51 = tpu.matmul %50, %38, %cst_21 {dimension_numbers = #tpu.dot_dimension_numbers<[1], [0], [0], [1], [0, 0, 1, 1], [], []>} : vector<8x16xbf16>, vector<16x32xbf16>, vector<8x32xf32> -> vector<8x32xf32>
    %52 = vector.extract_strided_slice %8 {offsets = [0, 64], sizes = [8, 32], strides = [1, 1]} : vector<8x128xf32> to vector<8x32xf32>
    %53 = arith.truncf %52 : vector<8x32xf32> to vector<8x32xbf16>
    %54 = vector.extract_strided_slice %13 {offsets = [0, 64], sizes = [16, 32], strides = [1, 1]} : vector<16x256xf32> to vector<16x32xf32>
    %55 = arith.truncf %54 : vector<16x32xf32> to vector<16x32xbf16>
    %56 = vector.extract_strided_slice %13 {offsets = [0, 192], sizes = [16, 32], strides = [1, 1]} : vector<16x256xf32> to vector<16x32xf32>
    %57 = arith.truncf %56 : vector<16x32xf32> to vector<16x32xbf16>
    %cst_22 = arith.constant dense<0.000000e+00> : vector<8x16xf32>
    %58 = tpu.matmul %53, %55, %cst_22 {dimension_numbers = #tpu.dot_dimension_numbers<[1], [1], [0], [0], [0, 0, 1, 0], [], []>} : vector<8x32xbf16>, vector<16x32xbf16>, vector<8x16xf32> -> vector<8x16xf32>
    %cst_23 = arith.constant dense<0xFF800000> : vector<8xf32>
    %59 = vector.multi_reduction <maximumf>, %58, %cst_23 [1] : vector<8x16xf32> to vector<8xf32>
    %60 = vector.shape_cast %59 : vector<8xf32> to vector<8x1xf32>
    %61 = vector.broadcast %60 : vector<8x1xf32> to vector<8x16xf32>
    %62 = arith.subf %58, %61 : vector<8x16xf32>
    %63 = math.exp %62 : vector<8x16xf32>
    %cst_24 = arith.constant dense<0.000000e+00> : vector<8xf32>
    %64 = vector.multi_reduction <add>, %63, %cst_24 [1] : vector<8x16xf32> to vector<8xf32>
    %65 = vector.shape_cast %64 : vector<8xf32> to vector<8x1xf32>
    %66 = tpu.reciprocal %65 {approx = true} : vector<8x1xf32> -> vector<8x1xf32>
    %67 = vector.broadcast %66 : vector<8x1xf32> to vector<8x16xf32>
    %68 = arith.mulf %63, %67 : vector<8x16xf32>
    %69 = arith.truncf %68 : vector<8x16xf32> to vector<8x16xbf16>
    %cst_25 = arith.constant dense<0.000000e+00> : vector<8x32xf32>
    %70 = tpu.matmul %69, %57, %cst_25 {dimension_numbers = #tpu.dot_dimension_numbers<[1], [0], [0], [1], [0, 0, 1, 1], [], []>} : vector<8x16xbf16>, vector<16x32xbf16>, vector<8x32xf32> -> vector<8x32xf32>
    %71 = vector.extract_strided_slice %8 {offsets = [0, 96], sizes = [8, 32], strides = [1, 1]} : vector<8x128xf32> to vector<8x32xf32>
    %72 = arith.truncf %71 : vector<8x32xf32> to vector<8x32xbf16>
    %73 = vector.extract_strided_slice %13 {offsets = [0, 96], sizes = [16, 32], strides = [1, 1]} : vector<16x256xf32> to vector<16x32xf32>
    %74 = arith.truncf %73 : vector<16x32xf32> to vector<16x32xbf16>
    %75 = vector.extract_strided_slice %13 {offsets = [0, 224], sizes = [16, 32], strides = [1, 1]} : vector<16x256xf32> to vector<16x32xf32>
    %76 = arith.truncf %75 : vector<16x32xf32> to vector<16x32xbf16>
    %cst_26 = arith.constant dense<0.000000e+00> : vector<8x16xf32>
    %77 = tpu.matmul %72, %74, %cst_26 {dimension_numbers = #tpu.dot_dimension_numbers<[1], [1], [0], [0], [0, 0, 1, 0], [], []>} : vector<8x32xbf16>, vector<16x32xbf16>, vector<8x16xf32> -> vector<8x16xf32>
    %cst_27 = arith.constant dense<0xFF800000> : vector<8xf32>
    %78 = vector.multi_reduction <maximumf>, %77, %cst_27 [1] : vector<8x16xf32> to vector<8xf32>
    %79 = vector.shape_cast %78 : vector<8xf32> to vector<8x1xf32>
    %80 = vector.broadcast %79 : vector<8x1xf32> to vector<8x16xf32>
    %81 = arith.subf %77, %80 : vector<8x16xf32>
    %82 = math.exp %81 : vector<8x16xf32>
    %cst_28 = arith.constant dense<0.000000e+00> : vector<8xf32>
    %83 = vector.multi_reduction <add>, %82, %cst_28 [1] : vector<8x16xf32> to vector<8xf32>
    %84 = vector.shape_cast %83 : vector<8xf32> to vector<8x1xf32>
    %85 = tpu.reciprocal %84 {approx = true} : vector<8x1xf32> -> vector<8x1xf32>
    %86 = vector.broadcast %85 : vector<8x1xf32> to vector<8x16xf32>
    %87 = arith.mulf %82, %86 : vector<8x16xf32>
    %88 = arith.truncf %87 : vector<8x16xf32> to vector<8x16xbf16>
    %cst_29 = arith.constant dense<0.000000e+00> : vector<8x32xf32>
    %89 = tpu.matmul %88, %76, %cst_29 {dimension_numbers = #tpu.dot_dimension_numbers<[1], [0], [0], [1], [0, 0, 1, 1], [], []>} : vector<8x16xbf16>, vector<16x32xbf16>, vector<8x32xf32> -> vector<8x32xf32>
    %90 = tpu.concatenate %32, %51, %70, %89 in 1 : vector<8x32xf32>, vector<8x32xf32>, vector<8x32xf32>, vector<8x32xf32> -> vector<8x128xf32>
    %91 = arith.truncf %90 : vector<8x128xf32> to vector<8x128xbf16>
    %c0_30 = arith.constant 0 : index
    %c0_31 = arith.constant 0 : index
    %92 = vector.load %arg7[%c0_30, %c0_31] : memref<128x128xbf16, #tpu.memory_space<vmem>>, vector<128x128xbf16>
    %cst_32 = arith.constant dense<0.000000e+00> : vector<8x128xf32>
    %93 = tpu.matmul %91, %92, %cst_32 {dimension_numbers = #tpu.dot_dimension_numbers<[1], [0], [0], [1], [0, 0, 1, 1], [], []>} : vector<8x128xbf16>, vector<128x128xbf16>, vector<8x128xf32> -> vector<8x128xf32>
    %c0_33 = arith.constant 0 : index
    %c0_34 = arith.constant 0 : index
    %94 = vector.load %arg8[%c0_33, %c0_34] : memref<1x128xf32, #tpu.memory_space<vmem>>, vector<1x128xf32>
    %95 = vector.broadcast %94 : vector<1x128xf32> to vector<8x128xf32>
    %96 = arith.addf %93, %95 : vector<8x128xf32>
    %97 = arith.extf %1 : vector<8x128xbf16> to vector<8x128xf32>
    %98 = arith.addf %97, %96 : vector<8x128xf32>
    %cst_35 = arith.constant dense<0.000000e+00> : vector<8xf32>
    %99 = vector.multi_reduction <add>, %98, %cst_35 [1] : vector<8x128xf32> to vector<8xf32>
    %100 = vector.shape_cast %99 : vector<8xf32> to vector<8x1xf32>
    %cst_36 = arith.constant 1.280000e+02 : f32
    %101 = vector.broadcast %cst_36 : f32 to vector<8x1xf32>
    %102 = arith.divf %100, %101 : vector<8x1xf32>
    %103 = vector.broadcast %102 : vector<8x1xf32> to vector<8x128xf32>
    %104 = arith.subf %98, %103 : vector<8x128xf32>
    %105 = arith.mulf %104, %104 : vector<8x128xf32>
    %cst_37 = arith.constant dense<0.000000e+00> : vector<8xf32>
    %106 = vector.multi_reduction <add>, %105, %cst_37 [1] : vector<8x128xf32> to vector<8xf32>
    %107 = vector.shape_cast %106 : vector<8xf32> to vector<8x1xf32>
    %cst_38 = arith.constant 1.280000e+02 : f32
    %108 = vector.broadcast %cst_38 : f32 to vector<8x1xf32>
    %109 = arith.divf %107, %108 : vector<8x1xf32>
    %110 = vector.broadcast %102 : vector<8x1xf32> to vector<8x128xf32>
    %111 = arith.subf %98, %110 : vector<8x128xf32>
    %cst_39 = arith.constant 9.99999974E-6 : f32
    %112 = vector.broadcast %cst_39 : f32 to vector<8x1xf32>
    %113 = arith.addf %109, %112 : vector<8x1xf32>
    %114 = math.rsqrt %113 : vector<8x1xf32>
    %115 = vector.broadcast %114 : vector<8x1xf32> to vector<8x128xf32>
    %116 = arith.mulf %111, %115 : vector<8x128xf32>
    %c0_40 = arith.constant 0 : index
    %c0_41 = arith.constant 0 : index
    %117 = vector.load %arg9[%c0_40, %c0_41] : memref<1x128xf32, #tpu.memory_space<vmem>>, vector<1x128xf32>
    %118 = vector.broadcast %117 : vector<1x128xf32> to vector<8x128xf32>
    %119 = arith.mulf %116, %118 : vector<8x128xf32>
    %c0_42 = arith.constant 0 : index
    %c0_43 = arith.constant 0 : index
    %120 = vector.load %arg10[%c0_42, %c0_43] : memref<1x128xf32, #tpu.memory_space<vmem>>, vector<1x128xf32>
    %121 = vector.broadcast %120 : vector<1x128xf32> to vector<8x128xf32>
    %122 = arith.addf %119, %121 : vector<8x128xf32>
    %123 = arith.truncf %122 : vector<8x128xf32> to vector<8x128xbf16>
    %c0_44 = arith.constant 0 : index
    %c0_45 = arith.constant 0 : index
    %c0_46 = arith.constant 0 : index
    %124 = vector.load %arg11[%c0_44, %c0_45, %c0_46] : memref<1x8x128xbf16, #tpu.memory_space<vmem>>, vector<1x8x128xbf16>
    %125 = vector.shape_cast %124 : vector<1x8x128xbf16> to vector<8x128xbf16>
    %126 = vector.shape_cast %123 : vector<8x128xbf16> to vector<1x8x128xbf16>
    tpu.vector_store %arg11[%c0_44, %c0_45, %c0_46], %126 {strides = array<i32>} : memref<1x8x128xbf16, #tpu.memory_space<vmem>>, vector<1x8x128xbf16>,
    return
  }
  func.func @transform_0(%arg0: i32) -> (i32, i32, i32) {
    %c0_i32 = arith.constant 0 : i32
    %c0_i32_0 = arith.constant 0 : i32
    %c0_i32_1 = arith.constant 0 : i32
    return %arg0, %c0_i32, %c0_i32_0 : i32, i32, i32
  }
  func.func @transform_1(%arg0: i32) -> (i32, i32, i32) {
    %c0_i32 = arith.constant 0 : i32
    %c0_i32_0 = arith.constant 0 : i32
    %c0_i32_1 = arith.constant 0 : i32
    return %arg0, %c0_i32, %c0_i32_0 : i32, i32, i32
  }
  func.func @transform_2(%arg0: i32) -> (i32, i32) {
    %c0_i32 = arith.constant 0 : i32
    %c0_i32_0 = arith.constant 0 : i32
    %c0_i32_1 = arith.constant 0 : i32
    return %c0_i32, %c0_i32_0 : i32, i32
  }
  func.func @transform_3(%arg0: i32) -> (i32, i32) {
    %c0_i32 = arith.constant 0 : i32
    %c0_i32_0 = arith.constant 0 : i32
    %c0_i32_1 = arith.constant 0 : i32
    return %c0_i32, %c0_i32_0 : i32, i32
  }
  func.func @transform_4(%arg0: i32) -> (i32, i32) {
    %c0_i32 = arith.constant 0 : i32
    %c0_i32_0 = arith.constant 0 : i32
    %c0_i32_1 = arith.constant 0 : i32
    return %c0_i32, %c0_i32_0 : i32, i32
  }
  func.func @transform_5(%arg0: i32) -> (i32, i32) {
    %c0_i32 = arith.constant 0 : i32
    %c0_i32_0 = arith.constant 0 : i32
    %c0_i32_1 = arith.constant 0 : i32
    return %c0_i32, %c0_i32_0 : i32, i32
  }
  func.func @transform_6(%arg0: i32) -> (i32, i32) {
    %c0_i32 = arith.constant 0 : i32
    %c0_i32_0 = arith.constant 0 : i32
    %c0_i32_1 = arith.constant 0 : i32
    return %c0_i32, %c0_i32_0 : i32, i32
  }
  func.func @transform_7(%arg0: i32) -> (i32, i32) {
    %c0_i32 = arith.constant 0 : i32
    %c0_i32_0 = arith.constant 0 : i32
    %c0_i32_1 = arith.constant 0 : i32
    return %c0_i32, %c0_i32_0 : i32, i32
  }
  func.func @transform_8(%arg0: i32) -> (i32, i32) {
    %c0_i32 = arith.constant 0 : i32
    %c0_i32_0 = arith.constant 0 : i32
    %c0_i32_1 = arith.constant 0 : i32
    return %c0_i32, %c0_i32_0 : i32, i32
  }
  func.func @transform_9(%arg0: i32) -> (i32, i32) {
    %c0_i32 = arith.constant 0 : i32
    %c0_i32_0 = arith.constant 0 : i32
    %c0_i32_1 = arith.constant 0 : i32
    return %c0_i32, %c0_i32_0 : i32, i32
  }
  func.func @transform_10(%arg0: i32) -> (i32, i32, i32) {
    %c0_i32 = arith.constant 0 : i32
    %c0_i32_0 = arith.constant 0 : i32
    %c0_i32_1 = arith.constant 0 : i32
    return %arg0, %c0_i32, %c0_i32_0 : i32, i32, i32
  }
}

</mosaic_0001>

<bundles_post_ra>
// kernel: adapter_vgg_transformer_forward.6
= control target key start
LH: loop header
LB: loop body
LE: loop exit
PB: predicated region body
PF: predicated region fallthrough
CT: control target
= control target key end

     0   :  { %s1020_s12 = smov 0   ;;  %s1022_s13 = smov 0   ;;  %s1171_s0 = inlined_call_operand.vmem [shape: f32[512,27], index: 0, kind: input, shape index: {}]   ;;  %s1172_s1 = inlined_call_operand.vmem [shape: bf16[27,128], index: 1, kind: input, shape index: {}]   ;;  %s1173_s2 = inlined_call_operand.vmem [shape: f32[1,128], index: 2, kind: input, shape index: {}]   ;;  %s1174_s3 = inlined_call_operand.vmem [shape: bf16[512,128], index: 3, kind: output, shape index: {}]  }
   0x1   :  { %s1024_s14 = smov 0  }
   0x2 LB: > { %s25_s15 = sadd.s32 1, %s993_s13  ;;  %p815_p0 = scmp.ge.s32.totalorder %s997_s14, 1  ;;  %s997_s14 = sphi %s1024_s14, %s13_s14   ;;  %s993_s13 = sphi %s1022_s13, %s1176_s13   ;;  %s989_s12 = sphi %s1020_s12, %s1175_s12  }
   0x3   : > { %p27_p1 = scmp.ge.s32.totalorder %s25_s15, 2  ;;  %p166_p2 = scmp.lt.s32.totalorder %s997_s14, 3 }
   0x5   : > { %s1178_s15 = smov (%p27_p1, %s25_s15), 0  ;;  %p167_p3 = pnand %p815_p0, %p166_p2 }
   0x6   : > { %s816_s20 = sshll.u32 (!%p167_p3), %s989_s12, 5 }
   0x7   : > { %170 = sbr.rel (%p167_p3) target bundleno = 222 (0xde), region = 32  ;;  %p199_p4 = scmp.lt.s32.totalorder (!%p167_p3), %s816_s20, 63 }
   0xc   : > { %v826_v0 = vld [vmem:[%s1172_s1 + $0x8] sm:$0xf]  ;;  %v847_v1 = vld [vmem:[%s1172_s1 + $0x8] sm:$0x30]  ;;  %vm400_vm0 = vcmask 1044480   ;;  %vm401_vm1 = vcmask 1045504  }
   0xd   : > { %v827_v2 = vor.u32 %v847_v1, %v826_v0  ;;  %v999_v3 = vmov 65535   ;;  %s1180_s20 = smov (!%p199_p4, %s816_s20), 63  ;;  %v846_v7 = vld [vmem:[%s1172_s1] sm:$0xff]  ;;  %vm351_vm2 = vcmask 220160  }
   0xe   : > { %v402_v4 = vsel %vm400_vm0, 4294967295, %v999_v3  ;;  %s817_s23 = sshll.u32 %s1180_s20, 3  ;;  %v1106_v58 = vld [vmem:[%s1173_s2] ss:$0 sm:$0xff]  ;;  %s819_s29 = sshll.u32 %s1180_s20, 2 }
   0xf   : > { %v403_v5 = vsel %vm401_vm1, %v402_v4, 0  ;;  %s1053_s26 = scalar_lea.vmem %s1171_s0, %s817_s23  ;;  %s1116_s5 = scalar_lea.vmem %s1174_s3, %s819_s29 }
  0x10   : > { %v405_v6 = vand.u32 %v827_v2, %v403_v5  ;;  %v288_v8 = vld [vmem:[%s1053_s26] sm:$0xff]  ;;  %v289_v9 = vld [vmem:[%s1053_s26 + $0x8] sm:$0xff]  ;;  %v290_v20 = vld [vmem:[%s1053_s26 + $0x10] sm:$0xff] }
  0x11   : > { %v296_v10 = vld [vmem:[%s1053_s26 + $0x40] sm:$0xff]  ;;  %v320_v11 = vpack.c.bf16 %v289_v9, %v288_v8  ;;  %v297_v12 = vld [vmem:[%s1053_s26 + $0x48] sm:$0xff]  ;;  %v291_v21 = vld [vmem:[%s1053_s26 + $0x18] sm:$0xff] }
  0x12   : > { %413 = vmatpush.bf16.msra.mxu0 %v405_v6  ;;  %943 = vmatpush.bf16.msra.mxu1 %v405_v6  ;;  %v304_v13 = vld [vmem:[%s1053_s26 + $0x80] sm:$0xff]  ;;  %v305_v14 = vld [vmem:[%s1053_s26 + $0x88] sm:$0xff]  ;;  %v324_v15 = vpack.c.bf16 %v297_v12, %v296_v10  ;;  %v298_v22 = vld [vmem:[%s1053_s26 + $0x50] sm:$0xff]  ;;  %v321_v28 = vpack.c.bf16 %v291_v21, %v290_v20 }
  0x13   : > { %944 = vmatpush.bf16.msra.mxu2 %v405_v6  ;;  %945 = vmatpush.bf16.msra.mxu3 %v405_v6  ;;  %v328_v16 = vpack.c.bf16 %v305_v14, %v304_v13  ;;  %v312_v17 = vld [vmem:[%s1053_s26 + $0xc0] sm:$0xff]  ;;  %v313_v18 = vld [vmem:[%s1053_s26 + $0xc8] sm:$0xff]  ;;  %v299_v23 = vld [vmem:[%s1053_s26 + $0x58] sm:$0xff] }
  0x14   : > { %v332_v19 = vpack.c.bf16 %v313_v18, %v312_v17  ;;  %v306_v24 = vld [vmem:[%s1053_s26 + $0x90] sm:$0xff]  ;;  %v307_v25 = vld [vmem:[%s1053_s26 + $0x98] sm:$0xff]  ;;  %v325_v29 = vpack.c.bf16 %v299_v23, %v298_v22  ;;  %v292_v32 = vld [vmem:[%s1053_s26 + $0x20] sm:$0xff] }
  0x15   : > { %v314_v26 = vld [vmem:[%s1053_s26 + $0xd0] sm:$0xff]  ;;  %v315_v27 = vld [vmem:[%s1053_s26 + $0xd8] sm:$0xff]  ;;  %v329_v30 = vpack.c.bf16 %v307_v25, %v306_v24  ;;  %v293_v33 = vld [vmem:[%s1053_s26 + $0x28] sm:$0xff] }
  0x16   : > { %414 = vmatpush.bf16.msra.mxu0 %v846_v7  ;;  %946 = vmatpush.bf16.msra.mxu1 %v846_v7  ;;  %v333_v31 = vpack.c.bf16 %v315_v27, %v314_v26  ;;  %v300_v34 = vld [vmem:[%s1053_s26 + $0x60] sm:$0xff]  ;;  %v301_v35 = vld [vmem:[%s1053_s26 + $0x68] sm:$0xff]  ;;  %v322_v40 = vpack.c.bf16 %v293_v33, %v292_v32  ;;  %v294_v44 = vld [vmem:[%s1053_s26 + $0x30] sm:$0xff] }
  0x17   : > { %947 = vmatpush.bf16.msra.mxu2 %v846_v7  ;;  %948 = vmatpush.bf16.msra.mxu3 %v846_v7  ;;  %v308_v36 = vld [vmem:[%s1053_s26 + $0xa0] sm:$0xff]  ;;  %v309_v37 = vld [vmem:[%s1053_s26 + $0xa8] sm:$0xff]  ;;  %v326_v41 = vpack.c.bf16 %v301_v35, %v300_v34  ;;  %v295_v45 = vld [vmem:[%s1053_s26 + $0x38] sm:$0xff] }
  0x18   : > { %v316_v38 = vld [vmem:[%s1053_s26 + $0xe0] sm:$0xff]  ;;  %v317_v39 = vld [vmem:[%s1053_s26 + $0xe8] sm:$0xff]  ;;  %v330_v42 = vpack.c.bf16 %v309_v37, %v308_v36  ;;  %v302_v46 = vld [vmem:[%s1053_s26 + $0x70] sm:$0xff]  ;;  %v323_v52 = vpack.c.bf16 %v295_v45, %v294_v44 }
  0x19   : > { %828 = vmatmul.msk.bf16.vlgmr.msra.gmra.mxu0 %vm351_vm2, %v320_v11  ;;  %832 = vmatmul.msk.bf16.vlgmr.msra.gmra.mxu1 %vm351_vm2, %v324_v15  ;;  %v334_v43 = vpack.c.bf16 %v317_v39, %v316_v38  ;;  %v303_v47 = vld [vmem:[%s1053_s26 + $0x78] sm:$0xff]  ;;  %v310_v48 = vld [vmem:[%s1053_s26 + $0xb0] sm:$0xff] }
  0x1a   : > { %836 = vmatmul.msk.bf16.vlgmr.msra.gmra.mxu2 %vm351_vm2, %v328_v16  ;;  %840 = vmatmul.msk.bf16.vlgmr.msra.gmra.mxu3 %vm351_vm2, %v332_v19  ;;  %v311_v49 = vld [vmem:[%s1053_s26 + $0xb8] sm:$0xff]  ;;  %v318_v50 = vld [vmem:[%s1053_s26 + $0xf0] sm:$0xff]  ;;  %v327_v53 = vpack.c.bf16 %v303_v47, %v302_v46 }
  0x1b   : > { %v319_v51 = vld [vmem:[%s1053_s26 + $0xf8] sm:$0xff]  ;;  %v331_v54 = vpack.c.bf16 %v311_v49, %v310_v48 }
  0x1c   : > { %v335_v55 = vpack.c.bf16 %v319_v51, %v318_v50 }
  0x29   : > { %829 = vmatmul.msk.bf16.gmra.mxu0 %vm351_vm2, %v321_v28  ;;  %833 = vmatmul.msk.bf16.gmra.mxu1 %vm351_vm2, %v325_v29 }
  0x2a   : > { %837 = vmatmul.msk.bf16.gmra.mxu2 %vm351_vm2, %v329_v30  ;;  %841 = vmatmul.msk.bf16.gmra.mxu3 %vm351_vm2, %v333_v31 }
  0x39   : > { %830 = vmatmul.msk.bf16.gmra.mxu0 %vm351_vm2, %v322_v40  ;;  %834 = vmatmul.msk.bf16.gmra.mxu1 %vm351_vm2, %v326_v41 }
  0x3a   : > { %838 = vmatmul.msk.bf16.gmra.mxu2 %vm351_vm2, %v330_v42  ;;  %842 = vmatmul.msk.bf16.gmra.mxu3 %vm351_vm2, %v334_v43 }
  0x49   : > { %831 = vmatmul.msk.bf16.gmra.mxu0 %vm351_vm2, %v323_v52  ;;  %835 = vmatmul.msk.bf16.gmra.mxu1 %vm351_vm2, %v327_v53 }
  0x4a   : > { %839 = vmatmul.msk.bf16.gmra.mxu2 %vm351_vm2, %v331_v54  ;;  %843 = vmatmul.msk.bf16.gmra.mxu3 %vm351_vm2, %v335_v55 }
  0x96   : > { %v416_v56 = vpop.f32.mrf.mxu0  ;;  %v436_v57 = vpop.f32.mrf.mxu1 }
  0x97   : > { %v599_v59 = vadd.f32 %v1106_v58, %v416_v56  ;;  %v607_v60 = vadd.f32 %v1106_v58, %v436_v57 }
  0x99   : > { %v631_v3 = vmax.f32 %v599_v59, 0.0  ;;  %v639_v4 = vmax.f32 %v607_v60, 0.0 }
  0x9d   : > { %v456_v61 = vpop.f32.mrf.mxu2  ;;  %v476_v62 = vpop.f32.mrf.mxu3 }
  0x9e   : > { %v418_v63 = vpop.f32.mrf.mxu0  ;;  %v438_v0 = vpop.f32.mrf.mxu1  ;;  %v615_v9 = vadd.f32 %v1106_v58, %v456_v61  ;;  %v623_v10 = vadd.f32 %v1106_v58, %v476_v62 }
  0x9f   : > { %v600_v1 = vadd.f32 %v1106_v58, %v418_v63  ;;  %v608_v2 = vadd.f32 %v1106_v58, %v438_v0 }
  0xa0   : > { %v647_v17 = vmax.f32 %v615_v9, 0.0  ;;  %v655_v18 = vmax.f32 %v623_v10, 0.0 }
  0xa1   : > { %v632_v5 = vmax.f32 %v600_v1, 0.0  ;;  %v640_v6 = vmax.f32 %v608_v2, 0.0 }
  0xa3   : > { %v851_v7 = vpack.c.bf16 %v632_v5, %v631_v3  ;;  %v871_v8 = vpack.c.bf16 %v640_v6, %v639_v4 }
  0xa5   : > { %852 = vst [vmem:[%s1116_s5] sm:$0xff] %v851_v7   ;;  %v458_v11 = vpop.f32.mrf.mxu2  ;;  %v478_v12 = vpop.f32.mrf.mxu3 }
  0xa6   : > { %931 = vst [vmem:[%s1116_s5 + $0x20] sm:$0xff] %v871_v8   ;;  %v616_v13 = vadd.f32 %v1106_v58, %v458_v11  ;;  %v624_v14 = vadd.f32 %v1106_v58, %v478_v12  ;;  %v421_v15 = vpop.f32.mrf.mxu0  ;;  %v441_v16 = vpop.f32.mrf.mxu1 }
  0xa7   : > { %v601_v23 = vadd.f32 %v1106_v58, %v421_v15  ;;  %v609_v24 = vadd.f32 %v1106_v58, %v441_v16 }
  0xa8   : > { %v648_v19 = vmax.f32 %v616_v13, 0.0  ;;  %v656_v20 = vmax.f32 %v624_v14, 0.0 }
  0xa9   : > { %v633_v31 = vmax.f32 %v601_v23, 0.0  ;;  %v641_v32 = vmax.f32 %v609_v24, 0.0 }
  0xaa   : > { %v891_v21 = vpack.c.bf16 %v648_v19, %v647_v17  ;;  %v911_v22 = vpack.c.bf16 %v656_v20, %v655_v18 }
  0xac   : > { %935 = vst [vmem:[%s1116_s5 + $0x40] sm:$0xff] %v891_v21  }
  0xad   : > { %939 = vst [vmem:[%s1116_s5 + $0x60] sm:$0xff] %v911_v22   ;;  %v461_v25 = vpop.f32.mrf.mxu2  ;;  %v481_v26 = vpop.f32.mrf.mxu3 }
  0xae   : > { %v423_v27 = vpop.f32.mrf.mxu0  ;;  %v443_v28 = vpop.f32.mrf.mxu1  ;;  %v617_v37 = vadd.f32 %v1106_v58, %v461_v25  ;;  %v625_v38 = vadd.f32 %v1106_v58, %v481_v26 }
  0xaf   : > { %v602_v29 = vadd.f32 %v1106_v58, %v423_v27  ;;  %v610_v30 = vadd.f32 %v1106_v58, %v443_v28 }
  0xb0   : > { %v649_v45 = vmax.f32 %v617_v37, 0.0  ;;  %v657_v46 = vmax.f32 %v625_v38, 0.0 }
  0xb1   : > { %v634_v33 = vmax.f32 %v602_v29, 0.0  ;;  %v642_v34 = vmax.f32 %v610_v30, 0.0 }
  0xb3   : > { %v856_v35 = vpack.c.bf16 %v634_v33, %v633_v31  ;;  %v876_v36 = vpack.c.bf16 %v642_v34, %v641_v32 }
  0xb5   : > { %928 = vst [vmem:[%s1116_s5 + $0x8] sm:$0xff] %v856_v35   ;;  %v463_v39 = vpop.f32.mrf.mxu2  ;;  %v483_v40 = vpop.f32.mrf.mxu3 }
  0xb6   : > { %932 = vst [vmem:[%s1116_s5 + $0x28] sm:$0xff] %v876_v36   ;;  %v618_v41 = vadd.f32 %v1106_v58, %v463_v39  ;;  %v626_v42 = vadd.f32 %v1106_v58, %v483_v40  ;;  %v426_v43 = vpop.f32.mrf.mxu0  ;;  %v446_v44 = vpop.f32.mrf.mxu1 }
  0xb7   : > { %v603_v51 = vadd.f32 %v1106_v58, %v426_v43  ;;  %v611_v52 = vadd.f32 %v1106_v58, %v446_v44 }
  0xb8   : > { %v650_v47 = vmax.f32 %v618_v41, 0.0  ;;  %v658_v48 = vmax.f32 %v626_v42, 0.0 }
  0xb9   : > { %v635_v60 = vmax.f32 %v603_v51, 0.0  ;;  %v643_v61 = vmax.f32 %v611_v52, 0.0 }
  0xba   : > { %v896_v49 = vpack.c.bf16 %v650_v47, %v649_v45  ;;  %v916_v50 = vpack.c.bf16 %v658_v48, %v657_v46 }
  0xbc   : > { %936 = vst [vmem:[%s1116_s5 + $0x48] sm:$0xff] %v896_v49  }
  0xbd   : > { %940 = vst [vmem:[%s1116_s5 + $0x68] sm:$0xff] %v916_v50   ;;  %v466_v53 = vpop.f32.mrf.mxu2  ;;  %v486_v54 = vpop.f32.mrf.mxu3 }
  0xbe   : > { %v428_v55 = vpop.f32.mrf.mxu0  ;;  %v448_v56 = vpop.f32.mrf.mxu1  ;;  %v619_v2 = vadd.f32 %v1106_v58, %v466_v53  ;;  %v627_v3 = vadd.f32 %v1106_v58, %v486_v54 }
  0xbf   : > { %v604_v57 = vadd.f32 %v1106_v58, %v428_v55  ;;  %v612_v59 = vadd.f32 %v1106_v58, %v448_v56 }
  0xc0   : > { %v651_v10 = vmax.f32 %v619_v2, 0.0  ;;  %v659_v11 = vmax.f32 %v627_v3, 0.0 }
  0xc1   : > { %v636_v62 = vmax.f32 %v604_v57, 0.0  ;;  %v644_v63 = vmax.f32 %v612_v59, 0.0 }
  0xc3   : > { %v861_v0 = vpack.c.bf16 %v636_v62, %v635_v60  ;;  %v881_v1 = vpack.c.bf16 %v644_v63, %v643_v61 }
  0xc5   : > { %929 = vst [vmem:[%s1116_s5 + $0x10] sm:$0xff] %v861_v0   ;;  %v468_v4 = vpop.f32.mrf.mxu2  ;;  %v488_v5 = vpop.f32.mrf.mxu3 }
  0xc6   : > { %933 = vst [vmem:[%s1116_s5 + $0x30] sm:$0xff] %v881_v1   ;;  %v620_v6 = vadd.f32 %v1106_v58, %v468_v4  ;;  %v628_v7 = vadd.f32 %v1106_v58, %v488_v5  ;;  %v431_v8 = vpop.f32.mrf.mxu0  ;;  %v451_v9 = vpop.f32.mrf.mxu1 }
  0xc7   : > { %v605_v16 = vadd.f32 %v1106_v58, %v431_v8  ;;  %v613_v17 = vadd.f32 %v1106_v58, %v451_v9 }
  0xc8   : > { %v652_v12 = vmax.f32 %v620_v6, 0.0  ;;  %v660_v13 = vmax.f32 %v628_v7, 0.0 }
  0xc9   : > { %v637_v24 = vmax.f32 %v605_v16, 0.0  ;;  %v645_v25 = vmax.f32 %v613_v17, 0.0 }
  0xca   : > { %v901_v14 = vpack.c.bf16 %v652_v12, %v651_v10  ;;  %v921_v15 = vpack.c.bf16 %v660_v13, %v659_v11 }
  0xcc   : > { %937 = vst [vmem:[%s1116_s5 + $0x50] sm:$0xff] %v901_v14  }
  0xcd   : > { %941 = vst [vmem:[%s1116_s5 + $0x70] sm:$0xff] %v921_v15   ;;  %v471_v18 = vpop.f32.mrf.mxu2  ;;  %v491_v19 = vpop.f32.mrf.mxu3 }
  0xce   : > { %v433_v20 = vpop.f32.mrf.mxu0  ;;  %v453_v21 = vpop.f32.mrf.mxu1  ;;  %v621_v30 = vadd.f32 %v1106_v58, %v471_v18  ;;  %v629_v31 = vadd.f32 %v1106_v58, %v491_v19 }
  0xcf   : > { %v606_v22 = vadd.f32 %v1106_v58, %v433_v20  ;;  %v614_v23 = vadd.f32 %v1106_v58, %v453_v21 }
  0xd0   : > { %v653_v36 = vmax.f32 %v621_v30, 0.0  ;;  %v661_v37 = vmax.f32 %v629_v31, 0.0 }
  0xd1   : > { %v638_v26 = vmax.f32 %v606_v22, 0.0  ;;  %v646_v27 = vmax.f32 %v614_v23, 0.0 }
  0xd3   : > { %v866_v28 = vpack.c.bf16 %v638_v26, %v637_v24  ;;  %v886_v29 = vpack.c.bf16 %v646_v27, %v645_v25 }
  0xd5   : > { %930 = vst [vmem:[%s1116_s5 + $0x18] sm:$0xff] %v866_v28   ;;  %v473_v32 = vpop.f32.mrf.mxu2  ;;  %v493_v33 = vpop.f32.mrf.mxu3 }
  0xd6   : > { %934 = vst [vmem:[%s1116_s5 + $0x38] sm:$0xff] %v886_v29   ;;  %v622_v34 = vadd.f32 %v1106_v58, %v473_v32  ;;  %v630_v35 = vadd.f32 %v1106_v58, %v493_v33 }
  0xd8   : > { %v654_v38 = vmax.f32 %v622_v34, 0.0  ;;  %v662_v39 = vmax.f32 %v630_v35, 0.0 }
  0xda   : > { %v906_v40 = vpack.c.bf16 %v654_v38, %v653_v36  ;;  %v926_v41 = vpack.c.bf16 %v662_v39, %v661_v37 }
  0xdc   : > { %938 = vst [vmem:[%s1116_s5 + $0x58] sm:$0xff] %v906_v40  }
  0xdd   : > { %942 = vst [vmem:[%s1116_s5 + $0x78] sm:$0xff] %v926_v41  }
  0xde PF: > { %s13_s14 = sadd.s32 1, %s997_s14   ;;  %s1175_s12 = smov %s993_s13 }
  0xdf   : > { %p10_p5 = scmp.ge.s32.totalorder %s13_s14, 4   ;;  %s1176_s13 = smov %s1178_s15 }
  0xe1   :  { %12 = sbr.rel (!%p10_p5) target bundleno = 2 (0x2), region = 73 }

// kernel: adapter_vgg_transformer_forward.7
= control target key start
LH: loop header
LB: loop body
LE: loop exit
PB: predicated region body
PF: predicated region fallthrough
CT: control target
= control target key end

     0   :  { %s2271_s12 = smov 0   ;;  %s2770_s0 = inlined_call_operand.vmem [shape: bf16[2,104,128], index: 0, kind: input, shape index: {}]   ;;  %s2771_s1 = inlined_call_operand.vmem [shape: bf16[9,128,128], index: 1, kind: input, shape index: {}]   ;;  %s2772_s2 = inlined_call_operand.vmem [shape: f32[1,128], index: 2, kind: input, shape index: {}]   ;;  %s2773_s3 = inlined_call_operand.vmem [shape: bf16[2,80,128], index: 3, kind: output, shape index: {}]  }
   0x1 LB: > { %s1623_s13 = sadd.s32 4294967295, %s2249_s12   ;;  %p1627_p0 = scmp.ge.s32.totalorder %s2249_s12, 1  ;;  %s2249_s12 = sphi %s2271_s12, %s13_s12  }
   0x2   : > { %p137_p1 = scmp.lt.s32.totalorder %s2249_s12, 3 }
   0x4   : > { %p138_p2 = pnand %p1627_p0, %p137_p1 }
   0x5   : > { %p161_p3 = scmp.lt.s32.totalorder (!%p138_p2), %s1623_s13, 1 }
   0x6   : > { %141 = sbr.rel (%p138_p2) target bundleno = 375 (0x177), region = 32 }
   0xb   : > { %v2115_v0 = vld [vmem:[%s2771_s1 + $0x78] sm:$0xff]  ;;  %v2114_v1 = vld [vmem:[%s2771_s1 + $0x70] sm:$0xff]  ;;  %s2775_s13 = smov (!%p161_p3, %s1623_s13), 1  ;;  %v2113_v4 = vld [vmem:[%s2771_s1 + $0x68] sm:$0xff]  ;;  %vm243_vm0 = vsmask.f32 7424 }
   0xc   : > { %341 = vmatpush.bf16.msra.mxu0 %v2115_v0  ;;  %2216 = vmatpush.bf16.msra.mxu1 %v2115_v0  ;;  %v2135_v2 = vld [vmem:[%s2771_s1 + $0xf8] sm:$0xff]  ;;  %v2134_v3 = vld [vmem:[%s2771_s1 + $0xf0] sm:$0xff]  ;;  %s2232_s24 = smul.u32 52, %s2775_s13  ;;  %v2133_v5 = vld [vmem:[%s2771_s1 + $0xe8] sm:$0xff]  ;;  %vm483_vm1 = vcmask 1046528   ;;  %vm949_vm4 = vcmask 1045504  }
   0xd   : > { %2217 = vmatpush.bf16.msra.mxu2 %v2115_v0  ;;  %712 = vmatpush.bf16.msra.mxu3 %v2135_v2  ;;  %v2112_v6 = vld [vmem:[%s2771_s1 + $0x60] sm:$0xff]  ;;  %v2111_v9 = vld [vmem:[%s2771_s1 + $0x58] sm:$0xff]  ;;  %v2110_v17 = vld [vmem:[%s2771_s1 + $0x50] sm:$0xff]  ;;  %vm777_vm2 = vsmask.f32 6400  ;;  %vm1415_vm5 = vcmask 1044480  }
   0xe   : > { %s2306_s4 = scalar_lea.vmem %s2770_s0, %s2232_s24  ;;  %v2132_v7 = vld [vmem:[%s2771_s1 + $0xe0] sm:$0xff]  ;;  %v2131_v14 = vld [vmem:[%s2771_s1 + $0xd8] sm:$0xff]  ;;  %v2130_v24 = vld [vmem:[%s2771_s1 + $0xd0] sm:$0xff]  ;;  %vm1243_vm3 = vsmask.f32 5376  ;;  %s2233_s18 = smul.u32 40, %s2775_s13 }
   0xf   : > { %v197_v8 = vld [vmem:[%s2306_s4 + $0x28] sm:$0x1]  ;;  %v2316_v10 = vld [vmem:[%s2306_s4] sm:$0xff]   ;;  %v2319_v11 = vld [vmem:[%s2306_s4 + $0x10] sm:$0xff] }
  0x10   : > { %342 = vmatpush.bf16.msra.mxu0 %v2114_v1  ;;  %2218 = vmatpush.bf16.msra.mxu1 %v2114_v1  ;;  %v2322_v12 = vld [vmem:[%s2306_s4 + $0x20] sm:$0xff]  ;;  %v236_v13 = vunpack.c.l.b16 %v197_v8  ;;  %v2328_v15 = vld [vmem:[%s2306_s4 + $0x8] sm:$0xff]  ;;  %v247_v16 = vshll.u32 %v2316_v10, 16  ;;  %v2335_v18 = vld [vmem:[%s2306_s4 + $0x18] sm:$0xff]  ;;  %v260_v19 = vshll.u32 %v2319_v11, 16  ;;  %v245_v25 = vshrl.u32 %v2316_v10, 16  ;;  %s2745_s21 = scalar_lea.vmem %s2773_s3, %s2233_s18 }
  0x11   : > { %2219 = vmatpush.bf16.msra.mxu2 %v2114_v1  ;;  %713 = vmatpush.bf16.msra.mxu3 %v2134_v3  ;;  %v276_v21 = vshll.u32 %v2322_v12, 16  ;;  %v592_v22 = vld [vmem:[%s2306_s4 + $0x4] sm:$0xe]  ;;  %v2343_v23 = vld [vmem:[%s2306_s4 + $0x8] sm:$0xff]   ;;  %v252_v27 = vshll.u32 %v2328_v15, 16  ;;  %v264_v28 = vshrl.u32 %v2319_v11, 16 }
  0x12   : > { %v2338_v20 = vpack.c.b16 %v236_v13, %v236_v13  ;;  %v249_v26 = vrot.slane %v247_v16, 1  ;;  %v2109_v29 = vld [vmem:[%s2771_s1 + $0x48] sm:$0xff]  ;;  %v2354_v30 = vrot.slane %v260_v19, 1  ;;  %v268_v31 = vshll.u32 %v2335_v18, 16  ;;  %v2108_v39 = vld [vmem:[%s2771_s1 + $0x40] sm:$0xff]  ;;  %v2107_v45 = vld [vmem:[%s2771_s1 + $0x38] sm:$0xff] }
  0x13   : > { %v631_v32 = vunpack.c.l.b16 %v592_v22  ;;  %v632_v33 = vunpack.c.l.b16 %v2343_v23  ;;  %v2358_v34 = vrot.slane %v276_v21, 1  ;;  %v280_v35 = vshrl.u32 %v2322_v12, 16  ;;  %v2129_v37 = vld [vmem:[%s2771_s1 + $0xc8] sm:$0xff]  ;;  %v2123_v48 = vld [vmem:[%s2771_s1 + $0xb8] sm:$0xff]  ;;  %v2128_v52 = vld [vmem:[%s2771_s1 + $0xc0] sm:$0xff] }
  0x14   : > { %343 = vmatpush.bf16.msra.mxu0 %v2113_v4  ;;  %2220 = vmatpush.bf16.msra.mxu1 %v2113_v4  ;;  %v284_v36 = vshll.u32 %v2338_v20, 16  ;;  %v254_v38 = vrot.slane %v252_v27, 1  ;;  %v250_v40 = vor.u32 %v249_v26, %v245_v25  ;;  %v266_v41 = vor.u32 %v264_v28, %v2354_v30  ;;  %v2370_v43 = vld [vmem:[%s2306_s4 + $0xc] sm:$0xff]  ;;  %v2143_v49 = vld [vmem:[%s2771_s1 + $0x138] sm:$0xff]  ;;  %v2104_v3 = vld [vmem:[%s2771_s1 + $0x20] sm:$0xff] }
  0x15   : > { %2221 = vmatpush.bf16.msra.mxu2 %v2113_v4  ;;  %714 = vmatpush.bf16.msra.mxu3 %v2133_v5  ;;  %v270_v42 = vrot.slane %v268_v31, 1  ;;  %v2374_v44 = vpack.c.b16 %v632_v33, %v631_v32  ;;  %v282_v46 = vor.u32 %v280_v35, %v2358_v34  ;;  %v649_v54 = vrot.slane %v2370_v43, 1  ;;  %v2106_v56 = vld [vmem:[%s2771_s1 + $0x30] sm:$0xff]  ;;  %v2171_v57 = vld [vmem:[%s2771_s1 + $0x1f8] sm:$0xff]  ;;  %v2105_v61 = vld [vmem:[%s2771_s1 + $0x28] sm:$0xff] }
  0x16   : > { %v286_v47 = vrot.slane %v284_v36, 1  ;;  %v255_v50 = vsel %vm243_vm0, %v250_v40, %v254_v38  ;;  %v2122_v58 = vld [vmem:[%s2771_s1 + $0xb0] sm:$0xff]  ;;  %v2121_v63 = vld [vmem:[%s2771_s1 + $0xa8] sm:$0xff]  ;;  %v256_v1 = vshrl.u32 %v2328_v15, 16  ;;  %v272_v2 = vshrl.u32 %v2335_v18, 16  ;;  %v2120_v4 = vld [vmem:[%s2771_s1 + $0xa0] sm:$0xff] }
  0x17   : > { %v271_v51 = vsel %vm243_vm0, %v266_v41, %v270_v42  ;;  %v648_v53 = vrot.slane %v2374_v44, 1  ;;  %v2142_v59 = vld [vmem:[%s2771_s1 + $0x130] sm:$0xff]  ;;  %v2141_v0 = vld [vmem:[%s2771_s1 + $0x128] sm:$0xff]  ;;  %v2140_v5 = vld [vmem:[%s2771_s1 + $0x120] sm:$0xff]  ;;  %v779_v27 = vshrl.u32 %v2374_v44, 16  ;;  %v790_v31 = vshll.u32 %v2370_v43, 16 }
  0x18   : > { %344 = vmatpush.bf16.msra.mxu0 %v2112_v6  ;;  %2222 = vmatpush.bf16.msra.mxu1 %v2112_v6  ;;  %v287_v55 = vsel %vm243_vm0, %v282_v46, %v286_v47  ;;  %v2170_v62 = vld [vmem:[%s2771_s1 + $0x1f0] sm:$0xff]  ;;  %v2119_v13 = vld [vmem:[%s2771_s1 + $0x98] sm:$0xff]  ;;  %v2209_v25 = vld [vmem:[%s2306_s4] sm:$0xf0]  ;;  %v485_v46 = vrot.slane %v2328_v15, 1 }
  0x19   : > { %2223 = vmatpush.bf16.msra.mxu2 %v2112_v6  ;;  %715 = vmatpush.bf16.msra.mxu3 %v2132_v7  ;;  %v650_v60 = vsel %vm483_vm1, %v648_v53, %v649_v54  ;;  %v258_v6 = vor.u32 %v256_v1, %v254_v38  ;;  %v274_v7 = vor.u32 %v272_v2, %v270_v42  ;;  %v2431_v8 = vld [vmem:[%s2306_s4 + $0x14] sm:$0xff]  ;;  %v2210_v26 = vld [vmem:[%s2306_s4] sm:$0xe]  ;;  %v2169_v28 = vld [vmem:[%s2771_s1 + $0x1e8] sm:$0xff]  ;;  %v781_v38 = vrot.slane %v779_v27, 1 }
  0x1a   : > { %v651_v19 = vrot.slane %v2431_v8, 1  ;;  %v2102_v21 = vld [vmem:[%s2771_s1 + $0x10] sm:$0xff]  ;;  %v2117_v35 = vld [vmem:[%s2771_s1 + $0x88] sm:$0xff]  ;;  %v792_v41 = vrot.slane %v790_v31, 2  ;;  %v2100_v42 = vld [vmem:[%s2771_s1] sm:$0xff] }
  0x1b   : > { %v263_v16 = vsel %vm243_vm0, %v258_v6, %v2354_v30  ;;  %v2118_v22 = vld [vmem:[%s2771_s1 + $0x90] sm:$0xff]  ;;  %v787_v30 = vshrl.u32 %v2370_v43, 16  ;;  %v2137_v36 = vld [vmem:[%s2771_s1 + $0x108] sm:$0xff]  ;;  %v2136_v47 = vld [vmem:[%s2771_s1 + $0x100] sm:$0xff] }
  0x1c   : > { %345 = vmatpush.bf16.msra.mxu0 %v2111_v9  ;;  %2224 = vmatpush.bf16.msra.mxu1 %v2111_v9  ;;  %v652_v32 = vsel %vm483_vm1, %v649_v54, %v651_v19  ;;  %v2497_v53 = vld [vmem:[%s2306_s4 + $0x1c] sm:$0xff]  ;;  %v2146_v27 = vld [vmem:[%s2771_s1 + $0x150] sm:$0xff] }
  0x1d   : > { %2225 = vmatpush.bf16.msra.mxu2 %v2111_v9  ;;  %716 = vmatpush.bf16.msra.mxu3 %v2131_v14  ;;  %v2103_v9 = vld [vmem:[%s2771_s1 + $0x18] sm:$0xff]  ;;  %v789_v40 = vrot.slane %v787_v30, 1  ;;  %v2148_v6 = vld [vmem:[%s2771_s1 + $0x160] sm:$0xff]  ;;  %v2174_v31 = vld [vmem:[%s2771_s1 + $0x210] sm:$0xff] }
  0x1e   : > { %v2139_v14 = vld [vmem:[%s2771_s1 + $0x118] sm:$0xff] }
  0x1f   : > { %v2167_v2 = vld [vmem:[%s2771_s1 + $0x1d8] sm:$0xff] }
  0x20   : > { %346 = vmatpush.bf16.msra.mxu0 %v2110_v17  ;;  %2226 = vmatpush.bf16.msra.mxu1 %v2110_v17 }
  0x21   : > { %2227 = vmatpush.bf16.msra.mxu2 %v2110_v17  ;;  %717 = vmatpush.bf16.msra.mxu3 %v2130_v24  ;;  %v279_v17 = vsel %vm243_vm0, %v274_v7, %v2358_v34  ;;  %v2138_v24 = vld [vmem:[%s2771_s1 + $0x110] sm:$0xff]  ;;  %v2101_v34 = vld [vmem:[%s2771_s1 + $0x8] sm:$0xff]  ;;  %v2176_v7 = vld [vmem:[%s2771_s1 + $0x220] sm:$0xff] }
  0x24   : > { %347 = vmatpush.bf16.msra.mxu0 %v2109_v29  ;;  %2228 = vmatpush.bf16.msra.mxu1 %v2109_v29 }
  0x25   : > { %2229 = vmatpush.bf16.msra.mxu2 %v2109_v29  ;;  %718 = vmatpush.bf16.msra.mxu3 %v2129_v37  ;;  %v782_v29 = vshll.u32 %v2374_v44, 16  ;;  %v2211_v37 = vor.u32 %v2210_v26, %v2209_v25  ;;  %v2116_v44 = vld [vmem:[%s2771_s1 + $0x80] sm:$0xff]  ;;  %v2175_v25 = vld [vmem:[%s2771_s1 + $0x218] sm:$0xff]  ;;  %v2166_v26 = vld [vmem:[%s2771_s1 + $0x1d0] sm:$0xff] }
  0x28   : > { %348 = vmatpush.bf16.msra.mxu0 %v2108_v39  ;;  %2230 = vmatpush.bf16.msra.mxu1 %v2108_v39 }
  0x29   : > { %2231 = vmatpush.bf16.msra.mxu2 %v2108_v39  ;;  %719 = vmatpush.bf16.msra.mxu3 %v2128_v52  ;;  %v784_v39 = vrot.slane %v782_v29, 2  ;;  %v2179_v52 = vld [vmem:[%s2771_s1 + $0x238] sm:$0xff]  ;;  %v808_v29 = vshll.u32 %v2497_v53, 16 }
  0x2b   : > { %349 = vmatmul.bf16.vlgmr.msra.gmra.mxu0 %v255_v50  ;;  %359 = vmatmul.bf16.vlgmr.msra.gmra.mxu1 %v271_v51  ;;  %v785_v50 = vor.u32 %v784_v39, %v781_v38  ;;  %v793_v51 = vor.u32 %v792_v41, %v789_v40  ;;  %v489_v38 = vrot.slane %v2335_v18, 1 }
  0x2c   : > { %428 = vmatpush.bf16.msrb.mxu1 %v2107_v45  ;;  %884 = vmatpush.bf16.msrb.mxu0 %v2143_v49  ;;  %v484_v45 = vrot.slane %v2211_v37, 1  ;;  %v2151_v49 = vld [vmem:[%s2771_s1 + $0x178] sm:$0xff] }
  0x2d   : > { %548 = vmatpush.bf16.msrb.mxu2 %v2123_v48  ;;  %1350 = vmatpush.bf16.msrb.mxu3 %v2171_v57  ;;  %v2163_v48 = vld [vmem:[%s2771_s1 + $0x1b8] sm:$0xff]  ;;  %v2150_v57 = vld [vmem:[%s2771_s1 + $0x170] sm:$0xff] }
  0x2e   : > { %369 = vmatmul.bf16.vlgmr.msra.gmra.mxu2 %v287_v55  ;;  %720 = vmatmul.bf16.vlgmr.msra.gmra.mxu3 %v650_v60  ;;  %v486_v54 = vsel %vm483_vm1, %v484_v45, %v485_v46  ;;  %v794_v55 = vsel %vm777_vm2, %v785_v50, %v793_v51  ;;  %v2168_v60 = vld [vmem:[%s2771_s1 + $0x1e0] sm:$0xff] }
  0x30   : > { %429 = vmatpush.bf16.msrb.mxu1 %v2106_v56  ;;  %885 = vmatpush.bf16.msrb.mxu0 %v2142_v59  ;;  %v2162_v56 = vld [vmem:[%s2771_s1 + $0x1b0] sm:$0xff] }
  0x31   : > { %549 = vmatpush.bf16.msrb.mxu2 %v2122_v58  ;;  %1351 = vmatpush.bf16.msrb.mxu3 %v2170_v62  ;;  %v653_v58 = vrot.slane %v2497_v53, 1  ;;  %v2178_v59 = vld [vmem:[%s2771_s1 + $0x230] sm:$0xff]  ;;  %v799_v62 = vshll.u32 %v2431_v8, 16 }
  0x33   : > { %v654_v1 = vsel %vm483_vm1, %v651_v19, %v653_v58 }
  0x34   : > { %430 = vmatpush.bf16.msrb.mxu1 %v2105_v61  ;;  %886 = vmatpush.bf16.msrb.mxu0 %v2141_v0  ;;  %v796_v61 = vshrl.u32 %v2431_v8, 16  ;;  %v2149_v0 = vld [vmem:[%s2771_s1 + $0x168] sm:$0xff] }
  0x35   : > { %550 = vmatpush.bf16.msrb.mxu2 %v2121_v63  ;;  %1352 = vmatpush.bf16.msrb.mxu3 %v2169_v28  ;;  %v2161_v63 = vld [vmem:[%s2771_s1 + $0x1a8] sm:$0xff]  ;;  %v805_v28 = vshrl.u32 %v2497_v53, 16 }
  0x38   : > { %431 = vmatpush.bf16.msrb.mxu1 %v2104_v3  ;;  %887 = vmatpush.bf16.msrb.mxu0 %v2140_v5  ;;  %v798_v3 = vrot.slane %v796_v61, 1  ;;  %v2160_v5 = vld [vmem:[%s2771_s1 + $0x1a0] sm:$0xff] }
  0x39   : > { %551 = vmatpush.bf16.msrb.mxu2 %v2120_v4  ;;  %1353 = vmatpush.bf16.msrb.mxu3 %v2168_v60  ;;  %v801_v4 = vrot.slane %v799_v62, 2  ;;  %v756_v60 = vld [vmem:[%s2306_s4 + $0x2c] sm:$0x3] }
  0x3b   : > { %354 = vmatmul.bf16.gmra.mxu0 %v263_v16  ;;  %364 = vmatmul.bf16.gmra.mxu1 %v279_v17  ;;  %v2546_v16 = vld [vmem:[%s2306_s4 + $0x24] sm:$0xff]  ;;  %v2147_v17 = vld [vmem:[%s2771_s1 + $0x158] sm:$0xff] }
  0x3c   : > { %432 = vmatpush.bf16.msrb.mxu1 %v2103_v9  ;;  %888 = vmatpush.bf16.msrb.mxu0 %v2139_v14  ;;  %v487_v9 = vrot.slane %v2319_v11, 1  ;;  %v2159_v14 = vld [vmem:[%s2771_s1 + $0x198] sm:$0xff]  ;;  %v817_v50 = vshll.u32 %v2546_v16, 16 }
  0x3d   : > { %552 = vmatpush.bf16.msrb.mxu2 %v2119_v13  ;;  %1354 = vmatpush.bf16.msrb.mxu3 %v2167_v2  ;;  %v802_v13 = vor.u32 %v801_v4, %v798_v3  ;;  %v775_v2 = vunpack.c.l.b16 %v756_v60 }
  0x3e   : > { %725 = vmatmul.bf16.gmra.mxu3 %v652_v32  ;;  %v488_v19 = vsel %vm483_vm1, %v485_v46, %v487_v9  ;;  %v602_v32 = vld [vmem:[%s2306_s4 + $0x2c] sm:$0x1]  ;;  %v490_v41 = vsel %vm483_vm1, %v487_v9, %v489_v38  ;;  %v2172_v9 = vld [vmem:[%s2771_s1 + $0x200] sm:$0xff] }
  0x3f   : > { %v641_v37 = vunpack.c.l.b16 %v602_v32 }
  0x40   : > { %433 = vmatpush.bf16.msrb.mxu1 %v2102_v21  ;;  %889 = vmatpush.bf16.msrb.mxu0 %v2138_v24  ;;  %v803_v21 = vsel %vm777_vm2, %v793_v51, %v802_v13  ;;  %v2158_v24 = vld [vmem:[%s2771_s1 + $0x190] sm:$0xff]  ;;  %v2156_v51 = vld [vmem:[%s2771_s1 + $0x180] sm:$0xff] }
  0x41   : > { %553 = vmatpush.bf16.msrb.mxu2 %v2118_v22  ;;  %v655_v22 = vrot.slane %v2546_v16, 1  ;;  %1355 = vmatpush.bf16.msrb.mxu3 %v2166_v26  ;;  %v647_v40 = vpack.c.b16 %v641_v37, %v641_v37  ;;  %v1394_v37 = vld [vmem:[%s2306_s4 + $0x8] sm:$0x8] }
  0x43   : > { %v656_v30 = vsel %vm483_vm1, %v653_v58, %v655_v22  ;;  %v657_v45 = vrot.slane %v647_v40, 1 }
  0x44   : > { %434 = vmatpush.bf16.msrb.mxu1 %v2101_v34  ;;  %890 = vmatpush.bf16.msrb.mxu0 %v2137_v36  ;;  %v2165_v34 = vld [vmem:[%s2771_s1 + $0x1c8] sm:$0xff]  ;;  %v810_v36 = vrot.slane %v808_v29, 2 }
  0x45   : > { %554 = vmatpush.bf16.msrb.mxu2 %v2117_v35  ;;  %v807_v35 = vrot.slane %v805_v28, 1  ;;  %1356 = vmatpush.bf16.msrb.mxu3 %v2165_v34 }
  0x47   : > { %v811_v39 = vor.u32 %v810_v36, %v807_v35  ;;  %v928_v35 = vld [vmem:[%s2306_s4 + $0x4] sm:$0xc] }
  0x48   : > { %435 = vmatpush.bf16.msrb.mxu1 %v2100_v42  ;;  %891 = vmatpush.bf16.msrb.mxu0 %v2136_v47  ;;  %v1058_v42 = vld [vmem:[%s2306_s4 + $0x8] sm:$0xc]  ;;  %v1098_v47 = vunpack.c.h.b16 %v2343_v23 }
  0x49   : > { %555 = vmatpush.bf16.msrb.mxu2 %v2116_v44  ;;  %v812_v44 = vsel %vm777_vm2, %v802_v13, %v811_v39  ;;  %v1097_v46 = vunpack.c.l.b16 %v1058_v42 }
  0x4b   : > { %436 = vmatmul.bf16.vlgmr.msrb.gmra.mxu1 %v2316_v10  ;;  %892 = vmatmul.bf16.vlgmr.msrb.gmra.mxu0 %v794_v55  ;;  %v2177_v10 = vld [vmem:[%s2771_s1 + $0x228] sm:$0xff]  ;;  %v2144_v55 = vld [vmem:[%s2771_s1 + $0x140] sm:$0xff] }
  0x4c   : > { %1014 = vmatpush.bf16.msra.mxu1 %v2151_v49  ;;  %1480 = vmatpush.bf16.msra.mxu0 %v2179_v52  ;;  %v814_v49 = vshrl.u32 %v2546_v16, 16  ;;  %v2173_v52 = vld [vmem:[%s2771_s1 + $0x208] sm:$0xff] }
  0x4d   : > { %1178 = vmatpush.bf16.msra.mxu2 %v2163_v48  ;;  %v2145_v48 = vld [vmem:[%s2771_s1 + $0x148] sm:$0xff] }
  0x4e   : > { %556 = vmatmul.bf16.vlgmr.msrb.gmra.mxu2 %v486_v54  ;;  %730 = vmatmul.bf16.gmra.mxu3 %v654_v1  ;;  %v2164_v54 = vld [vmem:[%s2771_s1 + $0x1c0] sm:$0xff]  ;;  %v816_v58 = vrot.slane %v814_v49, 1  ;;  %v491_v1 = vrot.slane %v2322_v12, 1  ;;  %v951_v49 = vrot.slane %v2370_v43, 2  ;;  %v2658_v43 = vld [vmem:[%s2306_s4 + $0x28] sm:$0xff] }
  0x4f   : > { %1357 = vmatpush.bf16.msrb.mxu3 %v2164_v54 }
  0x50   : > { %1015 = vmatpush.bf16.msra.mxu1 %v2150_v57  ;;  %1481 = vmatpush.bf16.msra.mxu0 %v2178_v59  ;;  %v2609_v57 = vpack.c.b16 %v1098_v47, %v1097_v46  ;;  %v819_v59 = vrot.slane %v817_v50, 2 }
  0x51   : > { %1179 = vmatpush.bf16.msra.mxu2 %v2162_v56  ;;  %v2605_v56 = vld [vmem:[%s2306_s4 + $0x10] sm:$0xff] }
  0x52   : > { %v1245_v61 = vshrl.u32 %v2609_v57, 16  ;;  %v1248_v62 = vshll.u32 %v2609_v57, 16  ;;  %v1115_v46 = vrot.slane %v2605_v56, 2 }
  0x54   : > { %1016 = vmatpush.bf16.msra.mxu1 %v2149_v0  ;;  %1482 = vmatpush.bf16.msra.mxu0 %v2177_v10  ;;  %v1256_v0 = vshll.u32 %v2605_v56, 16  ;;  %v820_v10 = vor.u32 %v819_v59, %v816_v58  ;;  %v1247_v3 = vrot.slane %v1245_v61, 2  ;;  %v1250_v4 = vrot.slane %v1248_v62, 3 }
  0x55   : > { %1180 = vmatpush.bf16.msra.mxu2 %v2161_v63  ;;  %v1253_v63 = vshrl.u32 %v2605_v56, 16  ;;  %v953_v59 = vrot.slane %v2431_v8, 2 }
  0x56   : > { %v821_v13 = vsel %vm777_vm2, %v811_v39, %v820_v10  ;;  %v1413_v39 = vunpack.c.l.b16 %v1394_v37 }
  0x58   : > { %1017 = vmatpush.bf16.msra.mxu1 %v2148_v6  ;;  %1483 = vmatpush.bf16.msra.mxu0 %v2176_v7  ;;  %v1258_v6 = vrot.slane %v1256_v0, 3  ;;  %v492_v7 = vsel %vm483_vm1, %v489_v38, %v491_v1  ;;  %v947_v38 = vunpack.c.l.b16 %v928_v35  ;;  %v1414_v42 = vpack.c.b16 %v1098_v47, %v1413_v39  ;;  %v1222_v0 = vld [vmem:[%s2306_s4 + $0x30] sm:$0x7] }
  0x59   : > { %1181 = vmatpush.bf16.msra.mxu2 %v2160_v5  ;;  %v1255_v5 = vrot.slane %v1253_v63, 2  ;;  %v957_v39 = vrot.slane %v2546_v16, 2 }
  0x5a   : > { %v1416_v50 = vrot.slane %v1414_v42, 3 }
  0x5b   : > { %441 = vmatmul.bf16.gmra.mxu1 %v2328_v15  ;;  %897 = vmatmul.bf16.gmra.mxu0 %v803_v21  ;;  %v2157_v15 = vld [vmem:[%s2771_s1 + $0x188] sm:$0xff] }
  0x5c   : > { %1018 = vmatpush.bf16.msra.mxu1 %v2147_v17  ;;  %1484 = vmatpush.bf16.msra.mxu0 %v2175_v25  ;;  %v1251_v17 = vor.u32 %v1250_v4, %v1247_v3  ;;  %v2629_v25 = vld [vmem:[%s2306_s4 + $0x18] sm:$0xff] }
  0x5d   : > { %1182 = vmatpush.bf16.msra.mxu2 %v2159_v14  ;;  %v2622_v14 = vpack.c.b16 %v775_v2, %v775_v2  ;;  %v1262_v28 = vshrl.u32 %v2629_v25, 16  ;;  %v1265_v29 = vshll.u32 %v2629_v25, 16  ;;  %v1117_v58 = vrot.slane %v2629_v25, 2 }
  0x5e   : > { %561 = vmatmul.bf16.gmra.mxu2 %v488_v19  ;;  %735 = vmatmul.bf16.gmra.mxu3 %v656_v30  ;;  %v1259_v19 = vor.u32 %v1258_v6, %v1255_v5  ;;  %v1419_v60 = vrot.slane %v2629_v25, 3  ;;  %v954_v2 = vsel %vm949_vm4, %v951_v49, %v953_v59  ;;  %v1241_v5 = vunpack.c.l.b16 %v1222_v0 }
  0x5f   : > { %v823_v21 = vshrl.u32 %v2622_v14, 16  ;;  %v1118_v63 = vsel %vm949_vm4, %v1115_v46, %v1117_v58 }
  0x60   : > { %1019 = vmatpush.bf16.msra.mxu1 %v2146_v27  ;;  %1485 = vmatpush.bf16.msra.mxu0 %v2174_v31  ;;  %v1267_v31 = vrot.slane %v1265_v29, 3  ;;  %v2672_v6 = vpack.c.b16 %v1241_v5, %v1241_v5 }
  0x61   : > { %1183 = vmatpush.bf16.msra.mxu2 %v2158_v24  ;;  %v1260_v24 = vsel %vm1243_vm3, %v1251_v17, %v1259_v19  ;;  %v825_v26 = vrot.slane %v823_v21, 1 }
  0x62   : > { %v1292_v17 = vshll.u32 %v2672_v6, 16 }
  0x64   : > { %1020 = vmatpush.bf16.msra.mxu1 %v2145_v48  ;;  %1486 = vmatpush.bf16.msra.mxu0 %v2173_v52 }
  0x65   : > { %1184 = vmatpush.bf16.msra.mxu2 %v2157_v15  ;;  %v1264_v15 = vrot.slane %v1262_v28, 2 }
  0x67   : > { %v1268_v36 = vor.u32 %v1267_v31, %v1264_v15 }
  0x68   : > { %1021 = vmatpush.bf16.msra.mxu1 %v2144_v55  ;;  %1487 = vmatpush.bf16.msra.mxu0 %v2172_v9 }
  0x69   : > { %1185 = vmatpush.bf16.msra.mxu2 %v2156_v51  ;;  %v1269_v40 = vsel %vm1243_vm3, %v1259_v19, %v1268_v36 }
  0x6b   : > { %446 = vmatmul.bf16.gmra.mxu1 %v2319_v11  ;;  %902 = vmatmul.bf16.gmra.mxu0 %v812_v44  ;;  %v658_v11 = vsel %vm483_vm1, %v655_v22, %v657_v45  ;;  %v826_v22 = vshll.u32 %v2622_v14, 16 }
  0x6d   : > { %v828_v27 = vrot.slane %v826_v22, 2  ;;  %v955_v22 = vrot.slane %v2497_v53, 2 }
  0x6e   : > { %566 = vmatmul.bf16.gmra.mxu2 %v490_v41  ;;  %740 = vmatmul.bf16.gmra.mxu3 %v658_v11  ;;  %v2641_v41 = vld [vmem:[%s2306_s4 + $0x20] sm:$0xff] }
  0x6f   : > { %v829_v30 = vor.u32 %v828_v27, %v825_v26  ;;  %v1271_v44 = vshrl.u32 %v2641_v41, 16  ;;  %v1274_v45 = vshll.u32 %v2641_v41, 16  ;;  %v1119_v19 = vrot.slane %v2641_v41, 2 }
  0x70   : > { %v1294_v26 = vrot.slane %v1292_v17, 3 }
  0x71   : > { %v830_v34 = vsel %vm777_vm2, %v820_v10, %v829_v30  ;;  %v1273_v51 = vrot.slane %v1271_v44, 2  ;;  %v1276_v52 = vrot.slane %v1274_v45, 3  ;;  %v1120_v27 = vsel %vm949_vm4, %v1117_v58, %v1119_v19 }
  0x72   : > { %v958_v45 = vsel %vm949_vm4, %v955_v22, %v957_v39 }
  0x73   : > { %v1277_v11 = vor.u32 %v1276_v52, %v1273_v51 }
  0x75   : > { %v1278_v55 = vsel %vm1243_vm3, %v1268_v36, %v1277_v11  ;;  %v1121_v36 = vrot.slane %v2658_v43, 2 }
  0x7b   : > { %451 = vmatmul.bf16.gmra.mxu1 %v2335_v18  ;;  %907 = vmatmul.bf16.gmra.mxu0 %v821_v13  ;;  %v493_v18 = vrot.slane %v2338_v20, 1  ;;  %v948_v20 = vpack.c.b16 %v632_v33, %v947_v38  ;;  %v1417_v33 = vrot.slane %v2605_v56, 3  ;;  %v1280_v56 = vshrl.u32 %v2658_v43, 16 }
  0x7c   : > { %v1289_v13 = vshrl.u32 %v2672_v6, 16 }
  0x7d   : > { %v494_v32 = vsel %vm483_vm1, %v491_v1, %v493_v18  ;;  %v950_v48 = vrot.slane %v948_v20, 2  ;;  %v1418_v54 = vsel %vm1415_vm5, %v1416_v50, %v1417_v33  ;;  %v1282_v61 = vrot.slane %v1280_v56, 2  ;;  %v1068_v20 = vld [vmem:[%s2306_s4 + $0x30] sm:$0x3] }
  0x7e   : > { %571 = vmatmul.bf16.gmra.mxu2 %v492_v7  ;;  %1358 = vmatmul.bf16.vlgmr.msrb.gmra.mxu3 %v1260_v24  ;;  %v1420_v3 = vsel %vm1415_vm5, %v1417_v33, %v1419_v60  ;;  %v1421_v24 = vrot.slane %v2641_v41, 3  ;;  %v1291_v25 = vrot.slane %v1289_v13, 2  ;;  %v956_v18 = vsel %vm949_vm4, %v953_v59, %v955_v22 }
  0x7f   : > { %v952_v47 = vsel %vm949_vm4, %v950_v48, %v951_v49  ;;  %v1122_v41 = vsel %vm949_vm4, %v1119_v19, %v1121_v36  ;;  %v1107_v48 = vunpack.c.l.b16 %v1068_v20  ;;  %v959_v56 = vrot.slane %v2622_v14, 2 }
  0x80   : > { %v1422_v30 = vsel %vm1415_vm5, %v1419_v60, %v1421_v24  ;;  %v1295_v15 = vor.u32 %v1294_v26, %v1291_v25 }
  0x81   : > { %v1113_v16 = vpack.c.b16 %v1107_v48, %v1107_v48 }
  0x8b   : > { %456 = vmatmul.bf16.gmra.mxu1 %v2322_v12  ;;  %912 = vmatmul.bf16.gmra.mxu0 %v830_v34  ;;  %v1114_v12 = vrot.slane %v2609_v57, 2  ;;  %v1283_v57 = vshll.u32 %v2658_v43, 16 }
  0x8d   : > { %v1116_v23 = vsel %vm949_vm4, %v1114_v12, %v1115_v46  ;;  %v1285_v62 = vrot.slane %v1283_v57, 3  ;;  %v1425_v57 = vrot.slane %v2672_v6, 3 }
  0x8e   : > { %576 = vmatmul.bf16.gmra.mxu2 %v494_v32  ;;  %1363 = vmatmul.bf16.gmra.mxu3 %v1269_v40  ;;  %v1423_v40 = vrot.slane %v2658_v43, 3 }
  0x8f   : > { %v1286_v4 = vor.u32 %v1285_v62, %v1282_v61 }
  0x90   : > { %v1424_v12 = vsel %vm1415_vm5, %v1421_v24, %v1423_v40  ;;  %v1426_v0 = vsel %vm1415_vm5, %v1423_v40, %v1425_v57 }
  0x91   : > { %v1287_v8 = vsel %vm1243_vm3, %v1277_v11, %v1286_v4  ;;  %v1296_v53 = vsel %vm1243_vm3, %v1286_v4, %v1295_v15  ;;  %v1123_v11 = vrot.slane %v1113_v16, 2 }
  0x93   : > { %v1124_v59 = vsel %vm949_vm4, %v1121_v36, %v1123_v11 }
  0x9b   : > { %1022 = vmatmul.bf16.vlgmr.msra.gmra.mxu1 %v952_v47  ;;  %1488 = vmatmul.bf16.vlgmr.msra.gmra.mxu0 %v1418_v54 }
  0x9e   : > { %1186 = vmatmul.bf16.vlgmr.msra.gmra.mxu2 %v1116_v23  ;;  %1368 = vmatmul.bf16.gmra.mxu3 %v1278_v55 }
  0xa8   : > { %v350_v1 = vpop.f32.mrf.mxu0  ;;  %v2667_v10 = vpop.f32.mrf.mxu1 }
  0xab   : > { %1027 = vmatmul.bf16.gmra.mxu1 %v954_v2  ;;  %1493 = vmatmul.bf16.gmra.mxu0 %v1420_v3 }
  0xae   : > { %1191 = vmatmul.bf16.gmra.mxu2 %v1118_v63  ;;  %1373 = vmatmul.bf16.gmra.mxu3 %v1287_v8  ;;  %v960_v63 = vsel %vm949_vm4, %v957_v39, %v959_v56 }
  0xb0   : > { %v352_v7 = vpop.f32.mrf.mxu0  ;;  %v2674_v9 = vpop.f32.mrf.mxu1 }
  0xb1   : > { %v721_v21 = vpop.f32.mrf.mxu3  ;;  %v2686_v31 = vpop.f32.mrf.mxu2 }
  0xb8   : > { %v355_v28 = vpop.f32.mrf.mxu0  ;;  %v2682_v29 = vpop.f32.mrf.mxu1 }
  0xb9   : > { %v723_v32 = vpop.f32.mrf.mxu3  ;;  %v2692_v38 = vpop.f32.mrf.mxu2 }
  0xbb   : > { %1032 = vmatmul.bf16.gmra.mxu1 %v956_v18  ;;  %1498 = vmatmul.bf16.gmra.mxu0 %v1422_v30 }
  0xbe   : > { %1196 = vmatmul.bf16.gmra.mxu2 %v1120_v27  ;;  %1378 = vmatmul.bf16.gmra.mxu3 %v1296_v53 }
  0xc0   : > { %v357_v34 = vpop.f32.mrf.mxu0  ;;  %v2689_v35 = vpop.f32.mrf.mxu1 }
  0xc1   : > { %v726_v37 = vpop.f32.mrf.mxu3 }
  0xc8   : > { %v437_v42 = vpop.f32.mrf.mxu1  ;;  %v893_v44 = vpop.f32.mrf.mxu0 }
  0xc9   : > { %v438_v46 = vadd.f32 %v437_v42, %v350_v1  ;;  %v728_v49 = vpop.f32.mrf.mxu3 }
  0xcb   : > { %1037 = vmatmul.bf16.gmra.mxu1 %v958_v45  ;;  %1503 = vmatmul.bf16.gmra.mxu0 %v1424_v12 }
  0xce   : > { %1201 = vmatmul.bf16.gmra.mxu2 %v1122_v41 }
  0xd0   : > { %v439_v52 = vpop.f32.mrf.mxu1  ;;  %v895_v23 = vpop.f32.mrf.mxu0 }
  0xd1   : > { %v557_v50 = vpop.f32.mrf.mxu2  ;;  %v440_v47 = vadd.f32 %v439_v52, %v352_v7  ;;  %v731_v55 = vpop.f32.mrf.mxu3 }
  0xd2   : > { %v582_v33 = vadd.f32 %v557_v50, %v438_v46 }
  0xd4   : > { %v746_v51 = vadd.f32 %v721_v21, %v582_v33 }
  0xd6   : > { %v2700_v54 = vadd.f32 %v893_v44, %v746_v51 }
  0xd8   : > { %v442_v61 = vpop.f32.mrf.mxu1  ;;  %v898_v62 = vpop.f32.mrf.mxu0 }
  0xd9   : > { %v559_v43 = vpop.f32.mrf.mxu2  ;;  %v443_v1 = vadd.f32 %v442_v61, %v355_v28  ;;  %v733_v3 = vpop.f32.mrf.mxu3 }
  0xda   : > { %v583_v58 = vadd.f32 %v559_v43, %v440_v47 }
  0xdb   : > { %1042 = vmatmul.bf16.gmra.mxu1 %v960_v63  ;;  %1508 = vmatmul.bf16.gmra.mxu0 %v1426_v0 }
  0xdc   : > { %v747_v60 = vadd.f32 %v723_v32, %v583_v58 }
  0xde   : > { %1206 = vmatmul.bf16.gmra.mxu2 %v1124_v59  ;;  %v2707_v2 = vadd.f32 %v895_v23, %v747_v60 }
  0xe0   : > { %v444_v8 = vpop.f32.mrf.mxu1  ;;  %v900_v6 = vpop.f32.mrf.mxu0 }
  0xe1   : > { %v562_v14 = vpop.f32.mrf.mxu2  ;;  %v445_v7 = vadd.f32 %v444_v8, %v357_v34  ;;  %v736_v17 = vpop.f32.mrf.mxu3 }
  0xe2   : > { %v584_v4 = vadd.f32 %v562_v14, %v443_v1 }
  0xe4   : > { %v748_v5 = vadd.f32 %v726_v37, %v584_v4 }
  0xe6   : > { %v2709_v13 = vadd.f32 %v898_v62, %v748_v5 }
  0xe8   : > { %v447_v24 = vpop.f32.mrf.mxu1  ;;  %v903_v25 = vpop.f32.mrf.mxu0 }
  0xe9   : > { %v564_v19 = vpop.f32.mrf.mxu2  ;;  %v448_v26 = vadd.f32 %v447_v24, %v2667_v10  ;;  %v738_v30 = vpop.f32.mrf.mxu3 }
  0xea   : > { %v585_v21 = vadd.f32 %v564_v19, %v445_v7 }
  0xec   : > { %v749_v22 = vadd.f32 %v728_v49, %v585_v21 }
  0xee   : > { %v2712_v27 = vadd.f32 %v900_v6, %v749_v22  ;;  %v2736_v22 = vld [vmem:[%s2772_s2] ss:$0 sm:$0xff] }
  0xf0   : > { %v449_v32 = vpop.f32.mrf.mxu1  ;;  %v905_v53 = vpop.f32.mrf.mxu0 }
  0xf1   : > { %v567_v28 = vpop.f32.mrf.mxu2  ;;  %v450_v34 = vadd.f32 %v449_v32, %v2674_v9  ;;  %v741_v41 = vpop.f32.mrf.mxu3 }
  0xf2   : > { %v586_v18 = vadd.f32 %v567_v28, %v448_v26 }
  0xf4   : > { %v750_v15 = vadd.f32 %v731_v55, %v586_v18 }
  0xf6   : > { %v2715_v36 = vadd.f32 %v903_v25, %v750_v15 }
  0xf8   : > { %v452_v20 = vpop.f32.mrf.mxu1  ;;  %v908_v42 = vpop.f32.mrf.mxu0 }
  0xf9   : > { %v569_v37 = vpop.f32.mrf.mxu2  ;;  %v453_v10 = vadd.f32 %v452_v20, %v2682_v29  ;;  %v743_v9 = vpop.f32.mrf.mxu3 }
  0xfa   : > { %v587_v39 = vadd.f32 %v569_v37, %v450_v34 }
  0xfc   : > { %v751_v40 = vadd.f32 %v733_v3, %v587_v39 }
  0xfe   : > { %v2718_v44 = vadd.f32 %v905_v53, %v751_v40 }
 0x100   : > { %v454_v48 = vpop.f32.mrf.mxu1  ;;  %v910_v49 = vpop.f32.mrf.mxu0 }
 0x101   : > { %v572_v45 = vpop.f32.mrf.mxu2  ;;  %v455_v50 = vadd.f32 %v454_v48, %v2689_v35  ;;  %v1359_v55 = vpop.f32.mrf.mxu3 }
 0x102   : > { %v588_v12 = vadd.f32 %v572_v45, %v453_v10 }
 0x104   : > { %v752_v46 = vadd.f32 %v736_v17, %v588_v12 }
 0x106   : > { %v2721_v33 = vadd.f32 %v908_v42, %v752_v46 }
 0x108   : > { %v457_v23 = vpop.f32.mrf.mxu1  ;;  %v913_v47 = vpop.f32.mrf.mxu0 }
 0x109   : > { %v574_v16 = vpop.f32.mrf.mxu2  ;;  %v458_v11 = vadd.f32 %v457_v23, %v2686_v31  ;;  %v1361_v63 = vpop.f32.mrf.mxu3 }
 0x10a   : > { %v589_v51 = vadd.f32 %v574_v16, %v455_v50 }
 0x10c   : > { %v753_v52 = vadd.f32 %v738_v30, %v589_v51 }
 0x10e   : > { %v2724_v29 = vadd.f32 %v910_v49, %v753_v52 }
 0x110   : > { %v459_v58 = vpop.f32.mrf.mxu1  ;;  %v915_v59 = vpop.f32.mrf.mxu0 }
 0x111   : > { %v577_v43 = vpop.f32.mrf.mxu2  ;;  %v460_v35 = vadd.f32 %v459_v58, %v2692_v38  ;;  %v1364_v8 = vpop.f32.mrf.mxu3 }
 0x112   : > { %v590_v56 = vadd.f32 %v577_v43, %v458_v11 }
 0x114   : > { %v754_v57 = vadd.f32 %v741_v41, %v590_v56 }
 0x116   : > { %v2727_v60 = vadd.f32 %v913_v47, %v754_v57 }
 0x118   : > { %v1023_v1 = vpop.f32.mrf.mxu1  ;;  %v1489_v3 = vpop.f32.mrf.mxu0 }
 0x119   : > { %v579_v61 = vpop.f32.mrf.mxu2  ;;  %v1048_v31 = vadd.f32 %v1023_v1, %v2700_v54  ;;  %v1366_v15 = vpop.f32.mrf.mxu3 }
 0x11a   : > { %v591_v62 = vadd.f32 %v579_v61, %v460_v35 }
 0x11c   : > { %v755_v0 = vadd.f32 %v743_v9, %v591_v62 }
 0x11e   : > { %v2730_v14 = vadd.f32 %v915_v59, %v755_v0 }
 0x120   : > { %v1025_v6 = vpop.f32.mrf.mxu1  ;;  %v1491_v7 = vpop.f32.mrf.mxu0 }
 0x121   : > { %v1187_v4 = vpop.f32.mrf.mxu2  ;;  %v1049_v38 = vadd.f32 %v1025_v6, %v2707_v2  ;;  %v1369_v10 = vpop.f32.mrf.mxu3 }
 0x122   : > { %v1212_v5 = vadd.f32 %v1187_v4, %v1048_v31 }
 0x124   : > { %v1384_v17 = vadd.f32 %v1359_v55, %v1212_v5 }
 0x126   : > { %v1514_v21 = vadd.f32 %v1489_v3, %v1384_v17 }
 0x128   : > { %v1028_v25 = vpop.f32.mrf.mxu1  ;;  %v1494_v26 = vpop.f32.mrf.mxu0  ;;  %v1528_v28 = vadd.f32 %v2736_v22, %v1514_v21 }
 0x129   : > { %v1189_v19 = vpop.f32.mrf.mxu2  ;;  %v1050_v30 = vadd.f32 %v1028_v25, %v2709_v13 }
 0x12a   : > { %v1213_v24 = vadd.f32 %v1189_v19, %v1049_v38  ;;  %v1538_v53 = vmax.f32 %v1528_v28, 0.0 }
 0x12c   : > { %v1385_v54 = vadd.f32 %v1361_v63, %v1213_v24 }
 0x12e   : > { %v1515_v18 = vadd.f32 %v1491_v7, %v1385_v54 }
 0x130   : > { %v1529_v2 = vadd.f32 %v2736_v22, %v1515_v18  ;;  %v1030_v40 = vpop.f32.mrf.mxu1  ;;  %v1496_v41 = vpop.f32.mrf.mxu0 }
 0x131   : > { %v1192_v32 = vpop.f32.mrf.mxu2  ;;  %v1051_v13 = vadd.f32 %v1030_v40, %v2712_v27  ;;  %v1371_v27 = vpop.f32.mrf.mxu3 }
 0x132   : > { %v1539_v34 = vmax.f32 %v1529_v2, 0.0  ;;  %v1214_v37 = vadd.f32 %v1192_v32, %v1050_v30 }
 0x134   : > { %v2187_v39 = vpack.c.bf16 %v1539_v34, %v1538_v53  ;;  %v1386_v20 = vadd.f32 %v1364_v8, %v1214_v37 }
 0x136   : > { %2188 = vst [vmem:[%s2745_s21] sm:$0xff] %v2187_v39   ;;  %v1516_v45 = vadd.f32 %v1494_v26, %v1386_v20 }
 0x138   : > { %v1033_v48 = vpop.f32.mrf.mxu1  ;;  %v1499_v49 = vpop.f32.mrf.mxu0  ;;  %v1530_v50 = vadd.f32 %v2736_v22, %v1516_v45 }
 0x139   : > { %v1194_v42 = vpop.f32.mrf.mxu2  ;;  %v1052_v16 = vadd.f32 %v1033_v48, %v2715_v36  ;;  %v1374_v36 = vpop.f32.mrf.mxu3 }
 0x13a   : > { %v1215_v12 = vadd.f32 %v1194_v42, %v1051_v13  ;;  %v1540_v23 = vmax.f32 %v1530_v50, 0.0 }
 0x13c   : > { %v1387_v46 = vadd.f32 %v1366_v15, %v1215_v12 }
 0x13e   : > { %v1517_v9 = vadd.f32 %v1496_v41, %v1387_v46 }
 0x140   : > { %v1531_v51 = vadd.f32 %v2736_v22, %v1517_v9  ;;  %v1035_v43 = vpop.f32.mrf.mxu1  ;;  %v1501_v56 = vpop.f32.mrf.mxu0 }
 0x141   : > { %v1197_v52 = vpop.f32.mrf.mxu2  ;;  %v1053_v58 = vadd.f32 %v1035_v43, %v2718_v44  ;;  %v1376_v21 = vpop.f32.mrf.mxu3 }
 0x142   : > { %v1541_v47 = vmax.f32 %v1531_v51, 0.0  ;;  %v1216_v11 = vadd.f32 %v1197_v52, %v1052_v16 }
 0x144   : > { %v2192_v55 = vpack.c.bf16 %v1541_v47, %v1540_v23  ;;  %v1388_v57 = vadd.f32 %v1369_v10, %v1216_v11 }
 0x146   : > { %2212 = vst [vmem:[%s2745_s21 + $0x8] sm:$0xff] %v2192_v55   ;;  %v1518_v35 = vadd.f32 %v1499_v49, %v1388_v57 }
 0x148   : > { %v1038_v63 = vpop.f32.mrf.mxu1  ;;  %v1532_v0 = vadd.f32 %v2736_v22, %v1518_v35  ;;  %v1504_v31 = vpop.f32.mrf.mxu0 }
 0x149   : > { %v1199_v59 = vpop.f32.mrf.mxu2  ;;  %v1054_v3 = vadd.f32 %v1038_v63, %v2721_v33  ;;  %v1379_v32 = vpop.f32.mrf.mxu3 }
 0x14a   : > { %v1217_v61 = vadd.f32 %v1199_v59, %v1053_v58  ;;  %v1542_v8 = vmax.f32 %v1532_v0, 0.0 }
 0x14c   : > { %v1389_v62 = vadd.f32 %v1371_v27, %v1217_v61 }
 0x14e   : > { %v1519_v1 = vadd.f32 %v1501_v56, %v1389_v62 }
 0x150   : > { %v1533_v4 = vadd.f32 %v2736_v22, %v1519_v1  ;;  %v1040_v17 = vpop.f32.mrf.mxu1  ;;  %v1506_v24 = vpop.f32.mrf.mxu0 }
 0x151   : > { %v1202_v5 = vpop.f32.mrf.mxu2  ;;  %v1055_v19 = vadd.f32 %v1040_v17, %v2724_v29  ;;  %v1381_v12 = vpop.f32.mrf.mxu3 }
 0x152   : > { %v1543_v6 = vmax.f32 %v1533_v4, 0.0  ;;  %v1218_v7 = vadd.f32 %v1202_v5, %v1054_v3 }
 0x154   : > { %v2197_v44 = vpack.c.bf16 %v1543_v6, %v1542_v8  ;;  %v1390_v38 = vadd.f32 %v1374_v36, %v1218_v7 }
 0x156   : > { %2213 = vst [vmem:[%s2745_s21 + $0x10] sm:$0xff] %v2197_v44   ;;  %v1520_v25 = vadd.f32 %v1504_v31, %v1390_v38 }
 0x158   : > { %v1043_v28 = vpop.f32.mrf.mxu1  ;;  %v1534_v18 = vadd.f32 %v2736_v22, %v1520_v25  ;;  %v1509_v39 = vpop.f32.mrf.mxu0 }
 0x159   : > { %v1204_v54 = vpop.f32.mrf.mxu2  ;;  %v1056_v15 = vadd.f32 %v1043_v28, %v2727_v60 }
 0x15a   : > { %v1219_v26 = vadd.f32 %v1204_v54, %v1055_v19  ;;  %v1544_v34 = vmax.f32 %v1534_v18, 0.0 }
 0x15c   : > { %v1391_v33 = vadd.f32 %v1376_v21, %v1219_v26 }
 0x15e   : > { %v1521_v30 = vadd.f32 %v1506_v24, %v1391_v33 }
 0x160   : > { %v1535_v2 = vadd.f32 %v2736_v22, %v1521_v30  ;;  %v1045_v20 = vpop.f32.mrf.mxu1  ;;  %v1511_v48 = vpop.f32.mrf.mxu0 }
 0x161   : > { %v1207_v53 = vpop.f32.mrf.mxu2  ;;  %v1057_v42 = vadd.f32 %v1045_v20, %v2730_v14 }
 0x162   : > { %v1545_v37 = vmax.f32 %v1535_v2, 0.0  ;;  %v1220_v29 = vadd.f32 %v1207_v53, %v1056_v15 }
 0x164   : > { %v2202_v40 = vpack.c.bf16 %v1545_v37, %v1544_v34  ;;  %v1392_v41 = vadd.f32 %v1379_v32, %v1220_v29 }
 0x166   : > { %2214 = vst [vmem:[%s2745_s21 + $0x18] sm:$0xff] %v2202_v40   ;;  %v1522_v13 = vadd.f32 %v1509_v39, %v1392_v41 }
 0x168   : > { %v1536_v10 = vadd.f32 %v2736_v22, %v1522_v13 }
 0x169   : > { %v1209_v45 = vpop.f32.mrf.mxu2 }
 0x16a   : > { %v1221_v60 = vadd.f32 %v1209_v45, %v1057_v42  ;;  %v1546_v9 = vmax.f32 %v1536_v10, 0.0 }
 0x16c   : > { %v1393_v46 = vadd.f32 %v1381_v12, %v1221_v60 }
 0x16e   : > { %v1523_v49 = vadd.f32 %v1511_v48, %v1393_v46 }
 0x170   : > { %v1537_v50 = vadd.f32 %v2736_v22, %v1523_v49 }
 0x172   : > { %v1547_v16 = vmax.f32 %v1537_v50, 0.0 }
 0x174   : > { %v2207_v51 = vpack.c.bf16 %v1547_v16, %v1546_v9 }
 0x176   : > { %2215 = vst [vmem:[%s2745_s21 + $0x20] sm:$0xff] %v2207_v51  }
 0x177 PF: > { %s13_s12 = sadd.s32 1, %s2249_s12  }
 0x178   : > { %p10_p4 = scmp.ge.s32.totalorder %s13_s12, 4  }
 0x17a   :  { %12 = sbr.rel (!%p10_p4) target bundleno = 1 (0x1), region = 70 }

// kernel: adapter_vgg_transformer_forward.8
= control target key start
LH: loop header
LB: loop body
LE: loop exit
PB: predicated region body
PF: predicated region fallthrough
CT: control target
= control target key end

     0   :  { %s1233_s27 = smov 0   ;;  %s1497_s0 = inlined_call_operand.vmem [shape: bf16[2,8,128], index: 0, kind: input, shape index: {}]   ;;  %s1498_s1 = inlined_call_operand.vmem [shape: f32[2,1,8], index: 1, kind: input, shape index: {}]   ;;  %s1499_s2 = inlined_call_operand.vmem [shape: bf16[128,384], index: 2, kind: input, shape index: {}]   ;;  %s1500_s3 = inlined_call_operand.vmem [shape: f32[1,384], index: 3, kind: input, shape index: {}]   ;;  %s1501_s4 = inlined_call_operand.vmem [shape: bf16[128,128], index: 4, kind: input, shape index: {}]   ;;  %s1502_s5 = inlined_call_operand.vmem [shape: f32[1,128], index: 5, kind: input, shape index: {}]   ;;  %s1503_s6 = inlined_call_operand.vmem [shape: f32[1,128], index: 6, kind: input, shape index: {}]   ;;  %s1504_s7 = inlined_call_operand.vmem [shape: f32[1,128], index: 7, kind: input, shape index: {}]   ;;  %s1505_s8 = inlined_call_operand.vmem [shape: bf16[2,8,128], index: 8, kind: output, shape index: {}]  }
   0x1 LB: > { %s963_s28 = sadd.s32 4294967295, %s1182_s27   ;;  %p967_p0 = scmp.ge.s32.totalorder %s1182_s27, 1  ;;  %s1182_s27 = sphi %s1233_s27, %s18_s27  }
   0x2   : > { %p269_p1 = scmp.lt.s32.totalorder %s1182_s27, 3 }
   0x4   : > { %p270_p2 = pnand %p967_p0, %p269_p1 }
   0x5   : > { %p304_p3 = scmp.lt.s32.totalorder (!%p270_p2), %s963_s28, 1  ;;  %s1184_s9 = smov (!%p270_p2), 64  }
   0x6   : > { %273 = sbr.rel (%p270_p2) target bundleno = 1657 (0x679), region = 52  ;;  %s1185_s10 = smov (!%p270_p2), 96  }
   0x7   : > { %s1186_s15 = smov (!%p270_p2), 32  }
   0xb   : > { %v1056_v0 = vld [vmem:[%s1499_s2 + $0xa8] sm:$0xf]  ;;  %v1130_v1 = vld [vmem:[%s1499_s2 + $0xb0] sm:$0xf0]  ;;  %v1129_v2 = vld [vmem:[%s1499_s2 + $0xac] sm:$0xf] }
   0xc   : > { %v1057_v3 = vor.u32 %v1130_v1, %v1056_v0  ;;  %v1058_v4 = vld [vmem:[%s1499_s2 + $0xb4] sm:$0xf0]  ;;  %v1044_v5 = vld [vmem:[%s1499_s2 + $0x90] sm:$0xf]  ;;  %v1127_v6 = vld [vmem:[%s1499_s2 + $0x98] sm:$0xf0] }
   0xd   : > { %v1061_v7 = vor.u32 %v1129_v2, %v1058_v4  ;;  %v1126_v8 = vld [vmem:[%s1499_s2 + $0x94] sm:$0xf]  ;;  %v1046_v9 = vld [vmem:[%s1499_s2 + $0x9c] sm:$0xf0]  ;;  %v1045_v10 = vor.u32 %v1127_v6, %v1044_v5  ;;  %v1032_v12 = vld [vmem:[%s1499_s2 + $0x78] sm:$0xf] }
   0xe   : > { %485 = vmatpush.bf16.msra.mxu0 %v1057_v3  ;;  %v1049_v11 = vor.u32 %v1126_v8, %v1046_v9  ;;  %v1124_v13 = vld [vmem:[%s1499_s2 + $0x80] sm:$0xf0]  ;;  %v1123_v14 = vld [vmem:[%s1499_s2 + $0x7c] sm:$0xf]  ;;  %v1034_v15 = vld [vmem:[%s1499_s2 + $0x84] sm:$0xf0] }
   0xf   : > { %498 = vmatpush.bf16.msra.mxu1 %v1061_v7  ;;  %v1033_v16 = vor.u32 %v1124_v13, %v1032_v12  ;;  %v1037_v17 = vor.u32 %v1123_v14, %v1034_v15  ;;  %v1020_v18 = vld [vmem:[%s1499_s2 + $0x60] sm:$0xf]  ;;  %v1121_v19 = vld [vmem:[%s1499_s2 + $0x68] sm:$0xf0]  ;;  %v1120_v20 = vld [vmem:[%s1499_s2 + $0x64] sm:$0xf] }
  0x10   : > { %v1022_v21 = vld [vmem:[%s1499_s2 + $0x6c] sm:$0xf0]  ;;  %v1021_v22 = vor.u32 %v1121_v19, %v1020_v18  ;;  %v1131_v24 = vld [vmem:[%s1499_s2 + $0xb8] sm:$0xf0]  ;;  %v1052_v25 = vld [vmem:[%s1499_s2 + $0x98] sm:$0xf] }
  0x11   : > { %v1064_v23 = vld [vmem:[%s1499_s2 + $0xb0] sm:$0xf]  ;;  %v1025_v26 = vor.u32 %v1120_v20, %v1022_v21  ;;  %v1008_v27 = vld [vmem:[%s1499_s2 + $0x48] sm:$0xf]  ;;  %v1118_v28 = vld [vmem:[%s1499_s2 + $0x50] sm:$0xf0] }
  0x12   : > { %486 = vmatpush.bf16.msra.mxu0 %v1045_v10  ;;  %v1065_v29 = vor.u32 %v1131_v24, %v1064_v23  ;;  %v1128_v30 = vld [vmem:[%s1499_s2 + $0xa0] sm:$0xf0]  ;;  %v1117_v31 = vld [vmem:[%s1499_s2 + $0x4c] sm:$0xf]  ;;  %v1010_v32 = vld [vmem:[%s1499_s2 + $0x54] sm:$0xf0]  ;;  %v1009_v34 = vor.u32 %v1118_v28, %v1008_v27 }
  0x13   : > { %499 = vmatpush.bf16.msra.mxu1 %v1049_v11  ;;  %v1053_v33 = vor.u32 %v1128_v30, %v1052_v25  ;;  %v1040_v35 = vld [vmem:[%s1499_s2 + $0x80] sm:$0xf]  ;;  %v1125_v36 = vld [vmem:[%s1499_s2 + $0x88] sm:$0xf0]  ;;  %v1013_v37 = vor.u32 %v1117_v31, %v1010_v32  ;;  %v996_v38 = vld [vmem:[%s1499_s2 + $0x30] sm:$0xf]  ;;  %v524_v31 = vlaneseq }
  0x14   : > { %511 = vmatpush.bf16.msra.mxu2 %v1065_v29  ;;  %v1115_v39 = vld [vmem:[%s1499_s2 + $0x38] sm:$0xf0]  ;;  %v1114_v40 = vld [vmem:[%s1499_s2 + $0x34] sm:$0xf]  ;;  %v998_v41 = vld [vmem:[%s1499_s2 + $0x3c] sm:$0xf0]  ;;  %v1041_v42 = vor.u32 %v1125_v36, %v1040_v35 }
  0x15   : > { %v997_v43 = vor.u32 %v1115_v39, %v996_v38  ;;  %v1028_v44 = vld [vmem:[%s1499_s2 + $0x68] sm:$0xf]  ;;  %v1122_v45 = vld [vmem:[%s1499_s2 + $0x70] sm:$0xf0]  ;;  %v1001_v46 = vor.u32 %v1114_v40, %v998_v41  ;;  %v984_v47 = vld [vmem:[%s1499_s2 + $0x18] sm:$0xf] }
  0x16   : > { %487 = vmatpush.bf16.msra.mxu0 %v1033_v16  ;;  %v1112_v48 = vld [vmem:[%s1499_s2 + $0x20] sm:$0xf0]  ;;  %v1111_v49 = vld [vmem:[%s1499_s2 + $0x1c] sm:$0xf]  ;;  %v986_v50 = vld [vmem:[%s1499_s2 + $0x24] sm:$0xf0]  ;;  %v1029_v51 = vor.u32 %v1122_v45, %v1028_v44 }
  0x17   : > { %500 = vmatpush.bf16.msra.mxu1 %v1037_v17  ;;  %s1507_s28 = smov (!%p304_p3, %s963_s28), 1  ;;  %v985_v52 = vor.u32 %v1112_v48, %v984_v47  ;;  %v1016_v53 = vld [vmem:[%s1499_s2 + $0x50] sm:$0xf]  ;;  %v1119_v54 = vld [vmem:[%s1499_s2 + $0x58] sm:$0xf0]  ;;  %v989_v55 = vor.u32 %v1111_v49, %v986_v50  ;;  %vm537_vm0 = vcmask 261120  }
  0x18   : > { %512 = vmatpush.bf16.msra.mxu2 %v1053_v33  ;;  %v972_v56 = vld [vmem:[%s1499_s2] sm:$0xf]  ;;  %v1109_v57 = vld [vmem:[%s1499_s2 + $0x8] sm:$0xf0]  ;;  %v1108_v58 = vld [vmem:[%s1499_s2 + $0x4] sm:$0xf]  ;;  %v1017_v60 = vor.u32 %v1119_v54, %v1016_v53  ;;  %s310_s14 = scalar_lea.vmem %s1498_s1, %s1507_s28 }
  0x19   : > { %v974_v59 = vld [vmem:[%s1499_s2 + $0xc] sm:$0xf0]  ;;  %s968_s11 = sshll.u32 %s1507_s28, 2  ;;  %v973_v61 = vor.u32 %v1109_v57, %v972_v56  ;;  %v1004_v62 = vld [vmem:[%s1499_s2 + $0x38] sm:$0xf]  ;;  %vm573_vm1 = vcmask 1043456  }
  0x1a   : > { %488 = vmatpush.bf16.msra.mxu0 %v1021_v22  ;;  %v1116_v63 = vld [vmem:[%s1499_s2 + $0x40] sm:$0xf0]  ;;  %v977_v0 = vor.u32 %v1108_v58, %v974_v59  ;;  %s307_s18 = scalar_lea.vmem %s1497_s0, %s968_s11  ;;  %v992_v3 = vld [vmem:[%s1499_s2 + $0x20] sm:$0xf]  ;;  %v1113_v4 = vld [vmem:[%s1499_s2 + $0x28] sm:$0xf0]  ;;  %s314_s21 = scalar_lea.vmem %s1505_s8, %s968_s11 }
  0x1b   : > { %501 = vmatpush.bf16.msra.mxu1 %v1025_v26  ;;  %v1005_v1 = vor.u32 %v1116_v63, %v1004_v62  ;;  %v1385_v2 = vld [vmem:[%s307_s18] sm:$0xf]  ;;  %v993_v5 = vor.u32 %v1113_v4, %v992_v3  ;;  %v980_v6 = vld [vmem:[%s1499_s2 + $0x8] sm:$0xf]  ;;  %v1110_v7 = vld [vmem:[%s1499_s2 + $0x10] sm:$0xf0] }
  0x1c   : > { %513 = vmatpush.bf16.msra.mxu2 %v1041_v42  ;;  %v981_v8 = vor.u32 %v1110_v7, %v980_v6  ;;  %v349_v9 = vld [vmem:[%s1500_s3] sm:$0x7]  ;;  %v525_v32 = vshrl.u32 %v524_v31, 7  ;;  %v527_v33 = vand.u32 127, %v524_v31  ;;  %vm557_vm3 = vcmask 64512  }
  0x1d   : > { %v352_v10 = vperm.slane %v349_v9, 1  ;;  %v351_v13 = vperm.slane %v349_v9, 0  ;;  %v353_v22 = vperm.slane %v349_v9, 2  ;;  %vm774_vm4 = vcmask 523264  }
  0x1e   : > { %489 = vmatpush.bf16.msra.mxu0 %v1009_v34  ;;  %v1152_v34 = vld [vmem:[%s310_s14] ss:$0 sm:$0xff]  ;;  %vm528_vm2 = vcmp.gt.s32.totalorder %v527_v33, %v525_v32  ;;  %vm776_vm5 = vcmask 785408  }
  0x1f   : > { %502 = vmatpush.bf16.msra.mxu1 %v1013_v37  ;;  %v533_v35 = vsel %vm528_vm2, -1e+09, %v1152_v34 }
  0x20   : > { %514 = vmatpush.bf16.msra.mxu2 %v1029_v51 }
  0x22   : > { %490 = vmatpush.bf16.msra.mxu0 %v997_v43 }
  0x23   : > { %503 = vmatpush.bf16.msra.mxu1 %v1001_v46 }
  0x24   : > { %515 = vmatpush.bf16.msra.mxu2 %v1017_v60 }
  0x26   : > { %491 = vmatpush.bf16.msra.mxu0 %v985_v52 }
  0x27   : > { %504 = vmatpush.bf16.msra.mxu1 %v989_v55 }
  0x28   : > { %516 = vmatpush.bf16.msra.mxu2 %v1005_v1 }
  0x2a   : > { %492 = vmatpush.bf16.msra.mxu0 %v973_v61 }
  0x2b   : > { %505 = vmatpush.bf16.msra.mxu1 %v977_v0 }
  0x2c   : > { %517 = vmatpush.bf16.msra.mxu2 %v993_v5 }
  0x2d   : > { %493 = vmatmul.bf16.vlgmr.msra.gmra.mxu0 %v1385_v2 }
  0x2e   : > { %506 = vmatmul.bf16.vlgmr.msra.gmra.mxu1 %v1385_v2 }
  0x30   : > { %518 = vmatpush.bf16.msra.mxu2 %v981_v8 }
  0x33   : > { %519 = vmatmul.bf16.vlgmr.msra.gmra.mxu2 %v1385_v2 }
  0xaa   : > { %v494_v11 = vpop.f32.mrf.mxu0 }
  0xab   : > { %v507_v12 = vpop.f32.mrf.mxu1  ;;  %v495_v16 = vadd.f32 %v494_v11, %v351_v13 }
  0xac   : > { %v508_v14 = vadd.f32 %v507_v12, %v352_v10 }
  0xad   : > { %v534_v20 = vpack.c.bf16 %v495_v16, %v495_v16 }
  0xae   : > { %v535_v15 = vpack.c.bf16 %v508_v14, %v508_v14 }
  0xb0   : > { %651 = vrot.lane.b32.xlu2 %v535_v15, %s1184_s9  ;;  %594 = vrot.lane.b32.xlu1 %v535_v15, %s1185_s10  ;;  %v542_v17 = vsel %vm537_vm0, %v535_v15, 0 }
  0xb1   : > { %551 = vmatpush.bf16.xpose.msra.mxu3 %v542_v17 }
  0xb2   : > { %v496_v18 = vpop.f32.mrf.mxu0 }
  0xb3   : > { %v509_v19 = vpop.f32.mrf.mxu1 }
  0xb6   : > { %v520_v21 = vpop.f32.mrf.mxu2 }
  0xb7   : > { %v521_v23 = vadd.f32 %v520_v21, %v353_v22 }
  0xb8   : > { %707 = vrot.lane.b32.xlu2 %v535_v15, %s1186_s15  ;;  %591 = vrot.lane.b32.xlu1 %v534_v20, %s1185_s10 }
  0xb9   : > { %1066 = vmatmul.msk.bf16.vlgmr.msra.gmra.mxu3 %vm537_vm0, %v534_v20  ;;  %v1416_v25 = vpack.c.bf16 %v521_v23, %v521_v23 }
  0xbb   : > { %v575_v26 = vsel %vm573_vm1, %v1416_v25, 0 }
  0xbc   : > { %584 = vmatpush.bf16.msrb.mxu3 %v575_v26 }
  0xbe   : > { %v522_v24 = vpop.f32.mrf.mxu2 }
  0xc0   : > { %705 = vrot.lane.b32.xlu1 %v534_v20, %s1186_s15 }
 0x10a   : > { %v652_v27 = vpop.permute.xlu2 %651 }
 0x10b   : > { %v657_v28 = vsel %vm537_vm0, %v652_v27, 0 }
 0x10c   : > { %666 = vmatpush.bf16.xpose.msrb.mxu2 %v657_v28 }
 0x112   : > { %v708_v48 = vpop.permute.xlu2 %707 }
 0x113   : > { %v713_v50 = vsel %vm537_vm0, %v708_v48, 0  ;;  %v1135_v48 = vld [vmem:[%s1501_s4 + $0x18] sm:$0xff] }
 0x122   : > { %v595_v29 = vpop.permute.xlu1 %594 }
 0x123   : > { %v600_v30 = vsel %vm537_vm0, %v595_v29, 0 }
 0x124   : > { %609 = vmatpush.bf16.xpose.msra.mxu3 %v600_v30 }
 0x12a   : > { %v592_v52 = vpop.permute.xlu1 %591 }
 0x132   : > { %v706_v53 = vpop.permute.xlu1 %705 }
 0x13c   : > { %v553_v36 = vpop.f32.mrf.mxu3 }
 0x13d   : > { %v554_v37 = vadd.f32 %v553_v36, %v533_v35 }
 0x13f   : > { %v558_v38 = vsel %vm557_vm3, %v554_v37, -inf }
 0x140   : > { %559 = vmax.xlane.f32.xlu0 %v558_v38 }
 0x144   : > { %v555_v39 = vpop.f32.mrf.mxu3 }
 0x1b3   : > { %v560_v40 = vpop.xlane.xlu0 %559 }
 0x1b4   : > { %v561_v41 = vsub.f32 %v554_v37, %v560_v40 }
 0x1b6   : > { %v562_v42 = vmul.f32 1.442695, %v561_v41 }
 0x1b8   : > { %1156 = vpow2.f32 %v562_v42 }
 0x1be   : > { %v1157_v43 = vpop.eup %1156 }
 0x1bf   : > { %v564_v44 = vsel %vm557_vm3, %v1157_v43, 0.0 }
 0x1c0   : > { %565 = vadd.xlane.f32.xlu0 %v564_v44  ;;  %v1139_v44 = vld [vmem:[%s1501_s4 + $0x38] sm:$0xff] }
 0x1c1   : > { %847 = vmatpush.bf16.msrb.mxu1 %v1139_v44 }
 0x1d4   : > { %649 = vrot.lane.b32.xlu0 %v534_v20, %s1184_s9 }
 0x233   : > { %v566_v45 = vpop.xlane.xlu0 %565 }
 0x234   : > { %1158 = vrcp.f32 %v566_v45  ;;  %v1138_v45 = vld [vmem:[%s1501_s4 + $0x30] sm:$0xff] }
 0x235   : > { %848 = vmatpush.bf16.msrb.mxu1 %v1138_v45 }
 0x23a   : > { %v1159_v46 = vpop.eup %1158 }
 0x23b   : > { %v568_v47 = vmul.f32 %v1159_v46, %v1157_v43  ;;  %v1137_v46 = vld [vmem:[%s1501_s4 + $0x28] sm:$0xff] }
 0x23c   : > { %849 = vmatpush.bf16.msrb.mxu1 %v1137_v46 }
 0x23d   : > { %v569_v49 = vpack.c.bf16 %v568_v47, %v568_v47  ;;  %v1136_v47 = vld [vmem:[%s1501_s4 + $0x20] sm:$0xff] }
 0x23f   : > { %1067 = vmatmul.msk.bf16.vlgmr.msrb.gmra.mxu3 %vm557_vm3, %v569_v49  ;;  %v1134_v49 = vld [vmem:[%s1501_s4 + $0x10] sm:$0xff] }
 0x240   : > { %722 = vmatpush.bf16.xpose.msrb.mxu3 %v713_v50  ;;  %850 = vmatpush.bf16.msrb.mxu1 %v1136_v47  ;;  %v1133_v50 = vld [vmem:[%s1501_s4 + $0x8] sm:$0xff] }
 0x244   : > { %851 = vmatpush.bf16.msrb.mxu1 %v1135_v48 }
 0x246   : > { %v650_v51 = vpop.permute.xlu0 %649 }
 0x247   : > { %1070 = vmatmul.msk.bf16.vlgmr.msrb.gmra.mxu2 %vm537_vm0, %v650_v51  ;;  %v1132_v51 = vld [vmem:[%s1501_s4] sm:$0xff] }
 0x248   : > { %852 = vmatpush.bf16.msrb.mxu1 %v1134_v49 }
 0x24c   : > { %853 = vmatpush.bf16.msrb.mxu1 %v1133_v50 }
 0x24f   : > { %1068 = vmatmul.msk.bf16.vlgmr.msra.gmra.mxu3 %vm537_vm0, %v592_v52 }
 0x250   : > { %854 = vmatpush.bf16.msrb.mxu1 %v1132_v51 }
 0x25f   : > { %1072 = vmatmul.msk.bf16.vlgmr.msrb.gmra.mxu3 %vm537_vm0, %v706_v53 }
 0x2c2   : > { %v1430_v54 = vpop.f32.mrf.mxu3 }
 0x2ca   : > { %v588_v55 = vpop.f32.mrf.mxu3  ;;  %v668_v56 = vpop.f32.mrf.mxu2 }
 0x2cb   : > { %v669_v57 = vadd.f32 %v668_v56, %v533_v35 }
 0x2cd   : > { %v672_v58 = vsel %vm557_vm3, %v669_v57, -inf }
 0x2ce   : > { %673 = vmax.xlane.f32.xlu1 %v672_v58 }
 0x2d2   : > { %v611_v59 = vpop.f32.mrf.mxu3  ;;  %v670_v60 = vpop.f32.mrf.mxu2 }
 0x2d3   : > { %v612_v61 = vadd.f32 %v611_v59, %v533_v35  ;;  %v1153_v60 = vld [vmem:[%s1502_s5] ss:$0 sm:$0xff] }
 0x2d5   : > { %v615_v62 = vsel %vm557_vm3, %v612_v61, -inf }
 0x2d6   : > { %616 = vmax.xlane.f32.xlu2 %v615_v62 }
 0x2da   : > { %v613_v63 = vpop.f32.mrf.mxu3 }
 0x2e2   : > { %v724_v0 = vpop.f32.mrf.mxu3 }
 0x2e3   : > { %v725_v1 = vadd.f32 %v724_v0, %v533_v35 }
 0x2e5   : > { %v728_v3 = vsel %vm557_vm3, %v725_v1, -inf }
 0x2e6   : > { %729 = vmax.xlane.f32.xlu0 %v728_v3  ;;  %v1187_v3 = vmov 128.0  }
 0x2ea   : > { %v726_v4 = vpop.f32.mrf.mxu3 }
 0x2fa   : > { %684 = vrot.lane.b32.xlu0 %v1416_v25, %s1184_s9 }
 0x341   : > { %v674_v5 = vpop.xlane.xlu1 %673 }
 0x342   : > { %v675_v6 = vsub.f32 %v669_v57, %v674_v5 }
 0x344   : > { %v676_v7 = vmul.f32 1.442695, %v675_v6 }
 0x346   : > { %1160 = vpow2.f32 %v676_v7 }
 0x349   : > { %v617_v8 = vpop.xlane.xlu2 %616 }
 0x34a   : > { %v618_v9 = vsub.f32 %v612_v61, %v617_v8  ;;  %v860_v61 = vunpack.c.l.bf16 %v1385_v2 }
 0x34c   : > { %v1161_v10 = vpop.eup %1160  ;;  %v619_v11 = vmul.f32 1.442695, %v618_v9 }
 0x34d   : > { %v678_v12 = vsel %vm557_vm3, %v1161_v10, 0.0 }
 0x34e   : > { %1162 = vpow2.f32 %v619_v11  ;;  %679 = vadd.xlane.f32.xlu1 %v678_v12 }
 0x354   : > { %v1163_v13 = vpop.eup %1162 }
 0x355   : > { %v621_v14 = vsel %vm557_vm3, %v1163_v13, 0.0 }
 0x356   : > { %622 = vadd.xlane.f32.xlu2 %v621_v14 }
 0x359   : > { %v730_v15 = vpop.xlane.xlu0 %729 }
 0x35a   : > { %v731_v16 = vsub.f32 %v725_v1, %v730_v15 }
 0x35c   : > { %v732_v17 = vmul.f32 1.442695, %v731_v16 }
 0x35e   : > { %1164 = vpow2.f32 %v732_v17 }
 0x364   : > { %v1165_v18 = vpop.eup %1164 }
 0x365   : > { %v734_v19 = vsel %vm557_vm3, %v1165_v18, 0.0 }
 0x366   : > { %735 = vadd.xlane.f32.xlu1 %v734_v19 }
 0x36c   : > { %v685_v20 = vpop.permute.xlu0 %684 }
 0x36d   : > { %v690_v21 = vsel %vm573_vm1, %v685_v20, 0 }
 0x36e   : > { %628 = vrot.lane.b32.xlu2 %v1416_v25, %s1185_s10  ;;  %699 = vmatpush.bf16.msra.mxu2 %v690_v21  ;;  %v1154_v21 = vld [vmem:[%s1503_s6] ss:$0 sm:$0xff] }
 0x37f   : > { %740 = vrot.lane.b32.xlu1 %v1416_v25, %s1186_s15 }
 0x3c1   : > { %v680_v22 = vpop.xlane.xlu1 %679 }
 0x3c2   : > { %1166 = vrcp.f32 %v680_v22 }
 0x3c8   : > { %v1167_v23 = vpop.eup %1166 }
 0x3c9   : > { %v682_v24 = vmul.f32 %v1167_v23, %v1161_v10  ;;  %v623_v26 = vpop.xlane.xlu2 %622  ;;  %v1155_v23 = vld [vmem:[%s1504_s7] ss:$0 sm:$0xff] }
 0x3ca   : > { %1168 = vrcp.f32 %v623_v26 }
 0x3cb   : > { %v683_v27 = vpack.c.bf16 %v682_v24, %v682_v24 }
 0x3cd   : > { %1071 = vmatmul.msk.bf16.vlgmr.msra.gmra.mxu2 %vm557_vm3, %v683_v27 }
 0x3d0   : > { %v1169_v28 = vpop.eup %1168 }
 0x3d1   : > { %v625_v29 = vmul.f32 %v1169_v28, %v1163_v13  ;;  %v629_v30 = vpop.permute.xlu2 %628 }
 0x3d2   : > { %v634_v31 = vsel %vm573_vm1, %v629_v30, 0 }
 0x3d3   : > { %643 = vmatpush.bf16.msrb.mxu0 %v634_v31  ;;  %v626_v32 = vpack.c.bf16 %v625_v29, %v625_v29 }
 0x3d6   : > { %1069 = vmatmul.msk.bf16.vlgmr.msrb.gmra.mxu0 %vm557_vm3, %v626_v32 }
 0x3d9   : > { %v736_v33 = vpop.xlane.xlu1 %735 }
 0x3da   : > { %1170 = vrcp.f32 %v736_v33 }
 0x3db   : > { %1172 = vrcp.f32 %v1187_v3 }
 0x3e0   : > { %v1171_v25 = vpop.eup %1170 }
 0x3e1   : > { %v738_v34 = vmul.f32 %v1171_v25, %v1165_v18  ;;  %v1173_v4 = vpop.eup %1172 }
 0x3e2   : > { %vm869_vm6 = vweird.f32 %v1173_v4 }
 0x3e3   : > { %v739_v37 = vpack.c.bf16 %v738_v34, %v738_v34 }
 0x3f1   : > { %v741_v35 = vpop.permute.xlu1 %740 }
 0x3f2   : > { %v746_v36 = vsel %vm573_vm1, %v741_v35, 0 }
 0x3f3   : > { %755 = vmatpush.bf16.msra.mxu0 %v746_v36 }
 0x3f6   : > { %1073 = vmatmul.msk.bf16.vlgmr.msra.gmra.mxu0 %vm557_vm3, %v739_v37 }
 0x450   : > { %v701_v38 = vpop.f32.mrf.mxu2 }
 0x453   : > { %v645_v39 = vpop.f32.mrf.mxu0 }
 0x454   : > { %762 = vrot.lane.b32.xlu2 %v645_v39, %s1186_s15 }
 0x458   : > { %v703_v40 = vpop.f32.mrf.mxu2 }
 0x45b   : > { %v647_v41 = vpop.f32.mrf.mxu0 }
 0x45c   : > { %766 = vrot.lane.b32.xlu2 %v701_v38, %s1184_s9 }
 0x473   : > { %v757_v42 = vpop.f32.mrf.mxu0 }
 0x474   : > { %770 = vrot.lane.b32.xlu0 %v757_v42, %s1185_s10 }
 0x47b   : > { %v759_v43 = vpop.f32.mrf.mxu0 }
 0x4ae   : > { %v763_v52 = vpop.permute.xlu2 %762 }
 0x4af   : > { %v773_v55 = vsel %vm537_vm0, %v1430_v54, %v763_v52  ;;  %v865_v54 = vmul.f32 128.0, %v1173_v4 }
 0x4b1   : > { %v866_v5 = vsub.f32 1.0, %v865_v54 }
 0x4b3   : > { %v867_v6 = vmul.f32 %v1173_v4, %v866_v5 }
 0x4b5   : > { %v868_v7 = vadd.f32 %v1173_v4, %v867_v6 }
 0x4b6   : > { %v767_v53 = vpop.permute.xlu2 %766 }
 0x4b7   : > { %v775_v56 = vsel %vm774_vm4, %v773_v55, %v767_v53  ;;  %v870_v8 = vsel %vm869_vm6, %v1173_v4, %v868_v7 }
 0x4e6   : > { %v771_v57 = vpop.permute.xlu0 %770 }
 0x4e7   : > { %v777_v58 = vsel %vm776_vm5, %v775_v56, %v771_v57 }
 0x4e8   : > { %v778_v59 = vpack.c.bf16 %v777_v58, %v777_v58 }
 0x4ea   : > { %855 = vmatmul.bf16.vlgmr.msrb.gmra.mxu1 %v778_v59 }
 0x567   : > { %v856_v62 = vpop.f32.mrf.mxu1 }
 0x568   : > { %v857_v63 = vadd.f32 %v1153_v60, %v856_v62 }
 0x56a   : > { %v861_v0 = vadd.f32 %v860_v61, %v857_v63 }
 0x56c   : > { %862 = vadd.xlane.f32.xlu2 %v861_v0 }
 0x56f   : > { %v858_v1 = vpop.f32.mrf.mxu1 }
 0x5df   : > { %v863_v9 = vpop.xlane.xlu2 %862 }
 0x5e0   : > { %v871_v10 = vmul.f32 %v870_v8, %v863_v9 }
 0x5e2   : > { %v872_v11 = vsub.f32 %v861_v0, %v871_v10 }
 0x5e4   : > { %v873_v12 = vmul.f32 %v872_v11, %v872_v11 }
 0x5e6   : > { %874 = vadd.xlane.f32.xlu0 %v873_v12 }
 0x659   : > { %v875_v2 = vpop.xlane.xlu0 %874 }
 0x65a   : > { %v876_v13 = vmul.f32 %v875_v2, %v870_v8 }
 0x65c   : > { %v877_v14 = vadd.f32 1e-05, %v876_v13 }
 0x65e   : > { %1174 = vrsqrt.f32 %v877_v14  ;;  %vm884_vm8 = vweird.f32 %v877_v14 }
 0x664   : > { %v1175_v15 = vpop.eup %1174 }
 0x665   : > { %v879_v16 = vmul.f32 %v1175_v15, %v877_v14  ;;  %vm885_vm7 = vweird.f32 %v1175_v15 }
 0x666   : > { %vm886_vm9 = vmor %vm884_vm8, %vm885_vm7 }
 0x667   : > { %v880_v17 = vmul.f32 %v1175_v15, %v879_v16 }
 0x669   : > { %v881_v18 = vmul.f32 0.5, %v880_v17 }
 0x66b   : > { %v882_v19 = vsub.f32 1.5, %v881_v18 }
 0x66d   : > { %v883_v20 = vmul.f32 %v1175_v15, %v882_v19 }
 0x66f   : > { %v887_v22 = vsel %vm886_vm9, %v1175_v15, %v883_v20 }
 0x670   : > { %v888_v24 = vmul.f32 %v887_v22, %v872_v11 }
 0x672   : > { %v893_v26 = vmul.f32 %v1154_v21, %v888_v24 }
 0x674   : > { %v898_v27 = vadd.f32 %v1155_v23, %v893_v26 }
 0x676   : > { %v899_v28 = vpack.c.bf16 %v898_v27, %v898_v27 }
 0x678   : > { %900 = vst [vmem:[%s314_s21] sm:$0xf] %v899_v28 }
 0x679 PF: > { %s18_s27 = sadd.s32 1, %s1182_s27  }
 0x67a   : > { %p15_p4 = scmp.ge.s32.totalorder %s18_s27, 4  }
 0x67c   :  { %17 = sbr.rel (!%p15_p4) target bundleno = 1 (0x1), region = 85 }

// kernel: adapter_vgg_transformer_forward.11
= control target key start
LH: loop header
LB: loop body
LE: loop exit
PB: predicated region body
PF: predicated region fallthrough
CT: control target
= control target key end

     0   :  { %s1254_s0 = inlined_call_operand.vmem [shape: bf16[2,8,128], index: 0, kind: input, shape index: {}]   ;;  %s1255_s1 = inlined_call_operand.vmem [shape: bf16[128,128], index: 1, kind: input, shape index: {}]   ;;  %s1256_s2 = inlined_call_operand.vmem [shape: f32[1,128], index: 2, kind: input, shape index: {}]   ;;  %s1257_s3 = inlined_call_operand.vmem [shape: bf16[128,128], index: 3, kind: input, shape index: {}]   ;;  %s1258_s4 = inlined_call_operand.vmem [shape: f32[1,128], index: 4, kind: input, shape index: {}]   ;;  %s1259_s5 = inlined_call_operand.vmem [shape: bf16[128,128], index: 5, kind: input, shape index: {}]   ;;  %s1260_s6 = inlined_call_operand.vmem [shape: f32[1,128], index: 6, kind: input, shape index: {}]   ;;  %s1261_s7 = inlined_call_operand.vmem [shape: bf16[128,128], index: 7, kind: input, shape index: {}]   ;;  %s1262_s8 = inlined_call_operand.vmem [shape: f32[1,128], index: 8, kind: input, shape index: {}]   ;;  %s1263_s9 = inlined_call_operand.hbm [shape: f32[2,8,128], index: 9, kind: output, shape index: {}]  }
   0x1   :  { %1264 = sst [smem:[#allocation5_spill]] %s1254_s0 }
   0x2   :  { %14 = vsyncpa [#allocation3], 0 }
   0x3   :  { %16 = vsyncpa [#allocation3 + $0x1], 0  ;;  %s1061_s30 = smov 0   ;;  %s1063_s10 = smov 0  }
   0x4   :  { %s1065_s11 = smov 0   ;;  %s1067_s12 = smov 0  }
   0x5 LB: > { %s1082_s13 = sadd.s32 4294967295, %s1009_s12   ;;  %s734_s14 = sadd.s32 4294967294, %s1009_s12   ;;  %s1009_s12 = sphi %s1067_s12, %s1271_s12   ;;  %s1005_s11 = sphi %s1065_s11, %s1270_s11   ;;  %s1001_s10 = sphi %s1063_s10, %s1269_s10   ;;  %s997_s30 = sphi %s1061_s30, %s1268_s30  }
   0x6   : > { %s1086_s15 = sadd.s32 1, %s1009_s12   ;;  %s223_s16 = sadd.s32 1, %s1005_s11 }
   0x7   : > { %s220_s17 = ssub.s32 %s1009_s12, %s1086_s15  ;;  %p233_p0 = scmp.ne.s32.totalorder %s1005_s11, %s1001_s10 }
   0x8   : > { %p221_p1 = scmp.eq.s32.totalorder %s220_s17, 0  ;;  %p234_p2 = scmp.eq.s32.totalorder %s1082_s13, 1 }
   0x9   : > { %p239_p3 = scmp.ne.s32.totalorder %s1001_s10, %s997_s30  ;;  %p240_p4 = scmp.eq.s32.totalorder %s734_s14, 1 }
   0xa   : > { %s1097_s18 = scalar_select %p221_p1, %s1005_s11, %s223_s16  }
   0xb   : > { %p1099_p5 = por %p234_p2, %p233_p0  ;;  %p1103_p6 = por %p240_p4, %p239_p3 }
   0xc   : > { %p737_p7 = scmp.ge.s32.totalorder %s1009_s12, 1  ;;  %p289_p8 = scmp.lt.s32.totalorder %s1009_s12, 3 }
   0xe   : > { %p290_p9 = pnand %p737_p7, %p289_p8 }
   0xf   : > { %p324_p10 = scmp.lt.s32.totalorder (!%p290_p9), %s1082_s13, 1  ;;  %s1267_s0 = sld [smem:[#allocation5_spill]] (!%p290_p9) }
  0x10   : > { %293 = sbr.rel (%p290_p9) target bundleno = 593 (0x251), region = 56  ;;  %s321_s25 = sand.u32 (!%p290_p9), 1, %s1001_s10  }
  0x11   : > { %s869_s26 = sshll.u32 (!%p290_p9), %s1082_s13, 3  ;;  %s660_s23 = scalar_lea.sflag (!%p290_p9), [#allocation3], %s321_s25 }
  0x12   : > { %s670_s29 = scalar_lea.hbm (!%p290_p9), %s1263_s9, %s869_s26  ;;  %s967_s28 = scalar_lea.hbm (!%p290_p9), %s1263_s9, 16 }
  0x13   : > { %s674_s22 = sshll.u32 (!%p290_p9), %s670_s29, 4  ;;  %s675_s22 = int_to_ptr.hbm [resolvable:$true] %s674_s22 }
  0x15   : > { %v879_v0 = vld [vmem:[%s1255_s1 + $0x38] sm:$0xff]  ;;  %v878_v1 = vld [vmem:[%s1255_s1 + $0x30] sm:$0xff]  ;;  %v877_v4 = vld [vmem:[%s1255_s1 + $0x28] sm:$0xff]  ;;  %s325_s16 = scalar_select %p324_p10, %s1082_s13, 1 }
  0x16   : > { %397 = vmatpush.bf16.msra.mxu0 %v879_v0  ;;  %v887_v2 = vld [vmem:[%s1257_s3 + $0x38] sm:$0xff]  ;;  %v886_v3 = vld [vmem:[%s1257_s3 + $0x30] sm:$0xff]  ;;  %v885_v5 = vld [vmem:[%s1257_s3 + $0x28] sm:$0xff]  ;;  %s961_s13 = sshra.s32 %s675_s22, 4  ;;  %s962_s13 = int_to_ptr.hbm [resolvable:$true] %s961_s13 }
  0x17   : > { %479 = vmatpush.bf16.msra.mxu1 %v887_v2  ;;  %v876_v6 = vld [vmem:[%s1255_s1 + $0x20] sm:$0xff]  ;;  %v875_v8 = vld [vmem:[%s1255_s1 + $0x18] sm:$0xff]  ;;  %v874_v10 = vld [vmem:[%s1255_s1 + $0x10] sm:$0xff]  ;;  %s739_s24 = sshll.u32 %s325_s16, 2  ;;  %p968_p0 = scmp.lt.s32.totalorder %s962_s13, %s1263_s9 }
  0x18   : > { %v884_v7 = vld [vmem:[%s1257_s3 + $0x20] sm:$0xff]  ;;  %v883_v9 = vld [vmem:[%s1257_s3 + $0x18] sm:$0xff]  ;;  %v882_v11 = vld [vmem:[%s1257_s3 + $0x10] sm:$0xff]  ;;  %s327_s17 = scalar_lea.vmem %s1267_s0, %s739_s24  ;;  %s738_s24 = sshll.u32 %s321_s25, 3 }
  0x19   : > { %v873_v12 = vld [vmem:[%s1255_s1 + $0x8] sm:$0xff]  ;;  %v872_v14 = vld [vmem:[%s1255_s1] sm:$0xff]  ;;  %v895_v17 = vld [vmem:[%s1259_s5 + $0x38] sm:$0xff]  ;;  %s323_s21 = scalar_lea.vmem [#allocation2], %s738_s24  ;;  %s963_s0 = scalar_lea.hbm %s962_s13, 8 }
  0x1a   : > { %398 = vmatpush.bf16.msra.mxu0 %v878_v1  ;;  %v881_v13 = vld [vmem:[%s1257_s3 + $0x8] sm:$0xff]  ;;  %v328_v15 = vld [vmem:[%s327_s17] sm:$0xf]  ;;  %562 = vmatpush.bf16.msra.mxu2 %v895_v17  ;;  %v894_v18 = vld [vmem:[%s1259_s5 + $0x30] sm:$0xff]  ;;  %s672_s16 = sshll.u32 %s323_s21, 4  ;;  %p964_p11 = scmp.ne.s32.totalorder %s962_s13, %s963_s0  ;;  %s673_s16 = int_to_ptr.vmem [resolvable:$true] %s672_s16 }
  0x1b   : > { %480 = vmatpush.bf16.msra.mxu1 %v886_v3  ;;  %v880_v16 = vld [vmem:[%s1257_s3] sm:$0xff]  ;;  %v893_v19 = vld [vmem:[%s1259_s5 + $0x28] sm:$0xff]  ;;  %v891_v21 = vld [vmem:[%s1259_s5 + $0x18] sm:$0xff]  ;;  %p969_p1 = scmp.lt.s32.totalorder %s967_s28, %s963_s0 }
  0x1c   : > { %v892_v20 = vld [vmem:[%s1259_s5 + $0x20] sm:$0xff]  ;;  %v890_v22 = vld [vmem:[%s1259_s5 + $0x10] sm:$0xff]  ;;  %v889_v28 = vld [vmem:[%s1259_s5 + $0x8] sm:$0xff]  ;;  %p965_p12 = pnand %p964_p11, %p1099_p5 }
  0x1d   : > { %v943_v23 = vld [vmem:[%s1256_s2] ss:$0 sm:$0xff]  ;;  %v903_v30 = vld [vmem:[%s1261_s7 + $0x38] sm:$0xff]  ;;  %v902_v31 = vld [vmem:[%s1261_s7 + $0x30] sm:$0xff]  ;;  %p970_p2 = por %p969_p1, %p968_p0 }
  0x1e   : > { %399 = vmatpush.bf16.msra.mxu0 %v877_v4  ;;  %563 = vmatpush.bf16.msra.mxu2 %v894_v18  ;;  %v888_v29 = vld [vmem:[%s1259_s5] sm:$0xff]  ;;  %v901_v32 = vld [vmem:[%s1261_s7 + $0x28] sm:$0xff]  ;;  %v899_v34 = vld [vmem:[%s1261_s7 + $0x18] sm:$0xff]  ;;  %p966_p13 = pneg %p965_p12 }
  0x1f   : > { %481 = vmatpush.bf16.msra.mxu1 %v885_v5  ;;  %645 = vmatpush.bf16.msra.mxu3 %v903_v30  ;;  %v900_v33 = vld [vmem:[%s1261_s7 + $0x20] sm:$0xff]  ;;  %v898_v35 = vld [vmem:[%s1261_s7 + $0x10] sm:$0xff]  ;;  %v897_v42 = vld [vmem:[%s1261_s7 + $0x8] sm:$0xff] }
  0x20   : > { %v944_v36 = vld [vmem:[%s1258_s4] ss:$0 sm:$0xff]  ;;  %p971_p3 = pnand %p970_p2, %p966_p13 }
  0x21   : > { %v896_v43 = vld [vmem:[%s1261_s7] sm:$0xff] }
  0x22   : > { %400 = vmatpush.bf16.msra.mxu0 %v876_v6  ;;  %564 = vmatpush.bf16.msra.mxu2 %v893_v19  ;;  %v945_v44 = vld [vmem:[%s1260_s6] ss:$0 sm:$0xff] }
  0x23   : > { %482 = vmatpush.bf16.msra.mxu1 %v884_v7  ;;  %646 = vmatpush.bf16.msra.mxu3 %v902_v31  ;;  %v946_v50 = vld [vmem:[%s1262_s8] ss:$0 sm:$0xff] }
  0x26   : > { %401 = vmatpush.bf16.msra.mxu0 %v875_v8  ;;  %565 = vmatpush.bf16.msra.mxu2 %v892_v20 }
  0x27   : > { %483 = vmatpush.bf16.msra.mxu1 %v883_v9  ;;  %647 = vmatpush.bf16.msra.mxu3 %v901_v32 }
  0x2a   : > { %402 = vmatpush.bf16.msra.mxu0 %v874_v10  ;;  %566 = vmatpush.bf16.msra.mxu2 %v891_v21 }
  0x2b   : > { %484 = vmatpush.bf16.msra.mxu1 %v882_v11  ;;  %648 = vmatpush.bf16.msra.mxu3 %v900_v33 }
  0x2e   : > { %403 = vmatpush.bf16.msra.mxu0 %v873_v12  ;;  %567 = vmatpush.bf16.msra.mxu2 %v890_v22 }
  0x2f   : > { %485 = vmatpush.bf16.msra.mxu1 %v881_v13  ;;  %649 = vmatpush.bf16.msra.mxu3 %v899_v34 }
  0x32   : > { %404 = vmatpush.bf16.msra.mxu0 %v872_v14  ;;  %568 = vmatpush.bf16.msra.mxu2 %v889_v28 }
  0x33   : > { %486 = vmatpush.bf16.msra.mxu1 %v880_v16  ;;  %650 = vmatpush.bf16.msra.mxu3 %v898_v35 }
  0x35   : > { %405 = vmatmul.bf16.vlgmr.msra.gmra.mxu0 %v328_v15 }
  0x36   : > { %569 = vmatpush.bf16.msra.mxu2 %v888_v29 }
  0x37   : > { %651 = vmatpush.bf16.msra.mxu3 %v897_v42 }
  0x3b   : > { %652 = vmatpush.bf16.msra.mxu3 %v896_v43 }
  0xb2   : > { %v406_v24 = vpop.f32.mrf.mxu0 }
  0xb3   : > { %v407_v25 = vadd.f32 %v943_v23, %v406_v24 }
  0xb5   : > { %v410_v26 = vpack.c.bf16 %v407_v25, %v407_v25 }
  0xb7   : > { %487 = vmatmul.bf16.vlgmr.msra.gmra.mxu1 %v410_v26 }
  0xba   : > { %v408_v27 = vpop.f32.mrf.mxu0 }
 0x134   : > { %v488_v37 = vpop.f32.mrf.mxu1 }
 0x135   : > { %v489_v38 = vadd.f32 %v944_v36, %v488_v37 }
 0x137   : > { %v492_v39 = vmax.f32 %v489_v38, 0.0 }
 0x139   : > { %v493_v40 = vpack.c.bf16 %v492_v39, %v492_v39 }
 0x13b   : > { %570 = vmatmul.bf16.vlgmr.msra.gmra.mxu2 %v493_v40 }
 0x13c   : > { %v490_v41 = vpop.f32.mrf.mxu1 }
 0x1be   : > { %v571_v45 = vpop.f32.mrf.mxu2 }
 0x1bf   : > { %v572_v46 = vadd.f32 %v945_v44, %v571_v45 }
 0x1c1   : > { %v575_v47 = vadd.f32 %v572_v46, %v407_v25 }
 0x1c3   : > { %v576_v48 = vpack.c.bf16 %v575_v47, %v575_v47 }
 0x1c5   : > { %653 = vmatmul.bf16.vlgmr.msra.gmra.mxu3 %v576_v48 }
 0x1c6   : > { %v573_v49 = vpop.f32.mrf.mxu2 }
 0x248   : > { %v654_v51 = vpop.f32.mrf.mxu3 }
 0x249   : > { %v655_v52 = vadd.f32 %v946_v50, %v654_v51 }
 0x24b   : > { %658 = vst [vmem:[%s323_s21] sm:$0xff] %v655_v52 }
 0x24c   : > { %974 = shalt.err (!%p971_p3)
}
 0x24d   : > { %904 = dma.vmem_to_hbm [thread:$0]  (%p1099_p5), %s673_s16, 128, %s675_s22, %s660_s23  }
 0x250   : > { %v656_v53 = vpop.f32.mrf.mxu3 }
 0x251 PF: > { %p910_p4 = scmp.ge.s32.totalorder %s1009_s12, 2  ;;  %s686_s25 = sand.u32 1, %s997_s30  }
 0x252   : > { %s687_s29 = scalar_lea.sflag [#allocation3], %s686_s25 }
 0x253   : > { %p907_p7 = pnand %p910_p4, %p1103_p6 }
 0x255   : > { %p908_p8 = pneg %p907_p7 }
 0x257   : > { %992 = dma.done.wait (%p908_p8), %s687_s29, 128  }
 0x258   : > { %994 = vsyncadd (%p908_p8), %s687_s29, 4294967168  ;;  %p19_p9 = scmp.ge.s32.totalorder %s1086_s15, 4   ;;  %s1268_s30 = smov %s1001_s10 }
 0x259   : > { %s1269_s10 = smov %s1005_s11  ;;  %s1270_s11 = smov %s1097_s18 }
 0x25a   : > { %s1271_s12 = smov %s1086_s15  ;;  %21 = sbr.rel (!%p19_p9) target bundleno = 5 (0x5), region = 91 }
 0x25f   :  { %693 = vsyncpa [#allocation3], 1 }
 0x260   :  { %695 = vsyncpa [#allocation3 + $0x1], 1 }

// kernel: adapter_vgg_transformer_forward.10
= control target key start
LH: loop header
LB: loop body
LE: loop exit
PB: predicated region body
PF: predicated region fallthrough
CT: control target
= control target key end

     0   :  { %s893_s24 = smov 0   ;;  %s1077_s0 = inlined_call_operand.vmem [shape: bf16[2,8,128], index: 0, kind: input, shape index: {}]   ;;  %s1078_s1 = inlined_call_operand.vmem [shape: bf16[128,256], index: 1, kind: input, shape index: {}]   ;;  %s1079_s2 = inlined_call_operand.vmem [shape: f32[1,256], index: 2, kind: input, shape index: {}]   ;;  %s1080_s3 = inlined_call_operand.vmem [shape: bf16[256,128], index: 3, kind: input, shape index: {}]   ;;  %s1081_s4 = inlined_call_operand.vmem [shape: f32[1,128], index: 4, kind: input, shape index: {}]   ;;  %s1082_s5 = inlined_call_operand.vmem [shape: f32[1,128], index: 5, kind: input, shape index: {}]   ;;  %s1083_s6 = inlined_call_operand.vmem [shape: f32[1,128], index: 6, kind: input, shape index: {}]   ;;  %s1084_s7 = inlined_call_operand.vmem [shape: bf16[2,8,128], index: 7, kind: output, shape index: {}]  }
   0x1 LB: > { %s659_s25 = sadd.s32 4294967295, %s850_s24   ;;  %p663_p0 = scmp.ge.s32.totalorder %s850_s24, 1  ;;  %s850_s24 = sphi %s893_s24, %s17_s24  }
   0x2   : > { %p236_p1 = scmp.lt.s32.totalorder %s850_s24, 3 }
   0x4   : > { %p237_p2 = pnand %p663_p0, %p236_p1 }
   0x5   : > { %p266_p3 = scmp.lt.s32.totalorder (!%p237_p2), %s659_s25, 1 }
   0x6   : > { %240 = sbr.rel (%p237_p2) target bundleno = 584 (0x248), region = 48 }
   0xb   : > { %v724_v0 = vld [vmem:[%s1078_s1 + $0x70] sm:$0xf]  ;;  %v811_v1 = vld [vmem:[%s1078_s1 + $0x74] sm:$0xf0]  ;;  %v810_v2 = vld [vmem:[%s1078_s1 + $0x74] sm:$0xf] }
   0xc   : > { %v725_v3 = vor.u32 %v811_v1, %v724_v0  ;;  %v726_v4 = vld [vmem:[%s1078_s1 + $0x78] sm:$0xf0]  ;;  %v716_v5 = vld [vmem:[%s1078_s1 + $0x60] sm:$0xf]  ;;  %v809_v6 = vld [vmem:[%s1078_s1 + $0x64] sm:$0xf0] }
   0xd   : > { %v729_v7 = vor.u32 %v810_v2, %v726_v4  ;;  %v808_v8 = vld [vmem:[%s1078_s1 + $0x64] sm:$0xf]  ;;  %v718_v9 = vld [vmem:[%s1078_s1 + $0x68] sm:$0xf0]  ;;  %v717_v10 = vor.u32 %v809_v6, %v716_v5  ;;  %v708_v12 = vld [vmem:[%s1078_s1 + $0x50] sm:$0xf] }
   0xe   : > { %377 = vmatpush.bf16.msra.mxu0 %v725_v3  ;;  %v721_v11 = vor.u32 %v808_v8, %v718_v9  ;;  %v807_v13 = vld [vmem:[%s1078_s1 + $0x54] sm:$0xf0]  ;;  %v806_v14 = vld [vmem:[%s1078_s1 + $0x54] sm:$0xf]  ;;  %v710_v15 = vld [vmem:[%s1078_s1 + $0x58] sm:$0xf0] }
   0xf   : > { %390 = vmatpush.bf16.msra.mxu1 %v729_v7  ;;  %v709_v16 = vor.u32 %v807_v13, %v708_v12  ;;  %v713_v17 = vor.u32 %v806_v14, %v710_v15  ;;  %v700_v18 = vld [vmem:[%s1078_s1 + $0x40] sm:$0xf]  ;;  %v805_v19 = vld [vmem:[%s1078_s1 + $0x44] sm:$0xf0]  ;;  %v804_v20 = vld [vmem:[%s1078_s1 + $0x44] sm:$0xf] }
  0x10   : > { %v702_v21 = vld [vmem:[%s1078_s1 + $0x48] sm:$0xf0]  ;;  %v819_v22 = vld [vmem:[%s1080_s3 + $0x38] sm:$0xff]  ;;  %v701_v23 = vor.u32 %v805_v19, %v700_v18  ;;  %v692_v26 = vld [vmem:[%s1078_s1 + $0x30] sm:$0xf]  ;;  %s1086_s25 = smov (!%p266_p3, %s659_s25), 1 }
  0x11   : > { %v827_v24 = vld [vmem:[%s1080_s3 + $0x78] sm:$0xff]  ;;  %v705_v25 = vor.u32 %v804_v20, %v702_v21  ;;  %539 = vmatpush.bf16.msra.mxu2 %v819_v22  ;;  %v818_v28 = vld [vmem:[%s1080_s3 + $0x30] sm:$0xff]  ;;  %v684_v33 = vld [vmem:[%s1078_s1 + $0x20] sm:$0xf]  ;;  %s664_s22 = sshll.u32 %s1086_s25, 2 }
  0x12   : > { %378 = vmatpush.bf16.msra.mxu0 %v717_v10  ;;  %v803_v27 = vld [vmem:[%s1078_s1 + $0x34] sm:$0xf0]  ;;  %v802_v29 = vld [vmem:[%s1078_s1 + $0x34] sm:$0xf]  ;;  %v694_v30 = vld [vmem:[%s1078_s1 + $0x38] sm:$0xf0]  ;;  %552 = vmatpush.bf16.msra.mxu3 %v827_v24  ;;  %s269_s29 = scalar_lea.vmem %s1077_s0, %s664_s22  ;;  %s273_s9 = scalar_lea.vmem %s1084_s7, %s664_s22 }
  0x13   : > { %391 = vmatpush.bf16.msra.mxu1 %v721_v11  ;;  %v826_v31 = vld [vmem:[%s1080_s3 + $0x70] sm:$0xff]  ;;  %v693_v32 = vor.u32 %v803_v27, %v692_v26  ;;  %v697_v34 = vor.u32 %v802_v29, %v694_v30  ;;  %v801_v35 = vld [vmem:[%s1078_s1 + $0x24] sm:$0xf0]  ;;  %v800_v37 = vld [vmem:[%s1078_s1 + $0x24] sm:$0xf] }
  0x14   : > { %v817_v36 = vld [vmem:[%s1080_s3 + $0x28] sm:$0xff]  ;;  %v685_v40 = vor.u32 %v801_v35, %v684_v33  ;;  %v676_v42 = vld [vmem:[%s1078_s1 + $0x10] sm:$0xf]  ;;  %v799_v43 = vld [vmem:[%s1078_s1 + $0x14] sm:$0xf0] }
  0x15   : > { %540 = vmatpush.bf16.msra.mxu2 %v818_v28  ;;  %v686_v38 = vld [vmem:[%s1078_s1 + $0x28] sm:$0xf0]  ;;  %v816_v44 = vld [vmem:[%s1080_s3 + $0x20] sm:$0xff]  ;;  %v798_v45 = vld [vmem:[%s1078_s1 + $0x14] sm:$0xf]  ;;  %v677_v48 = vor.u32 %v799_v43, %v676_v42 }
  0x16   : > { %379 = vmatpush.bf16.msra.mxu0 %v709_v16  ;;  %553 = vmatpush.bf16.msra.mxu3 %v826_v31  ;;  %v825_v39 = vld [vmem:[%s1080_s3 + $0x68] sm:$0xff]  ;;  %v689_v41 = vor.u32 %v800_v37, %v686_v38  ;;  %v678_v46 = vld [vmem:[%s1078_s1 + $0x18] sm:$0xf0]  ;;  %v824_v47 = vld [vmem:[%s1080_s3 + $0x60] sm:$0xff] }
  0x17   : > { %392 = vmatpush.bf16.msra.mxu1 %v713_v17  ;;  %v681_v49 = vor.u32 %v798_v45, %v678_v46  ;;  %v668_v50 = vld [vmem:[%s1078_s1] sm:$0xf]  ;;  %v797_v51 = vld [vmem:[%s1078_s1 + $0x4] sm:$0xf0]  ;;  %v815_v52 = vld [vmem:[%s1080_s3 + $0x18] sm:$0xff] }
  0x18   : > { %v796_v53 = vld [vmem:[%s1078_s1 + $0x4] sm:$0xf]  ;;  %v670_v54 = vld [vmem:[%s1078_s1 + $0x8] sm:$0xf0]  ;;  %v823_v55 = vld [vmem:[%s1080_s3 + $0x58] sm:$0xff]  ;;  %v669_v56 = vor.u32 %v797_v51, %v668_v50 }
  0x19   : > { %541 = vmatpush.bf16.msra.mxu2 %v817_v36  ;;  %v673_v57 = vor.u32 %v796_v53, %v670_v54  ;;  %v814_v58 = vld [vmem:[%s1080_s3 + $0x10] sm:$0xff]  ;;  %v274_v60 = vld [vmem:[%s269_s29] sm:$0xf]  ;;  %v813_v61 = vld [vmem:[%s1080_s3 + $0x8] sm:$0xff] }
  0x1a   : > { %380 = vmatpush.bf16.msra.mxu0 %v701_v23  ;;  %554 = vmatpush.bf16.msra.mxu3 %v825_v39  ;;  %v822_v59 = vld [vmem:[%s1080_s3 + $0x50] sm:$0xff]  ;;  %v821_v62 = vld [vmem:[%s1080_s3 + $0x48] sm:$0xff]  ;;  %v812_v63 = vld [vmem:[%s1080_s3] sm:$0xff]  ;;  %v565_v18 = vunpack.c.l.bf16 %v274_v60  ;;  %v852_v23 = vmov 128.0  }
  0x1b   : > { %393 = vmatpush.bf16.msra.mxu1 %v705_v25  ;;  %v820_v0 = vld [vmem:[%s1080_s3 + $0x40] sm:$0xff]  ;;  %840 = vrcp.f32 %v852_v23 }
  0x1c   : > { %v291_v1 = vld [vmem:[%s1079_s2] sm:$0x3] }
  0x1d   : > { %542 = vmatpush.bf16.msra.mxu2 %v816_v44  ;;  %v293_v2 = vperm.slane %v291_v1, 0  ;;  %v294_v3 = vperm.slane %v291_v1, 1  ;;  %v837_v14 = vld [vmem:[%s1081_s4] ss:$0 sm:$0xff] }
  0x1e   : > { %381 = vmatpush.bf16.msra.mxu0 %v693_v32  ;;  %555 = vmatpush.bf16.msra.mxu3 %v824_v47  ;;  %v838_v43 = vld [vmem:[%s1082_s5] ss:$0 sm:$0xff] }
  0x1f   : > { %394 = vmatpush.bf16.msra.mxu1 %v697_v34  ;;  %v839_v45 = vld [vmem:[%s1083_s6] ss:$0 sm:$0xff] }
  0x21   : > { %543 = vmatpush.bf16.msra.mxu2 %v815_v52  ;;  %v841_v24 = vpop.eup %840 }
  0x22   : > { %382 = vmatpush.bf16.msra.mxu0 %v685_v40  ;;  %556 = vmatpush.bf16.msra.mxu3 %v823_v55  ;;  %v570_v25 = vmul.f32 128.0, %v841_v24  ;;  %vm574_vm0 = vweird.f32 %v841_v24 }
  0x23   : > { %395 = vmatpush.bf16.msra.mxu1 %v689_v41 }
  0x24   : > { %v571_v26 = vsub.f32 1.0, %v570_v25 }
  0x25   : > { %544 = vmatpush.bf16.msra.mxu2 %v814_v58 }
  0x26   : > { %383 = vmatpush.bf16.msra.mxu0 %v677_v48  ;;  %557 = vmatpush.bf16.msra.mxu3 %v822_v59  ;;  %v572_v27 = vmul.f32 %v841_v24, %v571_v26 }
  0x27   : > { %396 = vmatpush.bf16.msra.mxu1 %v681_v49 }
  0x28   : > { %v573_v28 = vadd.f32 %v841_v24, %v572_v27 }
  0x29   : > { %545 = vmatpush.bf16.msra.mxu2 %v813_v61 }
  0x2a   : > { %384 = vmatpush.bf16.msra.mxu0 %v669_v56  ;;  %558 = vmatpush.bf16.msra.mxu3 %v821_v62  ;;  %v575_v29 = vsel %vm574_vm0, %v841_v24, %v573_v28 }
  0x2b   : > { %397 = vmatpush.bf16.msra.mxu1 %v673_v57 }
  0x2d   : > { %385 = vmatmul.bf16.vlgmr.msra.gmra.mxu0 %v274_v60  ;;  %546 = vmatpush.bf16.msra.mxu2 %v812_v63 }
  0x2e   : > { %398 = vmatmul.bf16.vlgmr.msra.gmra.mxu1 %v274_v60  ;;  %559 = vmatpush.bf16.msra.mxu3 %v820_v0 }
  0xaa   : > { %v386_v4 = vpop.f32.mrf.mxu0 }
  0xab   : > { %v387_v5 = vadd.f32 %v386_v4, %v293_v2  ;;  %v399_v6 = vpop.f32.mrf.mxu1 }
  0xac   : > { %v400_v7 = vadd.f32 %v399_v6, %v294_v3 }
  0xad   : > { %v403_v8 = vmax.f32 %v387_v5, 0.0 }
  0xae   : > { %v404_v9 = vmax.f32 %v400_v7, 0.0 }
  0xaf   : > { %v405_v10 = vpack.c.bf16 %v403_v8, %v403_v8 }
  0xb0   : > { %v406_v11 = vpack.c.bf16 %v404_v9, %v404_v9 }
  0xb1   : > { %547 = vmatmul.bf16.vlgmr.msra.gmra.mxu2 %v405_v10 }
  0xb2   : > { %560 = vmatmul.bf16.vlgmr.msra.gmra.mxu3 %v406_v11  ;;  %v388_v12 = vpop.f32.mrf.mxu0 }
  0xb3   : > { %v401_v13 = vpop.f32.mrf.mxu1 }
 0x134   : > { %v548_v15 = vpop.f32.mrf.mxu2 }
 0x135   : > { %v549_v16 = vadd.f32 %v837_v14, %v548_v15  ;;  %v561_v17 = vpop.f32.mrf.mxu3 }
 0x137   : > { %v562_v19 = vadd.f32 %v561_v17, %v549_v16 }
 0x139   : > { %v566_v20 = vadd.f32 %v565_v18, %v562_v19 }
 0x13b   : > { %567 = vadd.xlane.f32.xlu0 %v566_v20 }
 0x13c   : > { %v550_v21 = vpop.f32.mrf.mxu2 }
 0x13d   : > { %v563_v22 = vpop.f32.mrf.mxu3 }
 0x1ae   : > { %v568_v30 = vpop.xlane.xlu0 %567 }
 0x1af   : > { %v576_v31 = vmul.f32 %v575_v29, %v568_v30 }
 0x1b1   : > { %v577_v32 = vsub.f32 %v566_v20, %v576_v31 }
 0x1b3   : > { %v578_v33 = vmul.f32 %v577_v32, %v577_v32 }
 0x1b5   : > { %579 = vadd.xlane.f32.xlu0 %v578_v33 }
 0x228   : > { %v580_v34 = vpop.xlane.xlu0 %579 }
 0x229   : > { %v581_v35 = vmul.f32 %v580_v34, %v575_v29 }
 0x22b   : > { %v582_v36 = vadd.f32 1e-05, %v581_v35 }
 0x22d   : > { %842 = vrsqrt.f32 %v582_v36  ;;  %vm589_vm2 = vweird.f32 %v582_v36 }
 0x233   : > { %v843_v37 = vpop.eup %842 }
 0x234   : > { %v584_v38 = vmul.f32 %v843_v37, %v582_v36  ;;  %vm590_vm1 = vweird.f32 %v843_v37 }
 0x235   : > { %vm591_vm3 = vmor %vm589_vm2, %vm590_vm1 }
 0x236   : > { %v585_v39 = vmul.f32 %v843_v37, %v584_v38 }
 0x238   : > { %v586_v40 = vmul.f32 0.5, %v585_v39 }
 0x23a   : > { %v587_v41 = vsub.f32 1.5, %v586_v40 }
 0x23c   : > { %v588_v42 = vmul.f32 %v843_v37, %v587_v41 }
 0x23e   : > { %v592_v44 = vsel %vm591_vm3, %v843_v37, %v588_v42 }
 0x23f   : > { %v593_v46 = vmul.f32 %v592_v44, %v577_v32 }
 0x241   : > { %v598_v47 = vmul.f32 %v838_v43, %v593_v46 }
 0x243   : > { %v603_v48 = vadd.f32 %v839_v45, %v598_v47 }
 0x245   : > { %v604_v49 = vpack.c.bf16 %v603_v48, %v603_v48 }
 0x247   : > { %605 = vst [vmem:[%s273_s9] sm:$0xf] %v604_v49 }
 0x248 PF: > { %s17_s24 = sadd.s32 1, %s850_s24  }
 0x249   : > { %p14_p4 = scmp.ge.s32.totalorder %s17_s24, 4  }
 0x24b   :  { %16 = sbr.rel (!%p14_p4) target bundleno = 1 (0x1), region = 78 }

// kernel: adapter_vgg_transformer_forward.9
= control target key start
LH: loop header
LB: loop body
LE: loop exit
PB: predicated region body
PF: predicated region fallthrough
CT: control target
= control target key end

     0   :  { %s1306_s13 = smov 0   ;;  %s1543_s0 = inlined_call_operand.vmem [shape: bf16[2,8,128], index: 0, kind: input, shape index: {}]   ;;  %s1544_s1 = inlined_call_operand.vmem [shape: bf16[2,16,128], index: 1, kind: input, shape index: {}]   ;;  %s1545_s2 = inlined_call_operand.vmem [shape: bf16[128,128], index: 2, kind: input, shape index: {}]   ;;  %s1546_s3 = inlined_call_operand.vmem [shape: f32[1,128], index: 3, kind: input, shape index: {}]   ;;  %s1547_s4 = inlined_call_operand.vmem [shape: bf16[128,256], index: 4, kind: input, shape index: {}]   ;;  %s1548_s5 = inlined_call_operand.vmem [shape: f32[1,256], index: 5, kind: input, shape index: {}]   ;;  %s1549_s6 = inlined_call_operand.vmem [shape: bf16[128,128], index: 6, kind: input, shape index: {}]   ;;  %s1550_s7 = inlined_call_operand.vmem [shape: f32[1,128], index: 7, kind: input, shape index: {}]   ;;  %s1551_s8 = inlined_call_operand.vmem [shape: f32[1,128], index: 8, kind: input, shape index: {}]   ;;  %s1552_s9 = inlined_call_operand.vmem [shape: f32[1,128], index: 9, kind: input, shape index: {}]   ;;  %s1553_s10 = inlined_call_operand.vmem [shape: bf16[2,8,128], index: 10, kind: output, shape index: {}]  }
   0x1 LB: > { %s1018_s14 = sadd.s32 4294967295, %s1245_s13   ;;  %p1022_p0 = scmp.ge.s32.totalorder %s1245_s13, 1  ;;  %s1245_s13 = sphi %s1306_s13, %s20_s13  }
   0x2   : > { %p321_p1 = scmp.lt.s32.totalorder %s1245_s13, 3 }
   0x4   : > { %p322_p2 = pnand %p1022_p0, %p321_p1 }
   0x5   : > { %p362_p3 = scmp.lt.s32.totalorder (!%p322_p2), %s1018_s14, 1  ;;  %s1247_s18 = smov (!%p322_p2), 64  }
   0x6   : > { %325 = sbr.rel (%p322_p2) target bundleno = 1659 (0x67b), region = 60  ;;  %s1248_s19 = smov (!%p322_p2), 96  }
   0x7   : > { %s1249_s20 = smov (!%p322_p2), 32  }
   0xb   : > { %v1121_v0 = vld [vmem:[%s1547_s4 + $0x70] sm:$0xf]  ;;  %v1194_v1 = vld [vmem:[%s1547_s4 + $0x74] sm:$0xf0]  ;;  %v1113_v2 = vld [vmem:[%s1547_s4 + $0x60] sm:$0xf] }
   0xc   : > { %v1122_v3 = vor.u32 %v1194_v1, %v1121_v0  ;;  %v1192_v4 = vld [vmem:[%s1547_s4 + $0x64] sm:$0xf0]  ;;  %v1178_v5 = vld [vmem:[%s1545_s2 + $0x38] sm:$0xff]  ;;  %v1177_v7 = vld [vmem:[%s1545_s2 + $0x30] sm:$0xff]  ;;  %s1555_s14 = smov (!%p362_p3, %s1018_s14), 1  ;;  %vm599_vm0 = vcmask 261120  }
   0xd   : > { %v1114_v6 = vor.u32 %v1192_v4, %v1113_v2  ;;  %447 = vmatpush.bf16.msra.mxu0 %v1178_v5  ;;  %v1105_v8 = vld [vmem:[%s1547_s4 + $0x50] sm:$0xf]  ;;  %v1190_v9 = vld [vmem:[%s1547_s4 + $0x54] sm:$0xf0]  ;;  %v1176_v11 = vld [vmem:[%s1545_s2 + $0x28] sm:$0xff]  ;;  %s1169_s27 = sshll.u32 %s1555_s14, 3 }
   0xe   : > { %568 = vmatpush.bf16.msra.mxu1 %v1122_v3  ;;  %v1106_v10 = vor.u32 %v1190_v9, %v1105_v8  ;;  %v1097_v12 = vld [vmem:[%s1547_s4 + $0x40] sm:$0xf]  ;;  %v1188_v13 = vld [vmem:[%s1547_s4 + $0x44] sm:$0xf0]  ;;  %v1193_v14 = vld [vmem:[%s1547_s4 + $0x74] sm:$0xf]  ;;  %s370_s17 = scalar_lea.vmem %s1544_s1, %s1169_s27 }
   0xf   : > { %v1123_v15 = vld [vmem:[%s1547_s4 + $0x78] sm:$0xf0]  ;;  %v1191_v16 = vld [vmem:[%s1547_s4 + $0x64] sm:$0xf]  ;;  %v1115_v17 = vld [vmem:[%s1547_s4 + $0x68] sm:$0xf0]  ;;  %v1098_v19 = vor.u32 %v1188_v13, %v1097_v12 }
  0x10   : > { %v1126_v18 = vor.u32 %v1193_v14, %v1123_v15  ;;  %v1175_v20 = vld [vmem:[%s1545_s2 + $0x20] sm:$0xff]  ;;  %v1089_v21 = vld [vmem:[%s1547_s4 + $0x30] sm:$0xf]  ;;  %v1186_v22 = vld [vmem:[%s1547_s4 + $0x34] sm:$0xf0]  ;;  %v1118_v23 = vor.u32 %v1191_v16, %v1115_v17  ;;  %s1023_s28 = sshll.u32 %s1555_s14, 2 }
  0x11   : > { %448 = vmatpush.bf16.msra.mxu0 %v1177_v7  ;;  %v1189_v24 = vld [vmem:[%s1547_s4 + $0x54] sm:$0xf]  ;;  %v1107_v25 = vld [vmem:[%s1547_s4 + $0x58] sm:$0xf0]  ;;  %v1090_v26 = vor.u32 %v1186_v22, %v1089_v21  ;;  %v1081_v28 = vld [vmem:[%s1547_s4 + $0x20] sm:$0xf]  ;;  %s365_s22 = scalar_lea.vmem %s1543_s0, %s1023_s28  ;;  %s374_s29 = scalar_lea.vmem %s1553_s10, %s1023_s28 }
  0x12   : > { %569 = vmatpush.bf16.msra.mxu1 %v1114_v6  ;;  %582 = vmatpush.bf16.msra.mxu2 %v1126_v18  ;;  %v1174_v27 = vld [vmem:[%s1545_s2 + $0x18] sm:$0xff]  ;;  %v1184_v29 = vld [vmem:[%s1547_s4 + $0x24] sm:$0xf0]  ;;  %v1110_v30 = vor.u32 %v1189_v24, %v1107_v25  ;;  %v1187_v31 = vld [vmem:[%s1547_s4 + $0x44] sm:$0xf]  ;;  %vm619_vm1 = vcmask 130048  }
  0x13   : > { %v1099_v32 = vld [vmem:[%s1547_s4 + $0x48] sm:$0xf0]  ;;  %v1082_v33 = vor.u32 %v1184_v29, %v1081_v28  ;;  %v1173_v34 = vld [vmem:[%s1545_s2 + $0x10] sm:$0xff]  ;;  %v1182_v36 = vld [vmem:[%s1547_s4 + $0x14] sm:$0xf0]  ;;  %vm826_vm2 = vcmask 523264  }
  0x14   : > { %v1073_v35 = vld [vmem:[%s1547_s4 + $0x10] sm:$0xf]  ;;  %v1102_v37 = vor.u32 %v1187_v31, %v1099_v32  ;;  %v1185_v38 = vld [vmem:[%s1547_s4 + $0x34] sm:$0xf]  ;;  %v1091_v39 = vld [vmem:[%s1547_s4 + $0x38] sm:$0xf0] }
  0x15   : > { %449 = vmatpush.bf16.msra.mxu0 %v1176_v11  ;;  %v1074_v40 = vor.u32 %v1182_v36, %v1073_v35  ;;  %v1172_v41 = vld [vmem:[%s1545_s2 + $0x8] sm:$0xff]  ;;  %v1065_v42 = vld [vmem:[%s1547_s4] sm:$0xf]  ;;  %v1094_v44 = vor.u32 %v1185_v38, %v1091_v39  ;;  %v1183_v45 = vld [vmem:[%s1547_s4 + $0x24] sm:$0xf]  ;;  %vm828_vm3 = vcmask 785408  }
  0x16   : > { %570 = vmatpush.bf16.msra.mxu1 %v1106_v10  ;;  %583 = vmatpush.bf16.msra.mxu2 %v1118_v23  ;;  %v1180_v43 = vld [vmem:[%s1547_s4 + $0x4] sm:$0xf0]  ;;  %v1083_v46 = vld [vmem:[%s1547_s4 + $0x28] sm:$0xf0]  ;;  %v1171_v48 = vld [vmem:[%s1545_s2] sm:$0xff] }
  0x17   : > { %v1066_v47 = vor.u32 %v1180_v43, %v1065_v42  ;;  %v1086_v49 = vor.u32 %v1183_v45, %v1083_v46  ;;  %v1181_v50 = vld [vmem:[%s1547_s4 + $0x14] sm:$0xf]  ;;  %v1075_v51 = vld [vmem:[%s1547_s4 + $0x18] sm:$0xf0]  ;;  %v1170_v52 = vld [vmem:[%s370_s17] sm:$0xff] }
  0x18   : > { %v1444_v53 = vld [vmem:[%s365_s22] sm:$0xf]  ;;  %v1078_v54 = vor.u32 %v1181_v50, %v1075_v51  ;;  %v1179_v55 = vld [vmem:[%s1547_s4 + $0x4] sm:$0xf]  ;;  %v1067_v56 = vld [vmem:[%s1547_s4 + $0x8] sm:$0xf0] }
  0x19   : > { %450 = vmatpush.bf16.msra.mxu0 %v1175_v20  ;;  %v1070_v57 = vor.u32 %v1179_v55, %v1067_v56  ;;  %v476_v60 = vld [vmem:[%s1548_s5] sm:$0x3] }
  0x1a   : > { %571 = vmatpush.bf16.msra.mxu1 %v1098_v19  ;;  %584 = vmatpush.bf16.msra.mxu2 %v1110_v30  ;;  %v478_v61 = vperm.slane %v476_v60, 0  ;;  %v1215_v1 = vld [vmem:[%s1546_s3] ss:$0 sm:$0xff]  ;;  %v479_v8 = vperm.slane %v476_v60, 1 }
  0x1d   : > { %451 = vmatpush.bf16.msra.mxu0 %v1174_v27 }
  0x1e   : > { %572 = vmatpush.bf16.msra.mxu1 %v1090_v26  ;;  %585 = vmatpush.bf16.msra.mxu2 %v1102_v37 }
  0x21   : > { %452 = vmatpush.bf16.msra.mxu0 %v1173_v34 }
  0x22   : > { %573 = vmatpush.bf16.msra.mxu1 %v1082_v33  ;;  %586 = vmatpush.bf16.msra.mxu2 %v1094_v44 }
  0x25   : > { %453 = vmatpush.bf16.msra.mxu0 %v1172_v41 }
  0x26   : > { %574 = vmatpush.bf16.msra.mxu1 %v1074_v40  ;;  %587 = vmatpush.bf16.msra.mxu2 %v1086_v49 }
  0x29   : > { %454 = vmatpush.bf16.msra.mxu0 %v1171_v48 }
  0x2a   : > { %575 = vmatpush.bf16.msra.mxu1 %v1066_v47  ;;  %588 = vmatpush.bf16.msra.mxu2 %v1078_v54 }
  0x2c   : > { %455 = vmatmul.bf16.vlgmr.msra.gmra.mxu0 %v1444_v53 }
  0x2d   : > { %576 = vmatmul.bf16.vlgmr.msra.gmra.mxu1 %v1170_v52 }
  0x2e   : > { %589 = vmatpush.bf16.msra.mxu2 %v1070_v57 }
  0x31   : > { %590 = vmatmul.bf16.vlgmr.msra.gmra.mxu2 %v1170_v52 }
  0xa9   : > { %v456_v59 = vpop.f32.mrf.mxu0 }
  0xaa   : > { %v577_v58 = vpop.f32.mrf.mxu1  ;;  %v457_v4 = vadd.f32 %v1215_v1, %v456_v59 }
  0xab   : > { %v578_v0 = vadd.f32 %v577_v58, %v478_v61 }
  0xac   : > { %v596_v6 = vpack.c.bf16 %v457_v4, %v457_v4 }
  0xb1   : > { %v458_v63 = vpop.f32.mrf.mxu0 }
  0xb2   : > { %v579_v62 = vpop.f32.mrf.mxu1 }
  0xb3   : > { %v580_v2 = vadd.f32 %v579_v62, %v478_v61 }
  0xb4   : > { %v591_v7 = vpop.f32.mrf.mxu2 }
  0xb5   : > { %v597_v3 = vpack.c.bf16 %v580_v2, %v578_v0  ;;  %v592_v9 = vadd.f32 %v591_v7, %v479_v8 }
  0xb7   : > { %707 = vrot.lane.b32.xlu2 %v597_v3, %s1247_s18  ;;  %652 = vrot.lane.b32.xlu1 %v597_v3, %s1248_s19  ;;  %v604_v5 = vsel %vm599_vm0, %v597_v3, 0 }
  0xb8   : > { %613 = vmatpush.bf16.xpose.msra.mxu3 %v604_v5 }
  0xbc   : > { %v593_v10 = vpop.f32.mrf.mxu2 }
  0xbd   : > { %v594_v11 = vadd.f32 %v593_v10, %v479_v8 }
  0xbf   : > { %761 = vrot.lane.b32.xlu2 %v597_v3, %s1249_s20  ;;  %649 = vrot.lane.b32.xlu1 %v596_v6, %s1248_s19  ;;  %v1466_v12 = vpack.c.bf16 %v594_v11, %v592_v9 }
  0xc0   : > { %1127 = vmatmul.msk.bf16.vlgmr.msra.gmra.mxu3 %vm599_vm0, %v596_v6 }
  0xc1   : > { %642 = vmatpush.bf16.msrb.mxu3 %v1466_v12 }
  0xc7   : > { %759 = vrot.lane.b32.xlu1 %v596_v6, %s1249_s20 }
 0x111   : > { %v708_v13 = vpop.permute.xlu2 %707 }
 0x112   : > { %v713_v14 = vsel %vm599_vm0, %v708_v13, 0 }
 0x113   : > { %722 = vmatpush.bf16.xpose.msrb.mxu2 %v713_v14 }
 0x119   : > { %v762_v28 = vpop.permute.xlu2 %761 }
 0x11a   : > { %v767_v30 = vsel %vm599_vm0, %v762_v28, 0 }
 0x129   : > { %v653_v15 = vpop.permute.xlu1 %652 }
 0x12a   : > { %v658_v16 = vsel %vm599_vm0, %v653_v15, 0 }
 0x12b   : > { %667 = vmatpush.bf16.xpose.msra.mxu3 %v658_v16 }
 0x131   : > { %v650_v32 = vpop.permute.xlu1 %649 }
 0x139   : > { %v760_v33 = vpop.permute.xlu1 %759 }
 0x143   : > { %v615_v17 = vpop.f32.mrf.mxu3 }
 0x144   : > { %v620_v18 = vsel %vm619_vm1, %v615_v17, -inf }
 0x145   : > { %621 = vmax.xlane.f32.xlu0 %v620_v18  ;;  %v1202_v18 = vld [vmem:[%s1549_s6 + $0x38] sm:$0xff] }
 0x146   : > { %899 = vmatpush.bf16.msrb.mxu1 %v1202_v18 }
 0x14b   : > { %v617_v19 = vpop.f32.mrf.mxu3 }
 0x14c   : > { %v1201_v19 = vld [vmem:[%s1549_s6 + $0x30] sm:$0xff] }
 0x14d   : > { %900 = vmatpush.bf16.msrb.mxu1 %v1201_v19 }
 0x1b8   : > { %v622_v20 = vpop.xlane.xlu0 %621 }
 0x1b9   : > { %v623_v21 = vsub.f32 %v615_v17, %v622_v20  ;;  %v1200_v20 = vld [vmem:[%s1549_s6 + $0x28] sm:$0xff] }
 0x1ba   : > { %901 = vmatpush.bf16.msrb.mxu1 %v1200_v20 }
 0x1bb   : > { %v624_v22 = vmul.f32 1.442695, %v623_v21  ;;  %v1199_v21 = vld [vmem:[%s1549_s6 + $0x20] sm:$0xff] }
 0x1bd   : > { %1219 = vpow2.f32 %v624_v22  ;;  %v1198_v22 = vld [vmem:[%s1549_s6 + $0x18] sm:$0xff] }
 0x1be   : > { %902 = vmatpush.bf16.msrb.mxu1 %v1199_v21 }
 0x1c2   : > { %903 = vmatpush.bf16.msrb.mxu1 %v1198_v22 }
 0x1c3   : > { %v1220_v23 = vpop.eup %1219 }
 0x1c4   : > { %v626_v24 = vsel %vm619_vm1, %v1220_v23, 0.0 }
 0x1c5   : > { %627 = vadd.xlane.f32.xlu0 %v626_v24  ;;  %v1196_v24 = vld [vmem:[%s1549_s6 + $0x8] sm:$0xff] }
 0x1d9   : > { %705 = vrot.lane.b32.xlu0 %v596_v6, %s1247_s18 }
 0x238   : > { %v628_v25 = vpop.xlane.xlu0 %627 }
 0x239   : > { %1221 = vrcp.f32 %v628_v25  ;;  %v1195_v25 = vld [vmem:[%s1549_s6] sm:$0xff] }
 0x23f   : > { %v1222_v26 = vpop.eup %1221 }
 0x240   : > { %v630_v27 = vmul.f32 %v1222_v26, %v1220_v23  ;;  %v1197_v23 = vld [vmem:[%s1549_s6 + $0x10] sm:$0xff] }
 0x241   : > { %904 = vmatpush.bf16.msrb.mxu1 %v1197_v23 }
 0x242   : > { %v631_v29 = vpack.c.bf16 %v630_v27, %v630_v27 }
 0x244   : > { %1128 = vmatmul.msk.bf16.vlgmr.msrb.gmra.mxu3 %vm619_vm1, %v631_v29 }
 0x245   : > { %776 = vmatpush.bf16.xpose.msrb.mxu3 %v767_v30  ;;  %905 = vmatpush.bf16.msrb.mxu1 %v1196_v24 }
 0x249   : > { %906 = vmatpush.bf16.msrb.mxu1 %v1195_v25 }
 0x24b   : > { %v706_v31 = vpop.permute.xlu0 %705 }
 0x24c   : > { %1131 = vmatmul.msk.bf16.vlgmr.msrb.gmra.mxu2 %vm599_vm0, %v706_v31 }
 0x254   : > { %1129 = vmatmul.msk.bf16.vlgmr.msra.gmra.mxu3 %vm599_vm0, %v650_v32 }
 0x264   : > { %1133 = vmatmul.msk.bf16.vlgmr.msrb.gmra.mxu3 %vm599_vm0, %v760_v33  ;;  %v1216_v33 = vld [vmem:[%s1550_s7] ss:$0 sm:$0xff] }
 0x2c7   : > { %v1479_v34 = vpop.f32.mrf.mxu3 }
 0x2cf   : > { %v646_v35 = vpop.f32.mrf.mxu3  ;;  %v724_v36 = vpop.f32.mrf.mxu2 }
 0x2d0   : > { %v728_v37 = vsel %vm619_vm1, %v724_v36, -inf  ;;  %v912_v35 = vunpack.c.l.bf16 %v1444_v53 }
 0x2d1   : > { %729 = vmax.xlane.f32.xlu1 %v728_v37 }
 0x2d7   : > { %v669_v38 = vpop.f32.mrf.mxu3  ;;  %v726_v39 = vpop.f32.mrf.mxu2 }
 0x2d8   : > { %v673_v40 = vsel %vm619_vm1, %v669_v38, -inf }
 0x2d9   : > { %674 = vmax.xlane.f32.xlu2 %v673_v40  ;;  %v1250_v40 = vmov 128.0  }
 0x2df   : > { %v671_v41 = vpop.f32.mrf.mxu3 }
 0x2e7   : > { %v778_v42 = vpop.f32.mrf.mxu3 }
 0x2e8   : > { %v782_v43 = vsel %vm619_vm1, %v778_v42, -inf }
 0x2e9   : > { %783 = vmax.xlane.f32.xlu0 %v782_v43 }
 0x2ef   : > { %v780_v44 = vpop.f32.mrf.mxu3 }
 0x2fd   : > { %740 = vrot.lane.b32.xlu0 %v1466_v12, %s1247_s18 }
 0x344   : > { %v730_v45 = vpop.xlane.xlu1 %729 }
 0x345   : > { %v731_v46 = vsub.f32 %v724_v36, %v730_v45 }
 0x347   : > { %v732_v47 = vmul.f32 1.442695, %v731_v46 }
 0x349   : > { %1223 = vpow2.f32 %v732_v47 }
 0x34c   : > { %v675_v48 = vpop.xlane.xlu2 %674 }
 0x34d   : > { %v676_v49 = vsub.f32 %v669_v38, %v675_v48 }
 0x34f   : > { %v1224_v50 = vpop.eup %1223  ;;  %v677_v51 = vmul.f32 1.442695, %v676_v49 }
 0x350   : > { %v734_v52 = vsel %vm619_vm1, %v1224_v50, 0.0 }
 0x351   : > { %1225 = vpow2.f32 %v677_v51  ;;  %735 = vadd.xlane.f32.xlu1 %v734_v52 }
 0x357   : > { %v1226_v54 = vpop.eup %1225 }
 0x358   : > { %v679_v55 = vsel %vm619_vm1, %v1226_v54, 0.0 }
 0x359   : > { %680 = vadd.xlane.f32.xlu2 %v679_v55 }
 0x35c   : > { %v784_v56 = vpop.xlane.xlu0 %783 }
 0x35d   : > { %v785_v57 = vsub.f32 %v778_v42, %v784_v56 }
 0x35f   : > { %v786_v58 = vmul.f32 1.442695, %v785_v57 }
 0x361   : > { %1227 = vpow2.f32 %v786_v58 }
 0x367   : > { %v1228_v59 = vpop.eup %1227 }
 0x368   : > { %v788_v60 = vsel %vm619_vm1, %v1228_v59, 0.0 }
 0x369   : > { %789 = vadd.xlane.f32.xlu1 %v788_v60 }
 0x36f   : > { %v741_v61 = vpop.permute.xlu0 %740 }
 0x370   : > { %753 = vmatpush.bf16.msra.mxu2 %v741_v61  ;;  %v1218_v61 = vld [vmem:[%s1552_s9] ss:$0 sm:$0xff] }
 0x371   : > { %686 = vrot.lane.b32.xlu2 %v1466_v12, %s1248_s19 }
 0x382   : > { %794 = vrot.lane.b32.xlu1 %v1466_v12, %s1249_s20 }
 0x3c4   : > { %v736_v62 = vpop.xlane.xlu1 %735 }
 0x3c5   : > { %1229 = vrcp.f32 %v736_v62 }
 0x3cb   : > { %v1230_v63 = vpop.eup %1229 }
 0x3cc   : > { %v738_v0 = vmul.f32 %v1230_v63, %v1224_v50  ;;  %v681_v1 = vpop.xlane.xlu2 %680 }
 0x3cd   : > { %1231 = vrcp.f32 %v681_v1 }
 0x3ce   : > { %v739_v2 = vpack.c.bf16 %v738_v0, %v738_v0 }
 0x3d0   : > { %1132 = vmatmul.msk.bf16.vlgmr.msra.gmra.mxu2 %vm619_vm1, %v739_v2 }
 0x3d3   : > { %v1232_v3 = vpop.eup %1231 }
 0x3d4   : > { %v683_v4 = vmul.f32 %v1232_v3, %v1226_v54  ;;  %v687_v5 = vpop.permute.xlu2 %686 }
 0x3d5   : > { %699 = vmatpush.bf16.msrb.mxu0 %v687_v5 }
 0x3d6   : > { %v684_v6 = vpack.c.bf16 %v683_v4, %v683_v4 }
 0x3d8   : > { %1130 = vmatmul.msk.bf16.vlgmr.msrb.gmra.mxu0 %vm619_vm1, %v684_v6 }
 0x3dc   : > { %v790_v7 = vpop.xlane.xlu1 %789 }
 0x3dd   : > { %1233 = vrcp.f32 %v790_v7 }
 0x3de   : > { %1235 = vrcp.f32 %v1250_v40 }
 0x3e3   : > { %v1234_v8 = vpop.eup %1233 }
 0x3e4   : > { %v792_v9 = vmul.f32 %v1234_v8, %v1228_v59  ;;  %v1236_v41 = vpop.eup %1235  ;;  %v1217_v59 = vld [vmem:[%s1551_s8] ss:$0 sm:$0xff] }
 0x3e5   : > { %vm921_vm4 = vweird.f32 %v1236_v41 }
 0x3e6   : > { %v793_v11 = vpack.c.bf16 %v792_v9, %v792_v9 }
 0x3f4   : > { %v795_v10 = vpop.permute.xlu1 %794 }
 0x3f5   : > { %807 = vmatpush.bf16.msra.mxu0 %v795_v10 }
 0x3f8   : > { %1134 = vmatmul.msk.bf16.vlgmr.msra.gmra.mxu0 %vm619_vm1, %v793_v11 }
 0x453   : > { %v755_v12 = vpop.f32.mrf.mxu2 }
 0x455   : > { %v701_v13 = vpop.f32.mrf.mxu0 }
 0x456   : > { %814 = vrot.lane.b32.xlu2 %v701_v13, %s1249_s20 }
 0x45b   : > { %v757_v14 = vpop.f32.mrf.mxu2 }
 0x45d   : > { %v703_v15 = vpop.f32.mrf.mxu0 }
 0x45e   : > { %818 = vrot.lane.b32.xlu2 %v755_v12, %s1247_s18 }
 0x475   : > { %v809_v16 = vpop.f32.mrf.mxu0 }
 0x476   : > { %822 = vrot.lane.b32.xlu0 %v809_v16, %s1248_s19 }
 0x47d   : > { %v811_v17 = vpop.f32.mrf.mxu0 }
 0x4b0   : > { %v815_v26 = vpop.permute.xlu2 %814 }
 0x4b1   : > { %v825_v28 = vsel %vm599_vm0, %v1479_v34, %v815_v26  ;;  %v917_v34 = vmul.f32 128.0, %v1236_v41 }
 0x4b3   : > { %v918_v42 = vsub.f32 1.0, %v917_v34 }
 0x4b5   : > { %v919_v43 = vmul.f32 %v1236_v41, %v918_v42 }
 0x4b7   : > { %v920_v44 = vadd.f32 %v1236_v41, %v919_v43 }
 0x4b8   : > { %v819_v27 = vpop.permute.xlu2 %818 }
 0x4b9   : > { %v827_v29 = vsel %vm826_vm2, %v825_v28, %v819_v27  ;;  %v922_v45 = vsel %vm921_vm4, %v1236_v41, %v920_v44 }
 0x4e8   : > { %v823_v30 = vpop.permute.xlu0 %822 }
 0x4e9   : > { %v829_v31 = vsel %vm828_vm3, %v827_v29, %v823_v30 }
 0x4ea   : > { %v830_v32 = vpack.c.bf16 %v829_v31, %v829_v31 }
 0x4ec   : > { %907 = vmatmul.bf16.vlgmr.msrb.gmra.mxu1 %v830_v32 }
 0x569   : > { %v908_v36 = vpop.f32.mrf.mxu1 }
 0x56a   : > { %v909_v37 = vadd.f32 %v1216_v33, %v908_v36 }
 0x56c   : > { %v913_v38 = vadd.f32 %v912_v35, %v909_v37 }
 0x56e   : > { %914 = vadd.xlane.f32.xlu2 %v913_v38 }
 0x571   : > { %v910_v39 = vpop.f32.mrf.mxu1 }
 0x5e1   : > { %v915_v46 = vpop.xlane.xlu2 %914 }
 0x5e2   : > { %v923_v47 = vmul.f32 %v922_v45, %v915_v46 }
 0x5e4   : > { %v924_v48 = vsub.f32 %v913_v38, %v923_v47 }
 0x5e6   : > { %v925_v49 = vmul.f32 %v924_v48, %v924_v48 }
 0x5e8   : > { %926 = vadd.xlane.f32.xlu0 %v925_v49 }
 0x65b   : > { %v927_v53 = vpop.xlane.xlu0 %926 }
 0x65c   : > { %v928_v50 = vmul.f32 %v927_v53, %v922_v45 }
 0x65e   : > { %v929_v51 = vadd.f32 1e-05, %v928_v50 }
 0x660   : > { %1237 = vrsqrt.f32 %v929_v51  ;;  %vm936_vm6 = vweird.f32 %v929_v51 }
 0x666   : > { %v1238_v52 = vpop.eup %1237 }
 0x667   : > { %v931_v54 = vmul.f32 %v1238_v52, %v929_v51  ;;  %vm937_vm5 = vweird.f32 %v1238_v52 }
 0x668   : > { %vm938_vm7 = vmor %vm936_vm6, %vm937_vm5 }
 0x669   : > { %v932_v55 = vmul.f32 %v1238_v52, %v931_v54 }
 0x66b   : > { %v933_v56 = vmul.f32 0.5, %v932_v55 }
 0x66d   : > { %v934_v57 = vsub.f32 1.5, %v933_v56 }
 0x66f   : > { %v935_v58 = vmul.f32 %v1238_v52, %v934_v57 }
 0x671   : > { %v939_v60 = vsel %vm938_vm7, %v1238_v52, %v935_v58 }
 0x672   : > { %v940_v62 = vmul.f32 %v939_v60, %v924_v48 }
 0x674   : > { %v945_v63 = vmul.f32 %v1217_v59, %v940_v62 }
 0x676   : > { %v950_v0 = vadd.f32 %v1218_v61, %v945_v63 }
 0x678   : > { %v951_v1 = vpack.c.bf16 %v950_v0, %v950_v0 }
 0x67a   : > { %952 = vst [vmem:[%s374_s29] sm:$0xf] %v951_v1 }
 0x67b PF: > { %s20_s13 = sadd.s32 1, %s1245_s13  }
 0x67c   : > { %p17_p4 = scmp.ge.s32.totalorder %s20_s13, 4  }
 0x67e   :  { %19 = sbr.rel (!%p17_p4) target bundleno = 1 (0x1), region = 93 }

</bundles_post_ra>
